<compile_context>
chip_gen: v7x
topology: tpu7x:2x2x1
jax: 0.10.0
libtpu: 0.0.40
codegen_flags: <defaults>
</compile_context>

<pallas_src>
import functools
import math

import jax
import jax.numpy as jnp
from jax.experimental import pallas as pl
from jax.experimental.pallas import tpu as pltpu

_EPS = 1e-6
_LANE = 128


def _round_up(x, m):
    return (x + m - 1) // m * m


def _norm(x, alpha, beta, eps=_EPS):
    # Matches the PyTorch `Norm` module: torch.std(dim=-1) is the *unbiased*
    # std (divides by n-1), and eps is added to the std, not the variance.
    n = x.shape[-1]
    mean = jnp.mean(x, axis=-1, keepdims=True)
    cen = x - mean
    var = jnp.sum(cen * cen, axis=-1, keepdims=True) * (1.0 / (n - 1))
    return alpha * cen / (jnp.sqrt(var) + eps) + beta


def _dot(a, b, dtype):
    return jnp.dot(a.astype(dtype), b.astype(dtype),
                   preferred_element_type=jnp.float32)


def _bmm(spec, a, b, dtype):
    return jnp.einsum(spec, a.astype(dtype), b.astype(dtype),
                      preferred_element_type=jnp.float32)


# ----------------------------------------------------------------------------
# Kernel
# ----------------------------------------------------------------------------

def _selfattn_kernel(xr_ref, er_ref,
                     wqkv_ref, bqkv_ref, wo_ref, bo_ref,
                     w1_ref, b1_ref, w2_ref, b2_ref,
                     a2_ref, g2_ref,
                     out_ref, *, heads, hd, hd_pad, mm_dtype):
    xr = xr_ref[...]                              # (bb, S, d_h)  original x
    er = er_ref[...]                              # (bb, S, d_h)  e slice
    bb, S, d_h = xr.shape
    E = hd * heads                                # true MHA embed dim
    E_pad = hd_pad * heads                        # 128-lane aligned per head
    N = bb * S

    xr2 = xr.reshape(N, d_h)
    er2 = er.reshape(N, d_h)
    # cat(x, e): built once, reused by the projection AND the residual.
    xe = jnp.concatenate([xr2, er2], axis=-1)     # (N, 2*d_h)

    # Single fused q/k/v projection GEMM (K = 2*d_h).  linear_h, the heads-
    # repeat, the three in-projections and the x/e split are all pre-folded
    # into one (2*d_h, 3*E_pad) weight; each head's column block is padded to
    # 128 lanes so every per-head slice below is an aligned, copy-free view.
    qkv = _dot(xe, wqkv_ref[...], mm_dtype) + bqkv_ref[...]     # (N, 3*E_pad)
    qkv3 = qkv.reshape(bb, S, 3 * E_pad)

    scale = 1.0 / math.sqrt(hd)
    outs = []
    # TODO(synk): for large S, tile the KV axis with an online softmax instead
    # of materializing the full (bb, S, S) scores per head.
    for h in range(heads):                        # heads is small & static
        base = h * hd_pad
        q_h = qkv3[..., base:base + hd_pad]
        k_h = qkv3[..., E_pad + base:E_pad + base + hd_pad]
        v_h = qkv3[..., 2 * E_pad + base:2 * E_pad + base + hd_pad]
        s = _bmm('bqd,bkd->bqk', q_h, k_h, mm_dtype) * scale
        s = s - jnp.max(s, axis=-1, keepdims=True)
        p = jnp.exp(s)
        p = p * pl.reciprocal(jnp.sum(p, axis=-1, keepdims=True), approx=False)
        outs.append(_bmm('bqk,bkd->bqd', p, v_h, mm_dtype).reshape(N, hd_pad))
    # 128-aligned lane concat, then ONE out-projection GEMM (K = E_pad).
    o_all = jnp.concatenate(outs, axis=-1)                      # (N, E_pad)
    attn = _dot(o_all, wo_ref[...], mm_dtype) + bo_ref[...]     # (N, E)

    # Residual 1 (x.repeat(1,1,heads)) + Norm(E).  Norm1 alpha/beta are folded
    # into w1/b1 on the host, so only cen * 1/std is needed here.
    x_rep = jnp.concatenate([xe] * heads, axis=-1)              # (N, E)
    r1 = x_rep + attn
    mean1 = jnp.mean(r1, axis=-1, keepdims=True)
    cen1 = r1 - mean1
    var1 = jnp.sum(cen1 * cen1, axis=-1, keepdims=True) * (1.0 / (E - 1))
    y1 = cen1 * pl.reciprocal(jnp.sqrt(var1) + _EPS, approx=False)

    # pos_ffn: Linear -> ReLU -> Dropout(eval identity) -> Linear -> ReLU
    h1 = jnp.maximum(_dot(y1, w1_ref[...], mm_dtype) + b1_ref[...], 0.0)
    h2 = jnp.maximum(_dot(h1, w2_ref[...], mm_dtype) + b2_ref[...], 0.0)

    # Residual 2 (original x) + Norm(d_h)
    r2 = xr2 + h2
    mean2 = jnp.mean(r2, axis=-1, keepdims=True)
    cen2 = r2 - mean2
    var2 = jnp.sum(cen2 * cen2, axis=-1, keepdims=True) * (1.0 / (d_h - 1))
    x2 = (a2_ref[...] * cen2 * pl.reciprocal(jnp.sqrt(var2) + _EPS, approx=False)
          + g2_ref[...])
    # TODO(synk): a lane-dense (bb, S*d_h) output block would avoid masked vst
    # for d_h < 128, but the required in-kernel (N,d_h)<->(bb,S*d_h) shape-cast
    # is not reliably lowered by Mosaic, so the d_h-minor store is kept.
    out_ref[...] = x2.reshape(bb, S, d_h)


# ----------------------------------------------------------------------------
# Parameters (original module layout) and host-side algebraic folding.
# ----------------------------------------------------------------------------

def init_params(key, d_h, heads):
    """Deterministic synthetic parameters (shapes match the nn.Module).
    All linear weights are stored pre-transposed so y = x @ W + b."""
    two = 2 * d_h
    E = two * heads
    ks = jax.random.split(key, 18)

    def w(k, shape, scale=0.1):
        return scale * jax.random.normal(k, shape, jnp.float32)

    return dict(
        # linear_h: Linear(d_h, 2*d_h)
        wh=w(ks[0], (d_h, two)), bh=w(ks[1], (1, two)),
        # MultiheadAttention(E, heads): in_proj (split into q/k/v) + out_proj
        wq=w(ks[2], (E, E)), bq=w(ks[3], (1, E)),
        wk=w(ks[4], (E, E)), bk=w(ks[5], (1, E)),
        wv=w(ks[6], (E, E)), bv=w(ks[7], (1, E)),
        wo=w(ks[8], (E, E)), bo=w(ks[9], (1, E)),
        # Norm(E): non-trivial affine so the Norm1 fold is actually exercised
        a1=1.0 + w(ks[10], (1, E)), g1=w(ks[11], (1, E)),
        # pos_ffn: Linear(E, 2*d_h), Linear(2*d_h, d_h)
        w1=w(ks[12], (E, two)), b1=w(ks[13], (1, two)),
        w2=w(ks[14], (two, d_h)), b2=w(ks[15], (1, d_h)),
        # Norm(d_h)
        a2=1.0 + w(ks[16], (1, d_h)), g2=w(ks[17], (1, d_h)),
    )


_FOLDED_ORDER = ("wqkv", "bqkv", "wo", "bo", "w1", "b1", "w2", "b2", "a2", "g2")


def fold_params(params, d_h, heads, matmul_dtype=jnp.float32):
    """Exact algebraic folding (up to fp reassociation):
       * x.repeat(1,1,heads) @ Wq  ->  cat(x,e) @ (sum of per-head row blocks)
       * linear_h + heads-repeat + Wv -> x @ (Wh @ Wv_fold)  (e-rows zero)
       * q/k/v fused into ONE (2*d_h, 3*E_pad) weight; every head's column
         block is zero-padded to 128 lanes so in-kernel slices are aligned.
       * out-projection rows padded per head to 128; Norm1 affine folded into
         the first FFN layer (diag(a1) @ w1, g1 @ w1 + b1)."""
    two = 2 * d_h
    hd = two
    E = two * heads
    hd_pad = _round_up(hd, _LANE)
    hp = jax.lax.Precision.HIGHEST
    p = params

    def head_fold(w):                                   # (E, E) -> (two, E)
        return w.reshape(heads, two, E).sum(axis=0)

    wq_f, wk_f, wv_f = head_fold(p['wq']), head_fold(p['wk']), head_fold(p['wv'])
    wv_x = jnp.dot(p['wh'], wv_f, precision=hp)              # (d_h, E)
    bv_f = jnp.dot(p['bh'], wv_f, precision=hp) + p['bv']    # (1, E)
    # v depends only on x (through linear_h); the e-part rows are zero.
    wv_full = jnp.concatenate([wv_x, jnp.zeros((d_h, E), jnp.float32)], axis=0)

    def pad_head_cols(w):                  # (r, heads*hd) -> (r, heads*hd_pad)
        r = w.shape[0]
        out = jnp.zeros((r, heads, hd_pad), jnp.float32)
        out = out.at[:, :, :hd].set(w.reshape(r, heads, hd))
        return out.reshape(r, heads * hd_pad)

    wqkv = jnp.concatenate(
        [pad_head_cols(wq_f), pad_head_cols(wk_f), pad_head_cols(wv_full)],
        axis=1)                                           # (2*d_h, 3*E_pad)
    bqkv = jnp.concatenate(
        [pad_head_cols(p['bq']), pad_head_cols(p['bk']), pad_head_cols(bv_f)],
        axis=1)                                           # (1, 3*E_pad)

    # out-projection: row block of head h zero-padded to hd_pad rows.
    wo3 = p['wo'].reshape(heads, hd, E)
    wo_pad = (jnp.zeros((heads, hd_pad, E), jnp.float32)
              .at[:, :hd, :].set(wo3)
              .reshape(heads * hd_pad, E))

    # Norm1 affine folded into the first FFN layer.
    w1f = p['a1'].reshape(E, 1) * p['w1']                     # diag(a1) @ w1
    b1f = jnp.dot(p['g1'], p['w1'], precision=hp) + p['b1']   # (1, 2*d_h)

    md = matmul_dtype   # MXU operand dtype only; biases / norm params stay f32
    return dict(
        wqkv=wqkv.astype(md), bqkv=bqkv,
        wo=wo_pad.astype(md), bo=p['bo'],
        w1=w1f.astype(md), b1=b1f,
        w2=p['w2'].astype(md), b2=p['b2'],
        a2=p['a2'], g2=p['g2'])


# ----------------------------------------------------------------------------
# VMEM planning (generation-aware, (8,128)-padding-aware)
# ----------------------------------------------------------------------------

def _padded_bytes(shape, itemsize=4):
    if len(shape) == 1:
        return _round_up(shape[0], _LANE) * itemsize
    lead = 1
    for d in shape[:-2]:
        lead *= d
    return lead * _round_up(shape[-2], 8) * _round_up(shape[-1], _LANE) * itemsize


def _weights_vmem_bytes(weights, buffers=2):
    # Assume double-buffered (worst case; single if pl.Buffered(1) is honoured).
    return buffers * sum(_padded_bytes(w.shape, w.dtype.itemsize) for w in weights)


def _step_vmem_bytes(bb, S, d_h, heads, hd_pad):
    """Per-grid-step VMEM estimate (activations + I/O), lane/sublane padded."""
    E = 2 * d_h * heads
    E_pad = hd_pad * heads
    n = bb * S

    def t2(r, c):
        return _round_up(r, 8) * _round_up(c, _LANE) * 4

    def t3(b, r, c):
        return b * _round_up(r, 8) * _round_up(c, _LANE) * 4

    act = (t2(n, 2 * d_h)          # xe
           + t2(n, 3 * E_pad)      # fused qkv projection
           + 2 * t3(bb, S, S)      # live per-head scores + probs
           + t2(n, E_pad)          # concatenated per-head outputs
           + 4 * t2(n, E)          # attn, x_rep, residual / centred / normed
           + t2(n, 2 * d_h)        # ffn hidden
           + 3 * t2(n, d_h))       # ffn out, residual2, normed out
    io = 6 * t3(bb, S, d_h)        # double-buffered x & e inputs + output
    return act + io


def _pick_block_b(B, S, d_h, heads, hd_pad, budget_bytes):
    """Largest divisor of B that fits the activation budget; prefer >= 2 grid
    steps (pipelining) and an even grid length (v7x 2-TensorCore split)."""
    divs = [d for d in range(1, B + 1) if B % d == 0]
    fit = [d for d in divs
           if _step_vmem_bytes(d, S, d_h, heads, hd_pad) <= budget_bytes] or [1]
    multi = [d for d in fit if B // d >= 2]
    if multi:
        even = [d for d in multi if (B // d) % 2 == 0]
        return max(even or multi)
    return max(fit)


def _vmem_plan():
    """Generation-aware (vmem_limit_bytes, per-step VMEM budget)."""
    cap = 64 * 1024 * 1024
    try:
        info = pltpu.get_tpu_info()
        cap = int(getattr(info, "vmem_capacity_bytes", cap) or cap)
    except Exception:
        pass
    if cap >= 100 * 1024 * 1024:                  # v5e / v6e: 128 MiB physical
        return 96 * 1024 * 1024, 40 * 1024 * 1024
    return 48 * 1024 * 1024, 28 * 1024 * 1024     # v7x: 64 MiB per TensorCore


# ----------------------------------------------------------------------------
# Wrapper
# ----------------------------------------------------------------------------

def _weight_spec(shape, single_buffer):
    nd = len(shape)
    index_map = lambda i: (0,) * nd              # grid-invariant (replicated)
    if single_buffer:
        # Weights never change across the grid: a single VMEM buffer suffices.
        return pl.BlockSpec(shape, index_map, pipeline_mode=pl.Buffered(1))
    return pl.BlockSpec(shape, index_map)


def selfattn_block(x, e, params, *, Ns, Nt, d_h, heads, direction=0,
                   block_b=None, matmul_dtype=jnp.bfloat16):
    bs = x.shape[0]
    # The host-side transpose for direction==0 is kept (XLA fuses it into one
    # copy); the cat((x,e)) concat and the heads-repeat are NOT materialized on
    # the host - they are folded into the kernel / projection weights.
    if direction == 0:
        S, B = Ns, bs * Nt
        xr = jnp.transpose(x, (0, 2, 1, 3)).reshape(B, S, d_h)
        er = jnp.transpose(e, (0, 2, 1, 3)).reshape(B, S, d_h)
    elif direction == 1:
        S, B = Nt, bs * Ns
        xr = x.reshape(B, S, d_h)
        er = e.reshape(B, S, d_h)
    else:
        raise ValueError("direction must be 0 or 1")

    hd = 2 * d_h
    hd_pad = _round_up(hd, _LANE)
    fp = fold_params(params, d_h, heads, matmul_dtype)
    weights = [fp[k] for k in _FOLDED_ORDER]

    vmem_limit, step_budget = _vmem_plan()
    act_budget = max(step_budget - _weights_vmem_bytes(weights), 2 * 1024 * 1024)
    if block_b is None:
        block_b = _pick_block_b(B, S, d_h, heads, hd_pad, act_budget)
    assert B % block_b == 0
    grid = (B // block_b,)

    kernel = functools.partial(_selfattn_kernel, heads=heads, hd=hd,
                               hd_pad=hd_pad, mm_dtype=matmul_dtype)
    io_spec = pl.BlockSpec((block_b, S, d_h), lambda i: (i, 0, 0))

    def run(single_buffer_weights):
        in_specs = [io_spec, io_spec]
        in_specs += [_weight_spec(w.shape, single_buffer_weights)
                     for w in weights]
        return pl.pallas_call(
            kernel,
            out_shape=jax.ShapeDtypeStruct((B, S, d_h), jnp.float32),
            grid=grid,
            in_specs=in_specs,
            out_specs=pl.BlockSpec((block_b, S, d_h), lambda i: (i, 0, 0)),
            compiler_params=pltpu.CompilerParams(
                dimension_semantics=("parallel",),
                vmem_limit_bytes=vmem_limit),
        )(xr, er, *weights)

    try:
        out = run(True)
    except Exception:
        # Fallback: this jax build rejects pipeline_mode=pl.Buffered(1) for
        # weight blocks -> use default double-buffered weight blocks.
        out = run(False)

    if direction == 0:
        out = out.reshape(bs, Nt, Ns, d_h).transpose(0, 2, 1, 3)
    else:
        out = out.reshape(bs, Ns, Nt, d_h)
    return out


# ----------------------------------------------------------------------------
# Pure-JAX reference of the same math (unfolded; used only for self-checking)
# ----------------------------------------------------------------------------

def reference(x, e, params, *, Ns, Nt, d_h, heads, direction=0):
    hp = jax.lax.Precision.HIGHEST
    bs = x.shape[0]
    if direction == 0:
        xr = jnp.transpose(x, (0, 2, 1, 3)).reshape(bs * Nt, Ns, d_h)
        er = jnp.transpose(e, (0, 2, 1, 3)).reshape(bs * Nt, Ns, d_h)
    else:
        xr = x.reshape(bs * Ns, Nt, d_h)
        er = e.reshape(bs * Ns, Nt, d_h)
    B, S, _ = xr.shape
    two = 2 * d_h
    E = two * heads
    hd = two
    p = params
    tx = jnp.einsum('bsf,fg->bsg', xr, p['wh'], precision=hp) + p['bh']
    xcat = jnp.concatenate([xr, er], axis=-1)
    x_rep = jnp.concatenate([xcat] * heads, axis=-1)
    tx_rep = jnp.concatenate([tx] * heads, axis=-1)
    q = jnp.einsum('bsf,fg->bsg', x_rep, p['wq'], precision=hp) + p['bq']
    k = jnp.einsum('bsf,fg->bsg', x_rep, p['wk'], precision=hp) + p['bk']
    v = jnp.einsum('bsf,fg->bsg', tx_rep, p['wv'], precision=hp) + p['bv']
    q = q.reshape(B, S, heads, hd)
    k = k.reshape(B, S, heads, hd)
    v = v.reshape(B, S, heads, hd)
    s = jnp.einsum('bqhd,bkhd->bhqk', q, k, precision=hp) / math.sqrt(hd)
    a = jax.nn.softmax(s, axis=-1)
    o = jnp.einsum('bhqk,bkhd->bqhd', a, v, precision=hp).reshape(B, S, E)
    o = jnp.einsum('bsf,fg->bsg', o, p['wo'], precision=hp) + p['bo']
    x1 = _norm(x_rep + o, p['a1'], p['g1'])
    h1 = jax.nn.relu(jnp.einsum('bsf,fg->bsg', x1, p['w1'], precision=hp) + p['b1'])
    h2 = jax.nn.relu(jnp.einsum('bsf,fg->bsg', h1, p['w2'], precision=hp) + p['b2'])
    x2 = _norm(xr + h2, p['a2'], p['g2'])
    if direction == 0:
        return x2.reshape(bs, Nt, Ns, d_h).transpose(0, 2, 1, 3)
    return x2.reshape(bs, Ns, Nt, d_h)


if __name__ == "__main__":
    key = jax.random.PRNGKey(0)
    kx, ke, kp = jax.random.split(key, 3)

    bs, Ns, Nt, d_h, heads = 2, 8, 4, 16, 2
    x = jax.random.normal(kx, (bs, Ns, Nt, d_h), jnp.float32)
    e = jax.random.normal(ke, (bs, Ns, Nt, d_h), jnp.float32)
    params = init_params(kp, d_h, heads)

    refs = {}
    for direction in (0, 1):
        out = selfattn_block(x, e, params, Ns=Ns, Nt=Nt, d_h=d_h, heads=heads,
                             direction=direction, matmul_dtype=jnp.float32)
        out = jax.block_until_ready(out)
        ref = reference(x, e, params, Ns=Ns, Nt=Nt, d_h=d_h, heads=heads,
                        direction=direction)
        refs[direction] = ref
        assert out.shape == (bs, Ns, Nt, d_h)
        assert bool(jnp.isfinite(out).all())
        err = float(jnp.max(jnp.abs(out - ref)))
        assert err < 1e-2, f"direction={direction}: f32 max abs err {err}"

    # Default path uses bf16 MXU operands (recommended on v5e/v6e/v7x);
    # all softmax / norm / residual elementwise math stays in f32.
    out_bf16 = selfattn_block(x, e, params, Ns=Ns, Nt=Nt, d_h=d_h, heads=heads,
                              direction=0)
    out_bf16 = jax.block_until_ready(out_bf16)
    assert bool(jnp.isfinite(out_bf16).all())
    err_bf16 = float(jnp.max(jnp.abs(out_bf16 - refs[0])))
    assert err_bf16 < 1e-1, f"bf16 max abs err {err_bf16}"

    print("KERNEL_OK")
</pallas_src>

<mosaic_0001>
module attributes {stable_mosaic.version = 11 : i64} {
  func.func @_selfattn_kernel(%arg0: i32, %arg1: memref<4x8x16xf32, #tpu.memory_space<vmem>>, %arg2: memref<4x8x16xf32, #tpu.memory_space<vmem>>, %arg3: memref<32x768xf32, #tpu.memory_space<vmem>>, %arg4: memref<1x768xf32, #tpu.memory_space<vmem>>, %arg5: memref<256x64xf32, #tpu.memory_space<vmem>>, %arg6: memref<1x64xf32, #tpu.memory_space<vmem>>, %arg7: memref<64x32xf32, #tpu.memory_space<vmem>>, %arg8: memref<1x32xf32, #tpu.memory_space<vmem>>, %arg9: memref<32x16xf32, #tpu.memory_space<vmem>>, %arg10: memref<1x16xf32, #tpu.memory_space<vmem>>, %arg11: memref<1x16xf32, #tpu.memory_space<vmem>>, %arg12: memref<1x16xf32, #tpu.memory_space<vmem>>, %arg13: memref<4x8x16xf32, #tpu.memory_space<vmem>>) attributes {dimension_semantics = [#tpu.dimension_semantics<parallel>], iteration_bounds = array<i64: 2>, scalar_prefetch = 0 : i64, scratch_operands = 0 : i64, tpu.core_type = #tpu.core_type<tc>, window_params = [{transform_indices = @transform_0, window_bounds = array<i64: 4, 8, 16>}, {transform_indices = @transform_1, window_bounds = array<i64: 4, 8, 16>}, {pipeline_mode = #tpu.pipeline_mode<synchronous>, transform_indices = @transform_2, window_bounds = array<i64: 32, 768>}, {pipeline_mode = #tpu.pipeline_mode<synchronous>, transform_indices = @transform_3, window_bounds = array<i64: 1, 768>}, {pipeline_mode = #tpu.pipeline_mode<synchronous>, transform_indices = @transform_4, window_bounds = array<i64: 256, 64>}, {pipeline_mode = #tpu.pipeline_mode<synchronous>, transform_indices = @transform_5, window_bounds = array<i64: 1, 64>}, {pipeline_mode = #tpu.pipeline_mode<synchronous>, transform_indices = @transform_6, window_bounds = array<i64: 64, 32>}, {pipeline_mode = #tpu.pipeline_mode<synchronous>, transform_indices = @transform_7, window_bounds = array<i64: 1, 32>}, {pipeline_mode = #tpu.pipeline_mode<synchronous>, transform_indices = @transform_8, window_bounds = array<i64: 32, 16>}, {pipeline_mode = #tpu.pipeline_mode<synchronous>, transform_indices = @transform_9, window_bounds = array<i64: 1, 16>}, {pipeline_mode = #tpu.pipeline_mode<synchronous>, transform_indices = @transform_10, window_bounds = array<i64: 1, 16>}, {pipeline_mode = #tpu.pipeline_mode<synchronous>, transform_indices = @transform_11, window_bounds = array<i64: 1, 16>}, {transform_indices = @transform_12, window_bounds = array<i64: 4, 8, 16>}]} {
    %c0 = arith.constant 0 : index
    %c0_0 = arith.constant 0 : index
    %c0_1 = arith.constant 0 : index
    %0 = vector.load %arg1[%c0, %c0_0, %c0_1] : memref<4x8x16xf32, #tpu.memory_space<vmem>>, vector<4x8x16xf32>
    %c0_2 = arith.constant 0 : index
    %c0_3 = arith.constant 0 : index
    %c0_4 = arith.constant 0 : index
    %1 = vector.load %arg2[%c0_2, %c0_3, %c0_4] : memref<4x8x16xf32, #tpu.memory_space<vmem>>, vector<4x8x16xf32>
    %2 = vector.shape_cast %0 : vector<4x8x16xf32> to vector<32x16xf32>
    %3 = vector.shape_cast %1 : vector<4x8x16xf32> to vector<32x16xf32>
    %4 = tpu.concatenate %2, %3 in 1 : vector<32x16xf32>, vector<32x16xf32> -> vector<32x32xf32>
    %c0_5 = arith.constant 0 : index
    %c0_6 = arith.constant 0 : index
    %5 = vector.load %arg3[%c0_5, %c0_6] : memref<32x768xf32, #tpu.memory_space<vmem>>, vector<32x768xf32>
    %cst = arith.constant dense<0.000000e+00> : vector<32x768xf32>
    %6 = tpu.matmul %4, %5, %cst {dimension_numbers = #tpu.dot_dimension_numbers<[1], [0], [0], [1], [0, 0, 1, 1], [], []>} : vector<32x32xf32>, vector<32x768xf32>, vector<32x768xf32> -> vector<32x768xf32>
    %c0_7 = arith.constant 0 : index
    %c0_8 = arith.constant 0 : index
    %7 = vector.load %arg4[%c0_7, %c0_8] : memref<1x768xf32, #tpu.memory_space<vmem>>, vector<1x768xf32>
    %8 = vector.broadcast %7 : vector<1x768xf32> to vector<32x768xf32>
    %9 = arith.addf %6, %8 : vector<32x768xf32>
    %10 = vector.shape_cast %9 : vector<32x768xf32> to vector<4x8x768xf32>
    %11 = vector.extract_strided_slice %10 {offsets = [0, 0, 0], sizes = [4, 8, 128], strides = [1, 1, 1]} : vector<4x8x768xf32> to vector<4x8x128xf32>
    %12 = vector.extract_strided_slice %10 {offsets = [0, 0, 256], sizes = [4, 8, 128], strides = [1, 1, 1]} : vector<4x8x768xf32> to vector<4x8x128xf32>
    %13 = vector.extract_strided_slice %10 {offsets = [0, 0, 512], sizes = [4, 8, 128], strides = [1, 1, 1]} : vector<4x8x768xf32> to vector<4x8x128xf32>
    "tpu.trace_start"() <{level = 10 : i32, message = "bqd,bkd->bqk"}> : () -> ()
    %cst_9 = arith.constant dense<0.000000e+00> : vector<4x8x8xf32>
    %14 = tpu.matmul %11, %12, %cst_9 {dimension_numbers = #tpu.dot_dimension_numbers<[2], [2], [1], [1], [0, 0, 0, 1, 1, 1], [0], [0]>} : vector<4x8x128xf32>, vector<4x8x128xf32>, vector<4x8x8xf32> -> vector<4x8x8xf32>
    "tpu.trace_stop"() : () -> ()
    %cst_10 = arith.constant 0.176776692 : f32
    %15 = vector.broadcast %cst_10 : f32 to vector<4x8x8xf32>
    %16 = arith.mulf %14, %15 : vector<4x8x8xf32>
    %cst_11 = arith.constant dense<0xFF800000> : vector<4x8xf32>
    %17 = vector.multi_reduction <maximumf>, %16, %cst_11 [2] : vector<4x8x8xf32> to vector<4x8xf32>
    %18 = vector.shape_cast %17 : vector<4x8xf32> to vector<4x8x1xf32>
    %19 = vector.broadcast %18 : vector<4x8x1xf32> to vector<4x8x8xf32>
    %20 = arith.subf %16, %19 : vector<4x8x8xf32>
    %21 = math.exp %20 : vector<4x8x8xf32>
    %cst_12 = arith.constant dense<0.000000e+00> : vector<4x8xf32>
    %22 = vector.multi_reduction <add>, %21, %cst_12 [2] : vector<4x8x8xf32> to vector<4x8xf32>
    %23 = vector.shape_cast %22 : vector<4x8xf32> to vector<4x8x1xf32>
    %24 = tpu.reciprocal %23 : vector<4x8x1xf32> -> vector<4x8x1xf32>
    %25 = vector.broadcast %24 : vector<4x8x1xf32> to vector<4x8x8xf32>
    %26 = arith.mulf %21, %25 : vector<4x8x8xf32>
    "tpu.trace_start"() <{level = 10 : i32, message = "bqk,bkd->bqd"}> : () -> ()
    %cst_13 = arith.constant dense<0.000000e+00> : vector<4x8x128xf32>
    %27 = tpu.matmul %26, %13, %cst_13 {dimension_numbers = #tpu.dot_dimension_numbers<[2], [1], [1], [2], [0, 0, 0, 1, 1, 2], [0], [0]>} : vector<4x8x8xf32>, vector<4x8x128xf32>, vector<4x8x128xf32> -> vector<4x8x128xf32>
    "tpu.trace_stop"() : () -> ()
    %28 = vector.shape_cast %27 : vector<4x8x128xf32> to vector<32x128xf32>
    %29 = vector.extract_strided_slice %10 {offsets = [0, 0, 128], sizes = [4, 8, 128], strides = [1, 1, 1]} : vector<4x8x768xf32> to vector<4x8x128xf32>
    %30 = vector.extract_strided_slice %10 {offsets = [0, 0, 384], sizes = [4, 8, 128], strides = [1, 1, 1]} : vector<4x8x768xf32> to vector<4x8x128xf32>
    %31 = vector.extract_strided_slice %10 {offsets = [0, 0, 640], sizes = [4, 8, 128], strides = [1, 1, 1]} : vector<4x8x768xf32> to vector<4x8x128xf32>
    "tpu.trace_start"() <{level = 10 : i32, message = "bqd,bkd->bqk"}> : () -> ()
    %cst_14 = arith.constant dense<0.000000e+00> : vector<4x8x8xf32>
    %32 = tpu.matmul %29, %30, %cst_14 {dimension_numbers = #tpu.dot_dimension_numbers<[2], [2], [1], [1], [0, 0, 0, 1, 1, 1], [0], [0]>} : vector<4x8x128xf32>, vector<4x8x128xf32>, vector<4x8x8xf32> -> vector<4x8x8xf32>
    "tpu.trace_stop"() : () -> ()
    %cst_15 = arith.constant 0.176776692 : f32
    %33 = vector.broadcast %cst_15 : f32 to vector<4x8x8xf32>
    %34 = arith.mulf %32, %33 : vector<4x8x8xf32>
    %cst_16 = arith.constant dense<0xFF800000> : vector<4x8xf32>
    %35 = vector.multi_reduction <maximumf>, %34, %cst_16 [2] : vector<4x8x8xf32> to vector<4x8xf32>
    %36 = vector.shape_cast %35 : vector<4x8xf32> to vector<4x8x1xf32>
    %37 = vector.broadcast %36 : vector<4x8x1xf32> to vector<4x8x8xf32>
    %38 = arith.subf %34, %37 : vector<4x8x8xf32>
    %39 = math.exp %38 : vector<4x8x8xf32>
    %cst_17 = arith.constant dense<0.000000e+00> : vector<4x8xf32>
    %40 = vector.multi_reduction <add>, %39, %cst_17 [2] : vector<4x8x8xf32> to vector<4x8xf32>
    %41 = vector.shape_cast %40 : vector<4x8xf32> to vector<4x8x1xf32>
    %42 = tpu.reciprocal %41 : vector<4x8x1xf32> -> vector<4x8x1xf32>
    %43 = vector.broadcast %42 : vector<4x8x1xf32> to vector<4x8x8xf32>
    %44 = arith.mulf %39, %43 : vector<4x8x8xf32>
    "tpu.trace_start"() <{level = 10 : i32, message = "bqk,bkd->bqd"}> : () -> ()
    %cst_18 = arith.constant dense<0.000000e+00> : vector<4x8x128xf32>
    %45 = tpu.matmul %44, %31, %cst_18 {dimension_numbers = #tpu.dot_dimension_numbers<[2], [1], [1], [2], [0, 0, 0, 1, 1, 2], [0], [0]>} : vector<4x8x8xf32>, vector<4x8x128xf32>, vector<4x8x128xf32> -> vector<4x8x128xf32>
    "tpu.trace_stop"() : () -> ()
    %46 = vector.shape_cast %45 : vector<4x8x128xf32> to vector<32x128xf32>
    %47 = tpu.concatenate %28, %46 in 1 : vector<32x128xf32>, vector<32x128xf32> -> vector<32x256xf32>
    %c0_19 = arith.constant 0 : index
    %c0_20 = arith.constant 0 : index
    %48 = vector.load %arg5[%c0_19, %c0_20] : memref<256x64xf32, #tpu.memory_space<vmem>>, vector<256x64xf32>
    %cst_21 = arith.constant dense<0.000000e+00> : vector<32x64xf32>
    %49 = tpu.matmul %47, %48, %cst_21 {dimension_numbers = #tpu.dot_dimension_numbers<[1], [0], [0], [1], [0, 0, 1, 1], [], []>} : vector<32x256xf32>, vector<256x64xf32>, vector<32x64xf32> -> vector<32x64xf32>
    %c0_22 = arith.constant 0 : index
    %c0_23 = arith.constant 0 : index
    %50 = vector.load %arg6[%c0_22, %c0_23] : memref<1x64xf32, #tpu.memory_space<vmem>>, vector<1x64xf32>
    %51 = vector.broadcast %50 : vector<1x64xf32> to vector<32x64xf32>
    %52 = arith.addf %49, %51 : vector<32x64xf32>
    %53 = tpu.concatenate %4, %4 in 1 : vector<32x32xf32>, vector<32x32xf32> -> vector<32x64xf32>
    %54 = arith.addf %53, %52 : vector<32x64xf32>
    %cst_24 = arith.constant dense<0.000000e+00> : vector<32xf32>
    %55 = vector.multi_reduction <add>, %54, %cst_24 [1] : vector<32x64xf32> to vector<32xf32>
    %56 = vector.shape_cast %55 : vector<32xf32> to vector<32x1xf32>
    %cst_25 = arith.constant 6.400000e+01 : f32
    %57 = vector.broadcast %cst_25 : f32 to vector<32x1xf32>
    %58 = arith.divf %56, %57 : vector<32x1xf32>
    %59 = vector.broadcast %58 : vector<32x1xf32> to vector<32x64xf32>
    %60 = arith.subf %54, %59 : vector<32x64xf32>
    %61 = arith.mulf %60, %60 : vector<32x64xf32>
    %cst_26 = arith.constant dense<0.000000e+00> : vector<32xf32>
    %62 = vector.multi_reduction <add>, %61, %cst_26 [1] : vector<32x64xf32> to vector<32xf32>
    %63 = vector.shape_cast %62 : vector<32xf32> to vector<32x1xf32>
    %cst_27 = arith.constant 0.0158730168 : f32
    %64 = vector.broadcast %cst_27 : f32 to vector<32x1xf32>
    %65 = arith.mulf %63, %64 : vector<32x1xf32>
    %66 = math.sqrt %65 : vector<32x1xf32>
    %cst_28 = arith.constant 9.99999997E-7 : f32
    %67 = vector.broadcast %cst_28 : f32 to vector<32x1xf32>
    %68 = arith.addf %66, %67 : vector<32x1xf32>
    %69 = tpu.reciprocal %68 : vector<32x1xf32> -> vector<32x1xf32>
    %70 = vector.broadcast %69 : vector<32x1xf32> to vector<32x64xf32>
    %71 = arith.mulf %60, %70 : vector<32x64xf32>
    %c0_29 = arith.constant 0 : index
    %c0_30 = arith.constant 0 : index
    %72 = vector.load %arg7[%c0_29, %c0_30] : memref<64x32xf32, #tpu.memory_space<vmem>>, vector<64x32xf32>
    %cst_31 = arith.constant dense<0.000000e+00> : vector<32x32xf32>
    %73 = tpu.matmul %71, %72, %cst_31 {dimension_numbers = #tpu.dot_dimension_numbers<[1], [0], [0], [1], [0, 0, 1, 1], [], []>} : vector<32x64xf32>, vector<64x32xf32>, vector<32x32xf32> -> vector<32x32xf32>
    %c0_32 = arith.constant 0 : index
    %c0_33 = arith.constant 0 : index
    %74 = vector.load %arg8[%c0_32, %c0_33] : memref<1x32xf32, #tpu.memory_space<vmem>>, vector<1x32xf32>
    %75 = vector.broadcast %74 : vector<1x32xf32> to vector<32x32xf32>
    %76 = arith.addf %73, %75 : vector<32x32xf32>
    %cst_34 = arith.constant 0.000000e+00 : f32
    %77 = vector.broadcast %cst_34 : f32 to vector<32x32xf32>
    %78 = arith.maximumf %76, %77 : vector<32x32xf32>
    %c0_35 = arith.constant 0 : index
    %c0_36 = arith.constant 0 : index
    %79 = vector.load %arg9[%c0_35, %c0_36] : memref<32x16xf32, #tpu.memory_space<vmem>>, vector<32x16xf32>
    %cst_37 = arith.constant dense<0.000000e+00> : vector<32x16xf32>
    %80 = tpu.matmul %78, %79, %cst_37 {dimension_numbers = #tpu.dot_dimension_numbers<[1], [0], [0], [1], [0, 0, 1, 1], [], []>} : vector<32x32xf32>, vector<32x16xf32>, vector<32x16xf32> -> vector<32x16xf32>
    %c0_38 = arith.constant 0 : index
    %c0_39 = arith.constant 0 : index
    %81 = vector.load %arg10[%c0_38, %c0_39] : memref<1x16xf32, #tpu.memory_space<vmem>>, vector<1x16xf32>
    %82 = vector.broadcast %81 : vector<1x16xf32> to vector<32x16xf32>
    %83 = arith.addf %80, %82 : vector<32x16xf32>
    %cst_40 = arith.constant 0.000000e+00 : f32
    %84 = vector.broadcast %cst_40 : f32 to vector<32x16xf32>
    %85 = arith.maximumf %83, %84 : vector<32x16xf32>
    %86 = arith.addf %2, %85 : vector<32x16xf32>
    %cst_41 = arith.constant dense<0.000000e+00> : vector<32xf32>
    %87 = vector.multi_reduction <add>, %86, %cst_41 [1] : vector<32x16xf32> to vector<32xf32>
    %88 = vector.shape_cast %87 : vector<32xf32> to vector<32x1xf32>
    %cst_42 = arith.constant 1.600000e+01 : f32
    %89 = vector.broadcast %cst_42 : f32 to vector<32x1xf32>
    %90 = arith.divf %88, %89 : vector<32x1xf32>
    %91 = vector.broadcast %90 : vector<32x1xf32> to vector<32x16xf32>
    %92 = arith.subf %86, %91 : vector<32x16xf32>
    %93 = arith.mulf %92, %92 : vector<32x16xf32>
    %cst_43 = arith.constant dense<0.000000e+00> : vector<32xf32>
    %94 = vector.multi_reduction <add>, %93, %cst_43 [1] : vector<32x16xf32> to vector<32xf32>
    %95 = vector.shape_cast %94 : vector<32xf32> to vector<32x1xf32>
    %cst_44 = arith.constant 0.0666666701 : f32
    %96 = vector.broadcast %cst_44 : f32 to vector<32x1xf32>
    %97 = arith.mulf %95, %96 : vector<32x1xf32>
    %c0_45 = arith.constant 0 : index
    %c0_46 = arith.constant 0 : index
    %98 = vector.load %arg11[%c0_45, %c0_46] : memref<1x16xf32, #tpu.memory_space<vmem>>, vector<1x16xf32>
    %99 = vector.broadcast %98 : vector<1x16xf32> to vector<32x16xf32>
    %100 = arith.mulf %99, %92 : vector<32x16xf32>
    %101 = math.sqrt %97 : vector<32x1xf32>
    %cst_47 = arith.constant 9.99999997E-7 : f32
    %102 = vector.broadcast %cst_47 : f32 to vector<32x1xf32>
    %103 = arith.addf %101, %102 : vector<32x1xf32>
    %104 = tpu.reciprocal %103 : vector<32x1xf32> -> vector<32x1xf32>
    %105 = vector.broadcast %104 : vector<32x1xf32> to vector<32x16xf32>
    %106 = arith.mulf %100, %105 : vector<32x16xf32>
    %c0_48 = arith.constant 0 : index
    %c0_49 = arith.constant 0 : index
    %107 = vector.load %arg12[%c0_48, %c0_49] : memref<1x16xf32, #tpu.memory_space<vmem>>, vector<1x16xf32>
    %108 = vector.broadcast %107 : vector<1x16xf32> to vector<32x16xf32>
    %109 = arith.addf %106, %108 : vector<32x16xf32>
    %110 = vector.shape_cast %109 : vector<32x16xf32> to vector<4x8x16xf32>
    %c0_50 = arith.constant 0 : index
    %c0_51 = arith.constant 0 : index
    %c0_52 = arith.constant 0 : index
    %111 = vector.load %arg13[%c0_50, %c0_51, %c0_52] : memref<4x8x16xf32, #tpu.memory_space<vmem>>, vector<4x8x16xf32>
    tpu.vector_store %arg13[%c0_50, %c0_51, %c0_52], %110 {strides = array<i32>} : memref<4x8x16xf32, #tpu.memory_space<vmem>>, vector<4x8x16xf32>,
    return
  }
  func.func @transform_0(%arg0: i32) -> (i32, i32, i32) {
    %c0_i32 = arith.constant 0 : i32
    %c0_i32_0 = arith.constant 0 : i32
    %c0_i32_1 = arith.constant 0 : i32
    return %arg0, %c0_i32, %c0_i32_0 : i32, i32, i32
  }
  func.func @transform_1(%arg0: i32) -> (i32, i32, i32) {
    %c0_i32 = arith.constant 0 : i32
    %c0_i32_0 = arith.constant 0 : i32
    %c0_i32_1 = arith.constant 0 : i32
    return %arg0, %c0_i32, %c0_i32_0 : i32, i32, i32
  }
  func.func @transform_2(%arg0: i32) -> (i32, i32) {
    %c0_i32 = arith.constant 0 : i32
    %c0_i32_0 = arith.constant 0 : i32
    %c0_i32_1 = arith.constant 0 : i32
    return %c0_i32, %c0_i32_0 : i32, i32
  }
  func.func @transform_3(%arg0: i32) -> (i32, i32) {
    %c0_i32 = arith.constant 0 : i32
    %c0_i32_0 = arith.constant 0 : i32
    %c0_i32_1 = arith.constant 0 : i32
    return %c0_i32, %c0_i32_0 : i32, i32
  }
  func.func @transform_4(%arg0: i32) -> (i32, i32) {
    %c0_i32 = arith.constant 0 : i32
    %c0_i32_0 = arith.constant 0 : i32
    %c0_i32_1 = arith.constant 0 : i32
    return %c0_i32, %c0_i32_0 : i32, i32
  }
  func.func @transform_5(%arg0: i32) -> (i32, i32) {
    %c0_i32 = arith.constant 0 : i32
    %c0_i32_0 = arith.constant 0 : i32
    %c0_i32_1 = arith.constant 0 : i32
    return %c0_i32, %c0_i32_0 : i32, i32
  }
  func.func @transform_6(%arg0: i32) -> (i32, i32) {
    %c0_i32 = arith.constant 0 : i32
    %c0_i32_0 = arith.constant 0 : i32
    %c0_i32_1 = arith.constant 0 : i32
    return %c0_i32, %c0_i32_0 : i32, i32
  }
  func.func @transform_7(%arg0: i32) -> (i32, i32) {
    %c0_i32 = arith.constant 0 : i32
    %c0_i32_0 = arith.constant 0 : i32
    %c0_i32_1 = arith.constant 0 : i32
    return %c0_i32, %c0_i32_0 : i32, i32
  }
  func.func @transform_8(%arg0: i32) -> (i32, i32) {
    %c0_i32 = arith.constant 0 : i32
    %c0_i32_0 = arith.constant 0 : i32
    %c0_i32_1 = arith.constant 0 : i32
    return %c0_i32, %c0_i32_0 : i32, i32
  }
  func.func @transform_9(%arg0: i32) -> (i32, i32) {
    %c0_i32 = arith.constant 0 : i32
    %c0_i32_0 = arith.constant 0 : i32
    %c0_i32_1 = arith.constant 0 : i32
    return %c0_i32, %c0_i32_0 : i32, i32
  }
  func.func @transform_10(%arg0: i32) -> (i32, i32) {
    %c0_i32 = arith.constant 0 : i32
    %c0_i32_0 = arith.constant 0 : i32
    %c0_i32_1 = arith.constant 0 : i32
    return %c0_i32, %c0_i32_0 : i32, i32
  }
  func.func @transform_11(%arg0: i32) -> (i32, i32) {
    %c0_i32 = arith.constant 0 : i32
    %c0_i32_0 = arith.constant 0 : i32
    %c0_i32_1 = arith.constant 0 : i32
    return %c0_i32, %c0_i32_0 : i32, i32
  }
  func.func @transform_12(%arg0: i32) -> (i32, i32, i32) {
    %c0_i32 = arith.constant 0 : i32
    %c0_i32_0 = arith.constant 0 : i32
    %c0_i32_1 = arith.constant 0 : i32
    return %arg0, %c0_i32, %c0_i32_0 : i32, i32, i32
  }
}

module attributes {stable_mosaic.version = 11 : i64} {
  func.func @_selfattn_kernel(%arg0: i32, %arg1: memref<4x8x16xf32, #tpu.memory_space<vmem>>, %arg2: memref<4x8x16xf32, #tpu.memory_space<vmem>>, %arg3: memref<32x768xf32, #tpu.memory_space<vmem>>, %arg4: memref<1x768xf32, #tpu.memory_space<vmem>>, %arg5: memref<256x64xf32, #tpu.memory_space<vmem>>, %arg6: memref<1x64xf32, #tpu.memory_space<vmem>>, %arg7: memref<64x32xf32, #tpu.memory_space<vmem>>, %arg8: memref<1x32xf32, #tpu.memory_space<vmem>>, %arg9: memref<32x16xf32, #tpu.memory_space<vmem>>, %arg10: memref<1x16xf32, #tpu.memory_space<vmem>>, %arg11: memref<1x16xf32, #tpu.memory_space<vmem>>, %arg12: memref<1x16xf32, #tpu.memory_space<vmem>>, %arg13: memref<4x8x16xf32, #tpu.memory_space<vmem>>) attributes {dimension_semantics = [#tpu.dimension_semantics<parallel>], iteration_bounds = array<i64: 2>, scalar_prefetch = 0 : i64, scratch_operands = 0 : i64, tpu.core_type = #tpu.core_type<tc>, window_params = [{transform_indices = @transform_0, window_bounds = array<i64: 4, 8, 16>}, {transform_indices = @transform_1, window_bounds = array<i64: 4, 8, 16>}, {pipeline_mode = #tpu.pipeline_mode<synchronous>, transform_indices = @transform_2, window_bounds = array<i64: 32, 768>}, {pipeline_mode = #tpu.pipeline_mode<synchronous>, transform_indices = @transform_3, window_bounds = array<i64: 1, 768>}, {pipeline_mode = #tpu.pipeline_mode<synchronous>, transform_indices = @transform_4, window_bounds = array<i64: 256, 64>}, {pipeline_mode = #tpu.pipeline_mode<synchronous>, transform_indices = @transform_5, window_bounds = array<i64: 1, 64>}, {pipeline_mode = #tpu.pipeline_mode<synchronous>, transform_indices = @transform_6, window_bounds = array<i64: 64, 32>}, {pipeline_mode = #tpu.pipeline_mode<synchronous>, transform_indices = @transform_7, window_bounds = array<i64: 1, 32>}, {pipeline_mode = #tpu.pipeline_mode<synchronous>, transform_indices = @transform_8, window_bounds = array<i64: 32, 16>}, {pipeline_mode = #tpu.pipeline_mode<synchronous>, transform_indices = @transform_9, window_bounds = array<i64: 1, 16>}, {pipeline_mode = #tpu.pipeline_mode<synchronous>, transform_indices = @transform_10, window_bounds = array<i64: 1, 16>}, {pipeline_mode = #tpu.pipeline_mode<synchronous>, transform_indices = @transform_11, window_bounds = array<i64: 1, 16>}, {transform_indices = @transform_12, window_bounds = array<i64: 4, 8, 16>}]} {
    %c0 = arith.constant 0 : index
    %c0_0 = arith.constant 0 : index
    %c0_1 = arith.constant 0 : index
    %0 = vector.load %arg1[%c0, %c0_0, %c0_1] : memref<4x8x16xf32, #tpu.memory_space<vmem>>, vector<4x8x16xf32>
    %c0_2 = arith.constant 0 : index
    %c0_3 = arith.constant 0 : index
    %c0_4 = arith.constant 0 : index
    %1 = vector.load %arg2[%c0_2, %c0_3, %c0_4] : memref<4x8x16xf32, #tpu.memory_space<vmem>>, vector<4x8x16xf32>
    %2 = vector.shape_cast %0 : vector<4x8x16xf32> to vector<32x16xf32>
    %3 = vector.shape_cast %1 : vector<4x8x16xf32> to vector<32x16xf32>
    %4 = tpu.concatenate %2, %3 in 1 : vector<32x16xf32>, vector<32x16xf32> -> vector<32x32xf32>
    %c0_5 = arith.constant 0 : index
    %c0_6 = arith.constant 0 : index
    %5 = vector.load %arg3[%c0_5, %c0_6] : memref<32x768xf32, #tpu.memory_space<vmem>>, vector<32x768xf32>
    %cst = arith.constant dense<0.000000e+00> : vector<32x768xf32>
    %6 = tpu.matmul %4, %5, %cst {dimension_numbers = #tpu.dot_dimension_numbers<[1], [0], [0], [1], [0, 0, 1, 1], [], []>} : vector<32x32xf32>, vector<32x768xf32>, vector<32x768xf32> -> vector<32x768xf32>
    %c0_7 = arith.constant 0 : index
    %c0_8 = arith.constant 0 : index
    %7 = vector.load %arg4[%c0_7, %c0_8] : memref<1x768xf32, #tpu.memory_space<vmem>>, vector<1x768xf32>
    %8 = vector.broadcast %7 : vector<1x768xf32> to vector<32x768xf32>
    %9 = arith.addf %6, %8 : vector<32x768xf32>
    %10 = vector.shape_cast %9 : vector<32x768xf32> to vector<4x8x768xf32>
    %11 = vector.extract_strided_slice %10 {offsets = [0, 0, 0], sizes = [4, 8, 128], strides = [1, 1, 1]} : vector<4x8x768xf32> to vector<4x8x128xf32>
    %12 = vector.extract_strided_slice %10 {offsets = [0, 0, 256], sizes = [4, 8, 128], strides = [1, 1, 1]} : vector<4x8x768xf32> to vector<4x8x128xf32>
    %13 = vector.extract_strided_slice %10 {offsets = [0, 0, 512], sizes = [4, 8, 128], strides = [1, 1, 1]} : vector<4x8x768xf32> to vector<4x8x128xf32>
    "tpu.trace_start"() <{level = 10 : i32, message = "bqd,bkd->bqk"}> : () -> ()
    %cst_9 = arith.constant dense<0.000000e+00> : vector<4x8x8xf32>
    %14 = tpu.matmul %11, %12, %cst_9 {dimension_numbers = #tpu.dot_dimension_numbers<[2], [2], [1], [1], [0, 0, 0, 1, 1, 1], [0], [0]>} : vector<4x8x128xf32>, vector<4x8x128xf32>, vector<4x8x8xf32> -> vector<4x8x8xf32>
    "tpu.trace_stop"() : () -> ()
    %cst_10 = arith.constant 0.176776692 : f32
    %15 = vector.broadcast %cst_10 : f32 to vector<4x8x8xf32>
    %16 = arith.mulf %14, %15 : vector<4x8x8xf32>
    %cst_11 = arith.constant dense<0xFF800000> : vector<4x8xf32>
    %17 = vector.multi_reduction <maximumf>, %16, %cst_11 [2] : vector<4x8x8xf32> to vector<4x8xf32>
    %18 = vector.shape_cast %17 : vector<4x8xf32> to vector<4x8x1xf32>
    %19 = vector.broadcast %18 : vector<4x8x1xf32> to vector<4x8x8xf32>
    %20 = arith.subf %16, %19 : vector<4x8x8xf32>
    %21 = math.exp %20 : vector<4x8x8xf32>
    %cst_12 = arith.constant dense<0.000000e+00> : vector<4x8xf32>
    %22 = vector.multi_reduction <add>, %21, %cst_12 [2] : vector<4x8x8xf32> to vector<4x8xf32>
    %23 = vector.shape_cast %22 : vector<4x8xf32> to vector<4x8x1xf32>
    %24 = tpu.reciprocal %23 : vector<4x8x1xf32> -> vector<4x8x1xf32>
    %25 = vector.broadcast %24 : vector<4x8x1xf32> to vector<4x8x8xf32>
    %26 = arith.mulf %21, %25 : vector<4x8x8xf32>
    "tpu.trace_start"() <{level = 10 : i32, message = "bqk,bkd->bqd"}> : () -> ()
    %cst_13 = arith.constant dense<0.000000e+00> : vector<4x8x128xf32>
    %27 = tpu.matmul %26, %13, %cst_13 {dimension_numbers = #tpu.dot_dimension_numbers<[2], [1], [1], [2], [0, 0, 0, 1, 1, 2], [0], [0]>} : vector<4x8x8xf32>, vector<4x8x128xf32>, vector<4x8x128xf32> -> vector<4x8x128xf32>
    "tpu.trace_stop"() : () -> ()
    %28 = vector.shape_cast %27 : vector<4x8x128xf32> to vector<32x128xf32>
    %29 = vector.extract_strided_slice %10 {offsets = [0, 0, 128], sizes = [4, 8, 128], strides = [1, 1, 1]} : vector<4x8x768xf32> to vector<4x8x128xf32>
    %30 = vector.extract_strided_slice %10 {offsets = [0, 0, 384], sizes = [4, 8, 128], strides = [1, 1, 1]} : vector<4x8x768xf32> to vector<4x8x128xf32>
    %31 = vector.extract_strided_slice %10 {offsets = [0, 0, 640], sizes = [4, 8, 128], strides = [1, 1, 1]} : vector<4x8x768xf32> to vector<4x8x128xf32>
    "tpu.trace_start"() <{level = 10 : i32, message = "bqd,bkd->bqk"}> : () -> ()
    %cst_14 = arith.constant dense<0.000000e+00> : vector<4x8x8xf32>
    %32 = tpu.matmul %29, %30, %cst_14 {dimension_numbers = #tpu.dot_dimension_numbers<[2], [2], [1], [1], [0, 0, 0, 1, 1, 1], [0], [0]>} : vector<4x8x128xf32>, vector<4x8x128xf32>, vector<4x8x8xf32> -> vector<4x8x8xf32>
    "tpu.trace_stop"() : () -> ()
    %cst_15 = arith.constant 0.176776692 : f32
    %33 = vector.broadcast %cst_15 : f32 to vector<4x8x8xf32>
    %34 = arith.mulf %32, %33 : vector<4x8x8xf32>
    %cst_16 = arith.constant dense<0xFF800000> : vector<4x8xf32>
    %35 = vector.multi_reduction <maximumf>, %34, %cst_16 [2] : vector<4x8x8xf32> to vector<4x8xf32>
    %36 = vector.shape_cast %35 : vector<4x8xf32> to vector<4x8x1xf32>
    %37 = vector.broadcast %36 : vector<4x8x1xf32> to vector<4x8x8xf32>
    %38 = arith.subf %34, %37 : vector<4x8x8xf32>
    %39 = math.exp %38 : vector<4x8x8xf32>
    %cst_17 = arith.constant dense<0.000000e+00> : vector<4x8xf32>
    %40 = vector.multi_reduction <add>, %39, %cst_17 [2] : vector<4x8x8xf32> to vector<4x8xf32>
    %41 = vector.shape_cast %40 : vector<4x8xf32> to vector<4x8x1xf32>
    %42 = tpu.reciprocal %41 : vector<4x8x1xf32> -> vector<4x8x1xf32>
    %43 = vector.broadcast %42 : vector<4x8x1xf32> to vector<4x8x8xf32>
    %44 = arith.mulf %39, %43 : vector<4x8x8xf32>
    "tpu.trace_start"() <{level = 10 : i32, message = "bqk,bkd->bqd"}> : () -> ()
    %cst_18 = arith.constant dense<0.000000e+00> : vector<4x8x128xf32>
    %45 = tpu.matmul %44, %31, %cst_18 {dimension_numbers = #tpu.dot_dimension_numbers<[2], [1], [1], [2], [0, 0, 0, 1, 1, 2], [0], [0]>} : vector<4x8x8xf32>, vector<4x8x128xf32>, vector<4x8x128xf32> -> vector<4x8x128xf32>
    "tpu.trace_stop"() : () -> ()
    %46 = vector.shape_cast %45 : vector<4x8x128xf32> to vector<32x128xf32>
    %47 = tpu.concatenate %28, %46 in 1 : vector<32x128xf32>, vector<32x128xf32> -> vector<32x256xf32>
    %c0_19 = arith.constant 0 : index
    %c0_20 = arith.constant 0 : index
    %48 = vector.load %arg5[%c0_19, %c0_20] : memref<256x64xf32, #tpu.memory_space<vmem>>, vector<256x64xf32>
    %cst_21 = arith.constant dense<0.000000e+00> : vector<32x64xf32>
    %49 = tpu.matmul %47, %48, %cst_21 {dimension_numbers = #tpu.dot_dimension_numbers<[1], [0], [0], [1], [0, 0, 1, 1], [], []>} : vector<32x256xf32>, vector<256x64xf32>, vector<32x64xf32> -> vector<32x64xf32>
    %c0_22 = arith.constant 0 : index
    %c0_23 = arith.constant 0 : index
    %50 = vector.load %arg6[%c0_22, %c0_23] : memref<1x64xf32, #tpu.memory_space<vmem>>, vector<1x64xf32>
    %51 = vector.broadcast %50 : vector<1x64xf32> to vector<32x64xf32>
    %52 = arith.addf %49, %51 : vector<32x64xf32>
    %53 = tpu.concatenate %4, %4 in 1 : vector<32x32xf32>, vector<32x32xf32> -> vector<32x64xf32>
    %54 = arith.addf %53, %52 : vector<32x64xf32>
    %cst_24 = arith.constant dense<0.000000e+00> : vector<32xf32>
    %55 = vector.multi_reduction <add>, %54, %cst_24 [1] : vector<32x64xf32> to vector<32xf32>
    %56 = vector.shape_cast %55 : vector<32xf32> to vector<32x1xf32>
    %cst_25 = arith.constant 6.400000e+01 : f32
    %57 = vector.broadcast %cst_25 : f32 to vector<32x1xf32>
    %58 = arith.divf %56, %57 : vector<32x1xf32>
    %59 = vector.broadcast %58 : vector<32x1xf32> to vector<32x64xf32>
    %60 = arith.subf %54, %59 : vector<32x64xf32>
    %61 = arith.mulf %60, %60 : vector<32x64xf32>
    %cst_26 = arith.constant dense<0.000000e+00> : vector<32xf32>
    %62 = vector.multi_reduction <add>, %61, %cst_26 [1] : vector<32x64xf32> to vector<32xf32>
    %63 = vector.shape_cast %62 : vector<32xf32> to vector<32x1xf32>
    %cst_27 = arith.constant 0.0158730168 : f32
    %64 = vector.broadcast %cst_27 : f32 to vector<32x1xf32>
    %65 = arith.mulf %63, %64 : vector<32x1xf32>
    %66 = math.sqrt %65 : vector<32x1xf32>
    %cst_28 = arith.constant 9.99999997E-7 : f32
    %67 = vector.broadcast %cst_28 : f32 to vector<32x1xf32>
    %68 = arith.addf %66, %67 : vector<32x1xf32>
    %69 = tpu.reciprocal %68 : vector<32x1xf32> -> vector<32x1xf32>
    %70 = vector.broadcast %69 : vector<32x1xf32> to vector<32x64xf32>
    %71 = arith.mulf %60, %70 : vector<32x64xf32>
    %c0_29 = arith.constant 0 : index
    %c0_30 = arith.constant 0 : index
    %72 = vector.load %arg7[%c0_29, %c0_30] : memref<64x32xf32, #tpu.memory_space<vmem>>, vector<64x32xf32>
    %cst_31 = arith.constant dense<0.000000e+00> : vector<32x32xf32>
    %73 = tpu.matmul %71, %72, %cst_31 {dimension_numbers = #tpu.dot_dimension_numbers<[1], [0], [0], [1], [0, 0, 1, 1], [], []>} : vector<32x64xf32>, vector<64x32xf32>, vector<32x32xf32> -> vector<32x32xf32>
    %c0_32 = arith.constant 0 : index
    %c0_33 = arith.constant 0 : index
    %74 = vector.load %arg8[%c0_32, %c0_33] : memref<1x32xf32, #tpu.memory_space<vmem>>, vector<1x32xf32>
    %75 = vector.broadcast %74 : vector<1x32xf32> to vector<32x32xf32>
    %76 = arith.addf %73, %75 : vector<32x32xf32>
    %cst_34 = arith.constant 0.000000e+00 : f32
    %77 = vector.broadcast %cst_34 : f32 to vector<32x32xf32>
    %78 = arith.maximumf %76, %77 : vector<32x32xf32>
    %c0_35 = arith.constant 0 : index
    %c0_36 = arith.constant 0 : index
    %79 = vector.load %arg9[%c0_35, %c0_36] : memref<32x16xf32, #tpu.memory_space<vmem>>, vector<32x16xf32>
    %cst_37 = arith.constant dense<0.000000e+00> : vector<32x16xf32>
    %80 = tpu.matmul %78, %79, %cst_37 {dimension_numbers = #tpu.dot_dimension_numbers<[1], [0], [0], [1], [0, 0, 1, 1], [], []>} : vector<32x32xf32>, vector<32x16xf32>, vector<32x16xf32> -> vector<32x16xf32>
    %c0_38 = arith.constant 0 : index
    %c0_39 = arith.constant 0 : index
    %81 = vector.load %arg10[%c0_38, %c0_39] : memref<1x16xf32, #tpu.memory_space<vmem>>, vector<1x16xf32>
    %82 = vector.broadcast %81 : vector<1x16xf32> to vector<32x16xf32>
    %83 = arith.addf %80, %82 : vector<32x16xf32>
    %cst_40 = arith.constant 0.000000e+00 : f32
    %84 = vector.broadcast %cst_40 : f32 to vector<32x16xf32>
    %85 = arith.maximumf %83, %84 : vector<32x16xf32>
    %86 = arith.addf %2, %85 : vector<32x16xf32>
    %cst_41 = arith.constant dense<0.000000e+00> : vector<32xf32>
    %87 = vector.multi_reduction <add>, %86, %cst_41 [1] : vector<32x16xf32> to vector<32xf32>
    %88 = vector.shape_cast %87 : vector<32xf32> to vector<32x1xf32>
    %cst_42 = arith.constant 1.600000e+01 : f32
    %89 = vector.broadcast %cst_42 : f32 to vector<32x1xf32>
    %90 = arith.divf %88, %89 : vector<32x1xf32>
    %91 = vector.broadcast %90 : vector<32x1xf32> to vector<32x16xf32>
    %92 = arith.subf %86, %91 : vector<32x16xf32>
    %93 = arith.mulf %92, %92 : vector<32x16xf32>
    %cst_43 = arith.constant dense<0.000000e+00> : vector<32xf32>
    %94 = vector.multi_reduction <add>, %93, %cst_43 [1] : vector<32x16xf32> to vector<32xf32>
    %95 = vector.shape_cast %94 : vector<32xf32> to vector<32x1xf32>
    %cst_44 = arith.constant 0.0666666701 : f32
    %96 = vector.broadcast %cst_44 : f32 to vector<32x1xf32>
    %97 = arith.mulf %95, %96 : vector<32x1xf32>
    %c0_45 = arith.constant 0 : index
    %c0_46 = arith.constant 0 : index
    %98 = vector.load %arg11[%c0_45, %c0_46] : memref<1x16xf32, #tpu.memory_space<vmem>>, vector<1x16xf32>
    %99 = vector.broadcast %98 : vector<1x16xf32> to vector<32x16xf32>
    %100 = arith.mulf %99, %92 : vector<32x16xf32>
    %101 = math.sqrt %97 : vector<32x1xf32>
    %cst_47 = arith.constant 9.99999997E-7 : f32
    %102 = vector.broadcast %cst_47 : f32 to vector<32x1xf32>
    %103 = arith.addf %101, %102 : vector<32x1xf32>
    %104 = tpu.reciprocal %103 : vector<32x1xf32> -> vector<32x1xf32>
    %105 = vector.broadcast %104 : vector<32x1xf32> to vector<32x16xf32>
    %106 = arith.mulf %100, %105 : vector<32x16xf32>
    %c0_48 = arith.constant 0 : index
    %c0_49 = arith.constant 0 : index
    %107 = vector.load %arg12[%c0_48, %c0_49] : memref<1x16xf32, #tpu.memory_space<vmem>>, vector<1x16xf32>
    %108 = vector.broadcast %107 : vector<1x16xf32> to vector<32x16xf32>
    %109 = arith.addf %106, %108 : vector<32x16xf32>
    %110 = vector.shape_cast %109 : vector<32x16xf32> to vector<4x8x16xf32>
    %c0_50 = arith.constant 0 : index
    %c0_51 = arith.constant 0 : index
    %c0_52 = arith.constant 0 : index
    %111 = vector.load %arg13[%c0_50, %c0_51, %c0_52] : memref<4x8x16xf32, #tpu.memory_space<vmem>>, vector<4x8x16xf32>
    tpu.vector_store %arg13[%c0_50, %c0_51, %c0_52], %110 {strides = array<i32>} : memref<4x8x16xf32, #tpu.memory_space<vmem>>, vector<4x8x16xf32>,
    return
  }
  func.func @transform_0(%arg0: i32) -> (i32, i32, i32) {
    %c0_i32 = arith.constant 0 : i32
    %c0_i32_0 = arith.constant 0 : i32
    %c0_i32_1 = arith.constant 0 : i32
    return %arg0, %c0_i32, %c0_i32_0 : i32, i32, i32
  }
  func.func @transform_1(%arg0: i32) -> (i32, i32, i32) {
    %c0_i32 = arith.constant 0 : i32
    %c0_i32_0 = arith.constant 0 : i32
    %c0_i32_1 = arith.constant 0 : i32
    return %arg0, %c0_i32, %c0_i32_0 : i32, i32, i32
  }
  func.func @transform_2(%arg0: i32) -> (i32, i32) {
    %c0_i32 = arith.constant 0 : i32
    %c0_i32_0 = arith.constant 0 : i32
    %c0_i32_1 = arith.constant 0 : i32
    return %c0_i32, %c0_i32_0 : i32, i32
  }
  func.func @transform_3(%arg0: i32) -> (i32, i32) {
    %c0_i32 = arith.constant 0 : i32
    %c0_i32_0 = arith.constant 0 : i32
    %c0_i32_1 = arith.constant 0 : i32
    return %c0_i32, %c0_i32_0 : i32, i32
  }
  func.func @transform_4(%arg0: i32) -> (i32, i32) {
    %c0_i32 = arith.constant 0 : i32
    %c0_i32_0 = arith.constant 0 : i32
    %c0_i32_1 = arith.constant 0 : i32
    return %c0_i32, %c0_i32_0 : i32, i32
  }
  func.func @transform_5(%arg0: i32) -> (i32, i32) {
    %c0_i32 = arith.constant 0 : i32
    %c0_i32_0 = arith.constant 0 : i32
    %c0_i32_1 = arith.constant 0 : i32
    return %c0_i32, %c0_i32_0 : i32, i32
  }
  func.func @transform_6(%arg0: i32) -> (i32, i32) {
    %c0_i32 = arith.constant 0 : i32
    %c0_i32_0 = arith.constant 0 : i32
    %c0_i32_1 = arith.constant 0 : i32
    return %c0_i32, %c0_i32_0 : i32, i32
  }
  func.func @transform_7(%arg0: i32) -> (i32, i32) {
    %c0_i32 = arith.constant 0 : i32
    %c0_i32_0 = arith.constant 0 : i32
    %c0_i32_1 = arith.constant 0 : i32
    return %c0_i32, %c0_i32_0 : i32, i32
  }
  func.func @transform_8(%arg0: i32) -> (i32, i32) {
    %c0_i32 = arith.constant 0 : i32
    %c0_i32_0 = arith.constant 0 : i32
    %c0_i32_1 = arith.constant 0 : i32
    return %c0_i32, %c0_i32_0 : i32, i32
  }
  func.func @transform_9(%arg0: i32) -> (i32, i32) {
    %c0_i32 = arith.constant 0 : i32
    %c0_i32_0 = arith.constant 0 : i32
    %c0_i32_1 = arith.constant 0 : i32
    return %c0_i32, %c0_i32_0 : i32, i32
  }
  func.func @transform_10(%arg0: i32) -> (i32, i32) {
    %c0_i32 = arith.constant 0 : i32
    %c0_i32_0 = arith.constant 0 : i32
    %c0_i32_1 = arith.constant 0 : i32
    return %c0_i32, %c0_i32_0 : i32, i32
  }
  func.func @transform_11(%arg0: i32) -> (i32, i32) {
    %c0_i32 = arith.constant 0 : i32
    %c0_i32_0 = arith.constant 0 : i32
    %c0_i32_1 = arith.constant 0 : i32
    return %c0_i32, %c0_i32_0 : i32, i32
  }
  func.func @transform_12(%arg0: i32) -> (i32, i32, i32) {
    %c0_i32 = arith.constant 0 : i32
    %c0_i32_0 = arith.constant 0 : i32
    %c0_i32_1 = arith.constant 0 : i32
    return %arg0, %c0_i32, %c0_i32_0 : i32, i32, i32
  }
}

</mosaic_0001>

<bundles_post_ra>
// kernel: tpu_custom_call.1
= control target key start
LH: loop header
LB: loop body
LE: loop exit
PB: predicated region body
PF: predicated region fallthrough
CT: control target
= control target key end

     0   :  { %s3909_s0 = inlined_call_operand.vmem [shape: f32[8,8,16], index: 0, kind: input, shape index: {}]   ;;  %s3910_s1 = inlined_call_operand.vmem [shape: f32[8,8,16], index: 1, kind: input, shape index: {}]   ;;  %s3911_s2 = inlined_call_operand.vmem [shape: f32[32,768], index: 2, kind: input, shape index: {}]   ;;  %s3912_s3 = inlined_call_operand.vmem [shape: f32[1,768], index: 3, kind: input, shape index: {}]   ;;  %s3913_s4 = inlined_call_operand.vmem [shape: f32[256,64], index: 4, kind: input, shape index: {}]   ;;  %s3914_s5 = inlined_call_operand.vmem [shape: f32[1,64], index: 5, kind: input, shape index: {}]   ;;  %s3915_s6 = inlined_call_operand.vmem [shape: f32[64,32], index: 6, kind: input, shape index: {}]   ;;  %s3916_s7 = inlined_call_operand.vmem [shape: f32[1,32], index: 7, kind: input, shape index: {}]   ;;  %s3917_s8 = inlined_call_operand.vmem [shape: f32[32,16], index: 8, kind: input, shape index: {}]   ;;  %s3918_s9 = inlined_call_operand.vmem [shape: f32[1,16], index: 9, kind: input, shape index: {}]   ;;  %s3919_s10 = inlined_call_operand.vmem [shape: f32[1,16], index: 10, kind: input, shape index: {}]   ;;  %s3920_s11 = inlined_call_operand.vmem [shape: f32[1,16], index: 11, kind: input, shape index: {}]   ;;  %s3921_s12 = inlined_call_operand.hbm [shape: f32[8,8,16], index: 12, kind: output, shape index: {}]  }
   0x1   :  { %3923 = sst [smem:[#allocation7_spill]] %s3909_s0 }
   0x2   :  { %3924 = sst [smem:[#allocation8_spill]] %s3910_s1 }
   0x3   :  { %17 = vsyncpa [#allocation3], 0 }
   0x4   :  { %19 = vsyncpa [#allocation3 + $0x1], 0  ;;  %s3289_s21 = smov 0   ;;  %s3291_s22 = smov 0  }
   0x5   :  { %s3293_s23 = smov 0   ;;  %s3295_s24 = smov 0  }
   0x6 LB: > { %3925 = sst [smem:[#allocation5_spill]] %s3211_s23  ;;  %s3310_s25 = sadd.s32 4294967295, %s3215_s24   ;;  %s3215_s24 = sphi %s3295_s24, %s3935_s24   ;;  %s3211_s23 = sphi %s3293_s23, %s3932_s23   ;;  %s3207_s22 = sphi %s3291_s22, %s3934_s22   ;;  %s3203_s21 = sphi %s3289_s21, %s3933_s21  }
   0x7   : > { %s2696_s26 = sadd.s32 4294967294, %s3215_s24   ;;  %s3314_s27 = sadd.s32 1, %s3215_s24  }
   0x8   : > { %s294_s28 = sadd.s32 1, %s3211_s23  ;;  %s291_s29 = ssub.s32 %s3215_s24, %s3314_s27 }
   0x9   : > { %p304_p0 = scmp.ne.s32.totalorder %s3211_s23, %s3207_s22  ;;  %p292_p1 = scmp.eq.s32.totalorder %s291_s29, 0 }
   0xa   : > { %p305_p2 = scmp.eq.s32.totalorder %s3310_s25, 1  ;;  %p310_p3 = scmp.ne.s32.totalorder %s3207_s22, %s3203_s21 }
   0xb   : > { %p311_p4 = scmp.eq.s32.totalorder %s2696_s26, 1  ;;  %p2699_p7 = scmp.ge.s32.totalorder %s3215_s24, 1 }
   0xc   : > { %s3325_s30 = scalar_select %p292_p1, %s3211_s23, %s294_s28  }
   0xd   : > { %p3327_p5 = por %p305_p2, %p304_p0  ;;  %p3331_p6 = por %p311_p4, %p310_p3 }
   0xe   : > { %3926 = sst [smem:[#allocation6_spill]] %s3325_s30  ;;  %p377_p8 = scmp.lt.s32.totalorder %s3215_s24, 3 }
  0x10   : > { %p378_p9 = pnand %p2699_p7, %p377_p8 }
  0x11   : > { %s2701_s15 = sshll.u32 (!%p378_p9), %s3310_s25, 2  ;;  %v467_v0 = vld [vmem:[%s3911_s2 + $0x8] sm:$0xff] (!%p378_p9)  ;;  %v473_v1 = vld [vmem:[%s3911_s2 + $0x38] sm:$0xff] (!%p378_p9)  ;;  %v466_v2 = vld [vmem:[%s3911_s2] sm:$0xff] (!%p378_p9)  ;;  %v3217_v11 = vmov (!%p378_p9), 0.0   ;;  %s3929_s1 = sld [smem:[#allocation8_spill]] (!%p378_p9)  ;;  %v492_v53 = vlaneseq (!%p378_p9) }
  0x12   : > { %381 = sbr.rel (%p378_p9) target bundleno = 2985 (0xba9), region = 68  ;;  %p425_p10 = scmp.lt.s32.totalorder (!%p378_p9), %s2701_s15, 7  ;;  %v2956_v3 = vpack.c.bf16 (!%p378_p9), %v473_v1, %v467_v0  ;;  %v472_v4 = vld [vmem:[%s3911_s2 + $0x30] sm:$0xff] (!%p378_p9)  ;;  %v479_v5 = vld [vmem:[%s3911_s2 + $0x68] sm:$0xff] (!%p378_p9)  ;;  %v485_v6 = vld [vmem:[%s3911_s2 + $0x98] sm:$0xff] (!%p378_p9)  ;;  %599 = vmatprep.mubr.f32.mxu0 (!%p378_p9), %v3217_v11  ;;  %611 = vmatprep.mubr.f32.mxu1 (!%p378_p9), %v3217_v11  ;;  %vm461_vm0 = vcmask (!%p378_p9), 130048  }
  0x13   : > { %v2958_v7 = vpack.c.bf16 (!%p378_p9), %v472_v4, %v466_v2  ;;  %v2960_v8 = vpack.c.bf16 (!%p378_p9), %v485_v6, %v479_v5  ;;  %v478_v9 = vld [vmem:[%s3911_s2 + $0x60] sm:$0xff] (!%p378_p9)  ;;  %v484_v10 = vld [vmem:[%s3911_s2 + $0x90] sm:$0xff] (!%p378_p9)  ;;  %v469_v12 = vld [vmem:[%s3911_s2 + $0x18] sm:$0xff] (!%p378_p9)  ;;  %s3218_s28 = smov (!%p378_p9), 16   ;;  %s3930_s0 = sld [smem:[#allocation7_spill]] (!%p378_p9)  ;;  %vm522_vm1 = vcmask (!%p378_p9), 261120  }
  0x14   : > { %2957 = vmatprep.subr.bf16.mxu0 (!%p378_p9), %v2956_v3  ;;  %3036 = vmatprep.subr.bf16.mxu1 (!%p378_p9), %v2956_v3  ;;  %v475_v13 = vld [vmem:[%s3911_s2 + $0x48] sm:$0xff] (!%p378_p9)  ;;  %v477_v15 = vld [vmem:[%s3911_s2 + $0x58] sm:$0xff] (!%p378_p9)  ;;  %v2962_v16 = vpack.c.bf16 (!%p378_p9), %v484_v10, %v478_v9  ;;  %v468_v23 = vld [vmem:[%s3911_s2 + $0x10] sm:$0xff] (!%p378_p9)  ;;  %vm3219_vm2 = vmmov (!%p378_p9), 0   ;;  %v3479_v54 = vshrl.u32 (!%p378_p9), %v492_v53, 7  ;;  %vm1086_vm3 = vcmask (!%p378_p9), 64512  }
  0x15   : > { %v471_v14 = vld [vmem:[%s3911_s2 + $0x28] sm:$0xff] (!%p378_p9)  ;;  %2959 = vmatpush1.bf16.msra.mxu0 (!%p378_p9), %v2958_v7  ;;  %3038 = vmatpush1.bf16.msra.mxu1 (!%p378_p9), %v2958_v7  ;;  %v2964_v17 = vpack.c.bf16 (!%p378_p9), %v475_v13, %v469_v12  ;;  %v474_v24 = vld [vmem:[%s3911_s2 + $0x40] sm:$0xff] (!%p378_p9)  ;;  %v476_v26 = vld [vmem:[%s3911_s2 + $0x50] sm:$0xff] (!%p378_p9)  ;;  %s3220_s19 = smov (!%p378_p9), 32   ;;  %vm2187_vm4 = vcmask (!%p378_p9), 523264  }
  0x16   : > { %2961 = vmatprep.subr.bf16.mxu0 (!%p378_p9), %v2960_v8  ;;  %3037 = vmatprep.subr.bf16.mxu1 (!%p378_p9), %v2960_v8  ;;  %v2972_v18 = vpack.c.bf16 (!%p378_p9), %v477_v15, %v471_v14  ;;  %v470_v25 = vld [vmem:[%s3911_s2 + $0x20] sm:$0xff] (!%p378_p9)  ;;  %v481_v27 = vld [vmem:[%s3911_s2 + $0x78] sm:$0xff] (!%p378_p9)  ;;  %v487_v28 = vld [vmem:[%s3911_s2 + $0xa8] sm:$0xff] (!%p378_p9)  ;;  %v2966_v33 = vpack.c.bf16 (!%p378_p9), %v474_v24, %v468_v23  ;;  %v502_v59 = vsub.s32 (!%p378_p9), 2, %v3479_v54  ;;  %v510_v60 = vsub.s32 (!%p378_p9), 4, %v3479_v54 }
  0x17   : > { %v483_v29 = vld [vmem:[%s3911_s2 + $0x88] sm:$0xff] (!%p378_p9)  ;;  %v489_v32 = vld [vmem:[%s3911_s2 + $0xb8] sm:$0xff] (!%p378_p9)  ;;  %v2974_v34 = vpack.c.bf16 (!%p378_p9), %v476_v26, %v470_v25  ;;  %v480_v35 = vld [vmem:[%s3911_s2 + $0x70] sm:$0xff] (!%p378_p9)  ;;  %v2968_v43 = vpack.c.bf16 (!%p378_p9), %v487_v28, %v481_v27  ;;  %v494_v4 = vsub.s32 (!%p378_p9), 0, %v3479_v54  ;;  %v514_v14 = vsub.s32 (!%p378_p9), 5, %v3479_v54 }
  0x18   : > { %v486_v38 = vld [vmem:[%s3911_s2 + $0xa0] sm:$0xff] (!%p378_p9)  ;;  %v488_v40 = vld [vmem:[%s3911_s2 + $0xb0] sm:$0xff] (!%p378_p9)  ;;  %v2976_v44 = vpack.c.bf16 (!%p378_p9), %v489_v32, %v483_v29 }
  0x19   : > { %s3937_s15 = smov (!%p425_p10, %s2701_s15), 7  ;;  %2963 = vmatpush1.bf16.msra.mxu0 %v2962_v16  ;;  %3039 = vmatpush1.bf16.msra.mxu1 %v2962_v16  ;;  %v482_v39 = vld [vmem:[%s3911_s2 + $0x80] sm:$0xff]  ;;  %v2970_v47 = vpack.c.bf16 %v486_v38, %v480_v35 }
  0x1a   : > { %s2702_s20 = sshll.u32 %s3937_s15, 3  ;;  %2965 = vmatprep.subr.bf16.mxu1 %v2964_v17  ;;  %2973 = vmatprep.subr.bf16.mxu0 %v2972_v18  ;;  %v2978_v48 = vpack.c.bf16 %v488_v40, %v482_v39  ;;  %v3490_v61 = vld [vmem:[%s3912_s3] sm:$0x3f] }
  0x1b   : > { %s434_s30 = scalar_lea.vmem %s3929_s1, %s2702_s20  ;;  %s3385_s16 = scalar_lea.vmem %s3930_s0, %s2702_s20  ;;  %v503_v2 = vrot.slane %v3490_v61, %v502_v59  ;;  %v511_v3 = vrot.slane %v3490_v61, %v510_v60  ;;  %v495_v12 = vrot.slane %v3490_v61, %v494_v4 }
  0x1c   : > { %v443_v19 = vld [vmem:[%s434_s30 + $0x10] sm:$0xff]  ;;  %v441_v20 = vld [vmem:[%s434_s30] sm:$0xff]  ;;  %v444_v21 = vld [vmem:[%s434_s30 + $0x18] sm:$0xff] }
  0x1d   : > { %453 = vrot.lane.b32.xlu0 %v443_v19, %s3218_s28  ;;  %449 = vrot.lane.b32.xlu1 %v441_v20, %s3218_s28  ;;  %v442_v22 = vld [vmem:[%s434_s30 + $0x8] sm:$0xff]  ;;  %v439_v30 = vld [vmem:[%s3385_s16 + $0x10] sm:$0xff]  ;;  %s2743_s30 = sshll.u32 %s3310_s25, 9 }
  0x1e   : > { %v437_v31 = vld [vmem:[%s3385_s16] sm:$0xff]  ;;  %v440_v45 = vld [vmem:[%s3385_s16 + $0x18] sm:$0xff]  ;;  %v438_v46 = vld [vmem:[%s3385_s16 + $0x8] sm:$0xff]  ;;  %s3860_s29 = scalar_lea.hbm %s3921_s12, %s2743_s30 }
  0x21   : > { %455 = vrot.lane.b32.xlu0 %v444_v21, %s3218_s28  ;;  %451 = vrot.lane.b32.xlu1 %v442_v22, %s3218_s28  ;;  %v3514_v21 = vrot.slane %v3490_v61, %v514_v14 }
  0x8f   : > { %v454_v36 = vpop.permute.xlu0 %453  ;;  %v450_v37 = vpop.permute.xlu1 %449 }
  0x90   : > { %v3426_v41 = vsel %vm461_vm0, %v439_v30, %v454_v36  ;;  %v3429_v42 = vsel %vm461_vm0, %v437_v31, %v450_v37 }
  0x91   : > { %2705 = vmatmul.mubr.msk.f32.vlgmr.msra.gmra.mrb[0].mxu0 %vm522_vm1, %v3429_v42  ;;  %2707 = vmatmul.mubr.msk.f32.vlgmr.msra.gmra.mrb[0].mxu1 %vm522_vm1, %v3426_v41 }
  0x92   : > { %2967 = vmatpush1.bf16.msra.mxu1 %v2966_v33  ;;  %2975 = vmatpush1.bf16.msra.mxu0 %v2974_v34 }
  0x93   : > { %v456_v49 = vpop.permute.xlu0 %455  ;;  %v452_v50 = vpop.permute.xlu1 %451  ;;  %605 = vmatprep.mubr.f32.mxu0 %v3217_v11  ;;  %617 = vmatprep.mubr.f32.mxu1 %v3217_v11 }
  0x94   : > { %v3440_v51 = vsel %vm461_vm0, %v440_v45, %v456_v49  ;;  %v3443_v52 = vsel %vm461_vm0, %v438_v46, %v452_v50  ;;  %2969 = vmatprep.subr.bf16.mxu1 %v2968_v43  ;;  %2977 = vmatprep.subr.bf16.mxu0 %v2976_v44 }
  0x95   : > { %2706 = vmatmul.mubr.msk.f32.gmra.mrb[2].mxu0 %vm522_vm1, %v3443_v52  ;;  %2708 = vmatmul.mubr.msk.f32.gmra.mrb[2].mxu1 %vm522_vm1, %v3440_v51 }
  0x96   : > { %2971 = vmatpush1.bf16.msra.mxu1 %v2970_v47  ;;  %2979 = vmatpush1.bf16.msra.mxu0 %v2978_v48 }
  0x97   : > { %688 = vmatprep.mubr.f32.mxu1 %v3217_v11  ;;  %777 = vmatprep.mubr.f32.mxu0 %v3217_v11 }
  0x98   : > { %2840 = vmatprep.subr.mxu1 %v3217_v11  ;;  %2860 = vmatprep.subr.mxu0 %v3217_v11 }
  0x99   : > { %2709 = vmatmul.mubr.msk.f32.vlgmr.msra.gmra.mrb[4].mxu1 %vm522_vm1, %v3429_v42  ;;  %2713 = vmatmul.mubr.msk.f32.vlgmr.msra.gmra.mrb[4].mxu0 %vm522_vm1, %v3429_v42 }
  0x9a   : > { %694 = vmatprep.mubr.f32.mxu1 %v3217_v11  ;;  %783 = vmatprep.mubr.f32.mxu0 %v3217_v11 }
  0x9d   : > { %2710 = vmatmul.mubr.msk.f32.gmra.mrb[6].mxu1 %vm522_vm1, %v3443_v52  ;;  %2714 = vmatmul.mubr.msk.f32.gmra.mrb[6].mxu0 %vm522_vm1, %v3443_v52 }
  0x9e   : > { %700 = vmatprep.mubr.f32.mxu1 %v3217_v11  ;;  %789 = vmatprep.mubr.f32.mxu0 %v3217_v11 }
  0xa1   : > { %2711 = vmatmul.mubr.msk.f32.gmra.mrb[8].mxu1 %vm522_vm1, %v3426_v41  ;;  %2715 = vmatmul.mubr.msk.f32.gmra.mrb[8].mxu0 %vm522_vm1, %v3426_v41 }
  0xa2   : > { %706 = vmatprep.mubr.f32.mxu1 %v3217_v11  ;;  %795 = vmatprep.mubr.f32.mxu0 %v3217_v11 }
  0xa5   : > { %2712 = vmatmul.mubr.msk.f32.gmra.mrb[10].mxu1 %vm522_vm1, %v3440_v51  ;;  %2716 = vmatmul.mubr.msk.f32.gmra.mrb[10].mxu0 %vm522_vm1, %v3440_v51 }
  0xa6   : > { %2842 = vmatprep.mubr.msk.f32.mxu1 %vm3219_vm2, %v3217_v11  ;;  %2862 = vmatprep.mubr.msk.f32.mxu0 %vm3219_vm2, %v3217_v11 }
 0x164   : > { %v613_v55 = vpop.f32.mrb[0].mxu1  ;;  %v601_v56 = vpop.f32.mrb[0].mxu0 }
 0x165   : > { %v3481_v57 = vpop.f32.mrb[1].mxu1  ;;  %v3483_v58 = vpop.f32.mrb[1].mxu0  ;;  %v602_v13 = vadd.f32 %v601_v56, %v495_v12  ;;  %v614_v29 = vadd.f32 %v613_v55, %v495_v12 }
 0x168   : > { %v619_v62 = vpop.f32.mrb[2].mxu1  ;;  %v607_v63 = vpop.f32.mrb[2].mxu0 }
 0x169   : > { %v3492_v0 = vpop.f32.mrb[3].mxu1  ;;  %v3494_v1 = vpop.f32.mrb[3].mxu0  ;;  %v608_v20 = vadd.f32 %v607_v63, %v495_v12  ;;  %v620_v37 = vadd.f32 %v619_v62, %v495_v12 }
 0x16c   : > { %v690_v5 = vpop.f32.mrb[4].mxu1  ;;  %v779_v6 = vpop.f32.mrb[4].mxu0 }
 0x16d   : > { %v691_v7 = vadd.f32 %v690_v5, %v503_v2  ;;  %v780_v8 = vadd.f32 %v779_v6, %v511_v3  ;;  %v3499_v9 = vpop.f32.mrb[5].mxu1  ;;  %v3501_v10 = vpop.f32.mrb[5].mxu0 }
 0x16f   : > { %2841 = vmatpush3.xpose.msra.mxu1 %v691_v7  ;;  %2861 = vmatpush3.msra.mxu0 %v780_v8 }
 0x170   : > { %v696_v15 = vpop.f32.mrb[6].mxu1  ;;  %v785_v16 = vpop.f32.mrb[6].mxu0  ;;  %2845 = vmatprep.subr.mxu1 %v3217_v11  ;;  %2870 = vmatprep.subr.mxu0 %v3217_v11 }
 0x171   : > { %v697_v17 = vadd.f32 %v696_v15, %v503_v2  ;;  %v3507_v18 = vpop.f32.mrb[7].mxu1  ;;  %v3509_v19 = vpop.f32.mrb[7].mxu0  ;;  %v786_v38 = vadd.f32 %v785_v16, %v511_v3 }
 0x172   : > { %2843 = vmatmul.mubr.f32.vlgmr.msra.gmra.mrb[12].mxu1 %v602_v13 }
 0x173   : > { %2846 = vmatpush3.xpose.msra.mxu1 %v697_v17  ;;  %2847 = vmatprep.mubr.msk.f32.mxu1 %vm3219_vm2, %v3217_v11 }
 0x174   : > { %v702_v22 = vpop.f32.mrb[8].mxu1  ;;  %v791_v23 = vpop.f32.mrb[8].mxu0  ;;  %2850 = vmatprep.subr.mxu1 %v3217_v11 }
 0x175   : > { %v703_v24 = vadd.f32 %v702_v22, %v503_v2  ;;  %v3517_v25 = vadd.f32 %v791_v23, %v511_v3  ;;  %v3519_v26 = vpop.f32.mrb[9].mxu1  ;;  %v793_v27 = vpop.f32.mrb[9].mxu0 }
 0x176   : > { %v3522_v28 = vadd.f32 %v793_v27, %v3514_v21  ;;  %2848 = vmatmul.mubr.f32.vlgmr.msra.gmra.mrb[14].mxu1 %v608_v20 }
 0x177   : > { %2851 = vmatpush3.xpose.msra.mxu1 %v703_v24  ;;  %2852 = vmatprep.mubr.msk.f32.mxu1 %vm3219_vm2, %v3217_v11 }
 0x178   : > { %v708_v30 = vpop.f32.mrb[10].mxu1  ;;  %v797_v31 = vpop.f32.mrb[10].mxu0  ;;  %2855 = vmatprep.subr.mxu1 %v3217_v11 }
 0x179   : > { %v709_v32 = vadd.f32 %v708_v30, %v503_v2  ;;  %v3527_v33 = vadd.f32 %v797_v31, %v511_v3  ;;  %v3529_v34 = vpop.f32.mrb[11].mxu1  ;;  %v799_v35 = vpop.f32.mrb[11].mxu0 }
 0x17a   : > { %v3532_v36 = vadd.f32 %v799_v35, %v3514_v21  ;;  %2853 = vmatmul.mubr.f32.vlgmr.msra.gmra.mrb[16].mxu1 %v614_v29 }
 0x17b   : > { %2856 = vmatpush3.xpose.msra.mxu1 %v709_v32  ;;  %2857 = vmatprep.mubr.msk.f32.mxu1 %vm3219_vm2, %v3217_v11 }
 0x17c   : > { %2865 = vmatprep.subr.mxu1 %v3217_v11 }
 0x17e   : > { %2858 = vmatmul.mubr.f32.vlgmr.msra.gmra.mrb[18].mxu1 %v620_v37 }
 0x17f   : > { %2866 = vmatpush3.msra.mxu1 %v786_v38  ;;  %2867 = vmatprep.mubr.msk.f32.mxu1 %vm3219_vm2, %v3217_v11 }
 0x180   : > { %2875 = vmatprep.subr.mxu1 %v3217_v11 }
 0x245   : > { %v868_v39 = vpop.f32.mrb[12].mxu1 }
 0x246   : > { %v1082_v40 = vmul.f32 0.17677669, %v868_v39  ;;  %v2844_v43 = vpop.f32.mrb[13].mxu1  ;;  %v506_v39 = vsub.s32 3, %v3479_v54 }
 0x248   : > { %v1087_v44 = vsel %vm1086_vm3, %v1082_v40, -inf }
 0x249   : > { %1088 = vmax.xlane.f32.xlu0 %v1087_v44  ;;  %v938_v45 = vpop.f32.mrb[14].mxu1  ;;  %v507_v44 = vrot.slane %v3490_v61, %v506_v39 }
 0x24a   : > { %v1083_v46 = vmul.f32 0.17677669, %v938_v45  ;;  %v2849_v47 = vpop.f32.mrb[15].mxu1  ;;  %v498_v45 = vsub.s32 1, %v3479_v54 }
 0x24c   : > { %v1090_v48 = vsel %vm1086_vm3, %v1083_v46, -inf }
 0x24d   : > { %1091 = vmax.xlane.f32.xlu1 %v1090_v48  ;;  %v1008_v49 = vpop.f32.mrb[16].mxu1  ;;  %v499_v48 = vrot.slane %v3490_v61, %v498_v45 }
 0x24e   : > { %v1084_v50 = vmul.f32 0.17677669, %v1008_v49  ;;  %v2854_v53 = vpop.f32.mrb[17].mxu1 }
 0x24f   : > { %v604_v54 = vadd.f32 %v3483_v58, %v499_v48  ;;  %v705_v53 = vadd.f32 %v3519_v26, %v507_v44  ;;  %v616_v61 = vadd.f32 %v3481_v57, %v499_v48  ;;  %v782_v58 = vadd.f32 %v3501_v10, %v3514_v21 }
 0x250   : > { %v1093_v55 = vsel %vm1086_vm3, %v1084_v50, -inf  ;;  %v622_v57 = vadd.f32 %v3492_v0, %v499_v48 }
 0x251   : > { %1094 = vmax.xlane.f32.xlu0 %v1093_v55  ;;  %v1078_v56 = vpop.f32.mrb[18].mxu1 }
 0x252   : > { %v1085_v59 = vmul.f32 0.17677669, %v1078_v56  ;;  %v2859_v60 = vpop.f32.mrb[19].mxu1 }
 0x254   : > { %v1096_v62 = vsel %vm1086_vm3, %v1085_v59, -inf }
 0x255   : > { %1097 = vmax.xlane.f32.xlu0 %v1096_v62 }
 0x2d6   : > { %v1089_v63 = vpop.xlane.xlu0 %1088 }
 0x2d7   : > { %v1099_v2 = vsub.f32 %v1082_v40, %v1089_v63 }
 0x2d9   : > { %v1103_v3 = vmul.f32 1.442695, %v1099_v2 }
 0x2da   : > { %v1092_v4 = vpop.xlane.xlu1 %1091 }
 0x2db   : > { %3085 = vpow2.f32 %v1103_v3  ;;  %v1100_v5 = vsub.f32 %v1083_v46, %v1092_v4 }
 0x2dd   : > { %v1105_v6 = vmul.f32 1.442695, %v1100_v5 }
 0x2de   : > { %v1095_v7 = vpop.xlane.xlu0 %1094 }
 0x2df   : > { %3087 = vpow2.f32 %v1105_v6  ;;  %v1101_v8 = vsub.f32 %v1084_v50, %v1095_v7  ;;  %v699_v50 = vadd.f32 %v3507_v18, %v507_v44  ;;  %v711_v18 = vadd.f32 %v3529_v34, %v507_v44 }
 0x2e1   : > { %v1107_v12 = vmul.f32 1.442695, %v1101_v8 }
 0x2e2   : > { %v1098_v13 = vpop.xlane.xlu0 %1097 }
 0x2e3   : > { %3089 = vpow2.f32 %v1107_v12  ;;  %v1102_v14 = vsub.f32 %v1085_v59, %v1098_v13 }
 0x2e5   : > { %v3086_v15 = vpop.eup %3085  ;;  %v1109_v16 = vmul.f32 1.442695, %v1102_v14 }
 0x2e6   : > { %v1111_v17 = vsel %vm1086_vm3, %v3086_v15, 0.0 }
 0x2e7   : > { %3091 = vpow2.f32 %v1109_v16  ;;  %1112 = vadd.xlane.f32.xlu1 %v1111_v17 }
 0x2e9   : > { %v3088_v20 = vpop.eup %3087 }
 0x2ea   : > { %v1114_v22 = vsel %vm1086_vm3, %v3088_v20, 0.0 }
 0x2eb   : > { %1115 = vadd.xlane.f32.xlu0 %v1114_v22 }
 0x2ed   : > { %v3090_v23 = vpop.eup %3089 }
 0x2ee   : > { %v1117_v24 = vsel %vm1086_vm3, %v3090_v23, 0.0 }
 0x2ef   : > { %1118 = vadd.xlane.f32.xlu1 %v1117_v24 }
 0x2f1   : > { %v3092_v27 = vpop.eup %3091 }
 0x2f2   : > { %v1120_v29 = vsel %vm1086_vm3, %v3092_v27, 0.0 }
 0x2f3   : > { %1121 = vadd.xlane.f32.xlu0 %v1120_v29 }
 0x374   : > { %v1113_v30 = vpop.xlane.xlu1 %1112 }
 0x375   : > { %3093 = vrcp.f32 %v1113_v30 }
 0x378   : > { %v1116_v31 = vpop.xlane.xlu0 %1115 }
 0x379   : > { %3095 = vrcp.f32 %v1116_v31 }
 0x37c   : > { %v1119_v32 = vpop.xlane.xlu1 %1118 }
 0x37d   : > { %3097 = vrcp.f32 %v1119_v32 }
 0x37f   : > { %v3094_v35 = vpop.eup %3093 }
 0x380   : > { %v1127_v37 = vmul.f32 %v3094_v35, %v3086_v15  ;;  %v1122_v38 = vpop.xlane.xlu0 %1121 }
 0x381   : > { %3099 = vrcp.f32 %v1122_v38 }
 0x382   : > { %2863 = vmatmul.mubr.msk.f32.vlgmr.msra.gmra.mrb[12].mxu0 %vm1086_vm3, %v1127_v37 }
 0x383   : > { %v3096_v40 = vpop.eup %3095  ;;  %2871 = vmatpush3.msra.mxu0 %v3517_v25  ;;  %2872 = vmatprep.mubr.msk.f32.mxu0 %vm3219_vm2, %v3217_v11  ;;  %v693_v25 = vadd.f32 %v3499_v9, %v507_v44  ;;  %v610_v9 = vadd.f32 %v3494_v1, %v499_v48  ;;  %v788_v1 = vadd.f32 %v3509_v19, %v3514_v21 }
 0x384   : > { %v1128_v43 = vmul.f32 %v3096_v40, %v3088_v20  ;;  %2880 = vmatprep.subr.mxu0 %v3217_v11 }
 0x386   : > { %2868 = vmatmul.mubr.msk.f32.vlgmr.msra.gmra.mrb[20].mxu1 %vm1086_vm3, %v1128_v43 }
 0x387   : > { %v3098_v46 = vpop.eup %3097  ;;  %2876 = vmatpush3.msra.mxu1 %v3527_v33  ;;  %2877 = vmatprep.mubr.msk.f32.mxu1 %vm3219_vm2, %v3217_v11 }
 0x388   : > { %v1129_v47 = vmul.f32 %v3098_v46, %v3090_v23  ;;  %2885 = vmatprep.subr.mxu1 %v3217_v11 }
 0x38a   : > { %2873 = vmatmul.mubr.msk.f32.vlgmr.msra.gmra.mrb[14].mxu0 %vm1086_vm3, %v1129_v47 }
 0x38b   : > { %v3100_v49 = vpop.eup %3099  ;;  %2881 = vmatpush3.xpose.msra.mxu0 %v693_v25  ;;  %2882 = vmatprep.mubr.msk.f32.mxu0 %vm3219_vm2, %v3217_v11 }
 0x38c   : > { %v1130_v33 = vmul.f32 %v3100_v49, %v3092_v27  ;;  %2890 = vmatprep.subr.mxu0 %v3217_v11 }
 0x38e   : > { %2878 = vmatmul.mubr.msk.f32.vlgmr.msra.gmra.mrb[22].mxu1 %vm1086_vm3, %v1130_v33  ;;  %2883 = vmatmul.mubr.f32.vlgmr.msra.gmra.mrb[16].mxu0 %v604_v54  ;;  %v2059_v33 = vld [vmem:[%s3913_s4 + $0x80] sm:$0xff] }
 0x38f   : > { %2886 = vmatpush3.xpose.msra.mxu1 %v699_v50  ;;  %2891 = vmatpush3.xpose.msra.mxu0 %v705_v53  ;;  %v2060_v50 = vld [vmem:[%s3913_s4 + $0x88] sm:$0xff] }
 0x390   : > { %2887 = vmatprep.mubr.msk.f32.mxu1 %vm3219_vm2, %v3217_v11  ;;  %2892 = vmatprep.mubr.msk.f32.mxu0 %vm3219_vm2, %v3217_v11 }
 0x391   : > { %2895 = vmatprep.subr.mxu1 %v3217_v11  ;;  %2900 = vmatprep.subr.mxu0 %v3217_v11 }
 0x392   : > { %2888 = vmatmul.mubr.f32.vlgmr.msra.gmra.mrb[24].mxu1 %v610_v9  ;;  %2893 = vmatmul.mubr.f32.vlgmr.msra.gmra.mrb[18].mxu0 %v616_v61  ;;  %v2980_v9 = vpack.c.bf16 %v2060_v50, %v2059_v33 }
 0x393   : > { %2896 = vmatpush3.xpose.msra.mxu1 %v711_v18  ;;  %2901 = vmatpush3.msra.mxu0 %v782_v58  ;;  %v2043_v58 = vld [vmem:[%s3913_s4] sm:$0xff]  ;;  %v2044_v18 = vld [vmem:[%s3913_s4 + $0x8] sm:$0xff] }
 0x394   : > { %2897 = vmatprep.mubr.msk.f32.mxu1 %vm3219_vm2, %v3217_v11  ;;  %2905 = vmatprep.subr.mxu1 %v3217_v11 }
 0x395   : > { %2902 = vmatprep.mubr.msk.f32.mxu0 %vm3219_vm2, %v3217_v11  ;;  %2910 = vmatprep.subr.mxu0 %v3217_v11 }
 0x396   : > { %2898 = vmatmul.mubr.f32.vlgmr.msra.gmra.mrb[26].mxu1 %v622_v57  ;;  %v2061_v57 = vld [vmem:[%s3913_s4 + $0x90] sm:$0xff] }
 0x397   : > { %2906 = vmatpush3.msra.mxu1 %v788_v1  ;;  %2907 = vmatprep.mubr.msk.f32.mxu1 %vm3219_vm2, %v3217_v11  ;;  %v2062_v1 = vld [vmem:[%s3913_s4 + $0x98] sm:$0xff] }
 0x398   : > { %2915 = vmatprep.subr.mxu1 %v3217_v11 }
 0x455   : > { %v3594_v0 = vpop.f32.mrb[12].mxu0 }
 0x456   : > { %v2864_v10 = vpop.f32.mrb[13].mxu0 }
 0x459   : > { %v3596_v26 = vpop.f32.mrb[20].mxu1 }
 0x45a   : > { %v2869_v34 = vpop.f32.mrb[21].mxu1 }
 0x45b   : > { %v2982_v34 = vpack.c.bf16 %v2044_v18, %v2043_v58 }
 0x45d   : > { %v3598_v55 = vpop.f32.mrb[14].mxu0 }
 0x45e   : > { %v2874_v19 = vpop.f32.mrb[15].mxu0 }
 0x461   : > { %v3600_v21 = vpop.f32.mrb[22].mxu1  ;;  %v1489_v56 = vpop.f32.mrb[16].mxu0 }
 0x462   : > { %v1703_v59 = vmul.f32 0.17677669, %v1489_v56  ;;  %v2879_v60 = vpop.f32.mrb[23].mxu1  ;;  %v2884_v62 = vpop.f32.mrb[17].mxu0 }
 0x463   : > { %v2046_v60 = vld [vmem:[%s3913_s4 + $0x18] sm:$0xff] }
 0x464   : > { %v1707_v63 = vsel %vm1086_vm3, %v1703_v59, -inf }
 0x465   : > { %1708 = vmax.xlane.f32.xlu1 %v1707_v63  ;;  %v1559_v2 = vpop.f32.mrb[24].mxu1  ;;  %v1629_v3 = vpop.f32.mrb[18].mxu0  ;;  %v2984_v63 = vpack.c.bf16 %v2062_v1, %v2061_v57 }
 0x466   : > { %v1704_v4 = vmul.f32 0.17677669, %v1559_v2  ;;  %v1705_v5 = vmul.f32 0.17677669, %v1629_v3  ;;  %v2889_v6 = vpop.f32.mrb[25].mxu1  ;;  %v2894_v7 = vpop.f32.mrb[19].mxu0 }
 0x467   : > { %v2064_v2 = vld [vmem:[%s3913_s4 + $0xa8] sm:$0xff]  ;;  %v2047_v6 = vld [vmem:[%s3913_s4 + $0x20] sm:$0xff] }
 0x468   : > { %v1713_v8 = vsel %vm1086_vm3, %v1705_v5, -inf  ;;  %v1710_v12 = vsel %vm1086_vm3, %v1704_v4, -inf  ;;  %v2048_v7 = vld [vmem:[%s3913_s4 + $0x28] sm:$0xff] }
 0x469   : > { %1714 = vmax.xlane.f32.xlu1 %v1713_v8  ;;  %1711 = vmax.xlane.f32.xlu0 %v1710_v12  ;;  %v1699_v13 = vpop.f32.mrb[26].mxu1  ;;  %v2065_v12 = vld [vmem:[%s3913_s4 + $0xb0] sm:$0xff] }
 0x46a   : > { %v1706_v14 = vmul.f32 0.17677669, %v1699_v13  ;;  %v2899_v15 = vpop.f32.mrb[27].mxu1 }
 0x46b   : > { %v2050_v15 = vld [vmem:[%s3913_s4 + $0x38] sm:$0xff] }
 0x46c   : > { %v1716_v16 = vsel %vm1086_vm3, %v1706_v14, -inf }
 0x46d   : > { %1717 = vmax.xlane.f32.xlu0 %v1716_v16  ;;  %v2067_v16 = vld [vmem:[%s3913_s4 + $0xc0] sm:$0xff] }
 0x4f2   : > { %v1709_v17 = vpop.xlane.xlu1 %1708 }
 0x4f3   : > { %v1719_v20 = vsub.f32 %v1703_v59, %v1709_v17  ;;  %v2045_v59 = vld [vmem:[%s3913_s4 + $0x10] sm:$0xff]  ;;  %v2068_v17 = vld [vmem:[%s3913_s4 + $0xc8] sm:$0xff] }
 0x4f4   : > { %v2986_v3 = vpack.c.bf16 %v2046_v60, %v2045_v59 }
 0x4f5   : > { %v1723_v22 = vmul.f32 1.442695, %v1719_v20 }
 0x4f6   : > { %v1715_v23 = vpop.xlane.xlu1 %1714  ;;  %v1712_v24 = vpop.xlane.xlu0 %1711 }
 0x4f7   : > { %3101 = vpow2.f32 %v1723_v22  ;;  %v1721_v27 = vsub.f32 %v1705_v5, %v1715_v23  ;;  %v1720_v29 = vsub.f32 %v1704_v4, %v1712_v24  ;;  %v2996_v22 = vpack.c.bf16 %v2068_v17, %v2067_v16  ;;  %v2051_v23 = vld [vmem:[%s3913_s4 + $0x40] sm:$0xff]  ;;  %v2052_v24 = vld [vmem:[%s3913_s4 + $0x48] sm:$0xff] }
 0x4f9   : > { %v1727_v30 = vmul.f32 1.442695, %v1721_v27  ;;  %v1725_v31 = vmul.f32 1.442695, %v1720_v29  ;;  %v2069_v27 = vld [vmem:[%s3913_s4 + $0xd0] sm:$0xff]  ;;  %v2070_v29 = vld [vmem:[%s3913_s4 + $0xd8] sm:$0xff] }
 0x4fa   : > { %v1718_v32 = vpop.xlane.xlu0 %1717 }
 0x4fb   : > { %3103 = vpow2.f32 %v1727_v30  ;;  %v1722_v35 = vsub.f32 %v1706_v14, %v1718_v32  ;;  %v2049_v14 = vld [vmem:[%s3913_s4 + $0x30] sm:$0xff]  ;;  %v2998_v30 = vpack.c.bf16 %v2052_v24, %v2051_v23 }
 0x4fc   : > { %3105 = vpow2.f32 %v1725_v31  ;;  %v2994_v20 = vpack.c.bf16 %v2050_v15, %v2049_v14  ;;  %v3000_v31 = vpack.c.bf16 %v2070_v29, %v2069_v27  ;;  %v2053_v32 = vld [vmem:[%s3913_s4 + $0x50] sm:$0xff] }
 0x4fd   : > { %v1729_v37 = vmul.f32 1.442695, %v1722_v35  ;;  %v2054_v35 = vld [vmem:[%s3913_s4 + $0x58] sm:$0xff] }
 0x4ff   : > { %3107 = vpow2.f32 %v1729_v37  ;;  %v2071_v37 = vld [vmem:[%s3913_s4 + $0xe0] sm:$0xff] }
 0x501   : > { %v3102_v38 = vpop.eup %3101 }
 0x502   : > { %v1731_v39 = vsel %vm1086_vm3, %v3102_v38, 0.0 }
 0x503   : > { %1732 = vadd.xlane.f32.xlu1 %v1731_v39  ;;  %v3002_v39 = vpack.c.bf16 %v2054_v35, %v2053_v32 }
 0x505   : > { %v3104_v40 = vpop.eup %3103 }
 0x506   : > { %v3106_v43 = vpop.eup %3105  ;;  %v1737_v44 = vsel %vm1086_vm3, %v3104_v40, 0.0 }
 0x507   : > { %1738 = vadd.xlane.f32.xlu1 %v1737_v44  ;;  %v1734_v45 = vsel %vm1086_vm3, %v3106_v43, 0.0  ;;  %v2056_v44 = vld [vmem:[%s3913_s4 + $0x68] sm:$0xff] }
 0x508   : > { %1735 = vadd.xlane.f32.xlu0 %v1734_v45  ;;  %v2073_v45 = vld [vmem:[%s3913_s4 + $0xf0] sm:$0xff] }
 0x509   : > { %v3108_v46 = vpop.eup %3107 }
 0x50a   : > { %v1740_v47 = vsel %vm1086_vm3, %v3108_v46, 0.0 }
 0x50c   : > { %1741 = vadd.xlane.f32.xlu0 %v1740_v47 }
 0x518   : > { %2167 = vrot.lane.b32.xlu1 %v3429_v42, %s3220_s19 }
 0x51c   : > { %2171 = vrot.lane.b32.xlu1 %v3426_v41, %s3220_s19 }
 0x520   : > { %2173 = vrot.lane.b32.xlu1 %v3440_v51, %s3220_s19 }
 0x522   : > { %2169 = vrot.lane.b32.xlu0 %v3443_v52, %s3220_s19  ;;  %s421_s19 = sand.u32 1, %s3207_s22  }
 0x523   : > { %s2700_s26 = sshll.u32 %s421_s19, 5  ;;  %s3868_s25 = scalar_lea.sflag [#allocation3], %s421_s19 }
 0x524   : > { %s423_s0 = scalar_lea.vmem [#allocation2], %s2700_s26 }
 0x525   : > { %s2622_s28 = sshll.u32 %s423_s0, 4  ;;  %s3862_s28 = int_to_ptr.vmem [resolvable:$true] %s2622_s28 }
 0x526   : > { %s3153_s17 = scalar_lea.vmem %s3862_s28, 512 }
 0x527   : > { %p3154_p11 = scmp.ne.s32.totalorder %s3862_s28, %s3153_s17 }
 0x529   : > { %p3155_p12 = pnand %p3154_p11, %p3327_p5 }
 0x52b   : > { %p3156_p13 = pneg %p3155_p12 }
 0x590   : > { %v1733_v25 = vpop.xlane.xlu1 %1732 }
 0x591   : > { %3109 = vrcp.f32 %v1733_v25 }
 0x594   : > { %v1739_v48 = vpop.xlane.xlu1 %1738 }
 0x595   : > { %3111 = vrcp.f32 %v1739_v48  ;;  %v1736_v49 = vpop.xlane.xlu0 %1735  ;;  %v2057_v48 = vld [vmem:[%s3913_s4 + $0x70] sm:$0xff] }
 0x596   : > { %3113 = vrcp.f32 %v1736_v49  ;;  %v2058_v49 = vld [vmem:[%s3913_s4 + $0x78] sm:$0xff] }
 0x599   : > { %v1742_v54 = vpop.xlane.xlu0 %1741 }
 0x59a   : > { %3115 = vrcp.f32 %v1742_v54  ;;  %v3010_v54 = vpack.c.bf16 %v2058_v49, %v2057_v48  ;;  %v2269_v48 = vld [vmem:[%s3915_s6] sm:$0xff]  ;;  %v2270_v49 = vld [vmem:[%s3915_s6 + $0x8] sm:$0xff] }
 0x59b   : > { %v3110_v53 = vpop.eup %3109 }
 0x59c   : > { %v1747_v61 = vmul.f32 %v3110_v53, %v3102_v38  ;;  %v2072_v38 = vld [vmem:[%s3913_s4 + $0xe8] sm:$0xff] }
 0x59e   : > { %2903 = vmatmul.mubr.msk.f32.vlgmr.msra.gmra.mrb[20].mxu0 %vm1086_vm3, %v1747_v61 }
 0x59f   : > { %v3112_v10 = vpop.eup %3111  ;;  %2911 = vmatpush3.msra.mxu0 %v3522_v28  ;;  %2912 = vmatprep.mubr.msk.f32.mxu0 %vm3219_vm2, %v3217_v11  ;;  %v2063_v28 = vld [vmem:[%s3913_s4 + $0xa0] sm:$0xff] }
 0x5a0   : > { %v3114_v19 = vpop.eup %3113  ;;  %v1749_v56 = vmul.f32 %v3112_v10, %v3104_v40  ;;  %2981 = vmatprep.subr.bf16.mxu0 %v2980_v9  ;;  %v2988_v5 = vpack.c.bf16 %v2064_v2, %v2063_v28  ;;  %v3004_v40 = vpack.c.bf16 %v2072_v38, %v2071_v37 }
 0x5a1   : > { %v1748_v62 = vmul.f32 %v3114_v19, %v3106_v43  ;;  %v2055_v43 = vld [vmem:[%s3913_s4 + $0x60] sm:$0xff] }
 0x5a2   : > { %2913 = vmatmul.mubr.msk.f32.vlgmr.msra.gmra.mrb[22].mxu0 %vm1086_vm3, %v1749_v56  ;;  %v3006_v47 = vpack.c.bf16 %v2056_v44, %v2055_v43 }
 0x5a3   : > { %2908 = vmatmul.mubr.msk.f32.vlgmr.msra.gmra.mrb[28].mxu1 %vm1086_vm3, %v1748_v62  ;;  %2983 = vmatpush3.bf16.msra.mxu0 %v2982_v34  ;;  %v2168_v34 = vpop.permute.xlu1 %2167 }
 0x5a4   : > { %v3116_v4 = vpop.eup %3115  ;;  %2916 = vmatpush3.msra.mxu1 %v3532_v36  ;;  %2917 = vmatprep.mubr.msk.f32.mxu1 %vm3219_vm2, %v3217_v11  ;;  %v2066_v36 = vld [vmem:[%s3913_s4 + $0xb8] sm:$0xff]  ;;  %v2990_v11 = vpack.c.bf16 %v2048_v7, %v2047_v6 }
 0x5a5   : > { %v1750_v8 = vmul.f32 %v3116_v4, %v3108_v46  ;;  %2985 = vmatprep.subr.bf16.mxu0 %v2984_v63  ;;  %v2992_v13 = vpack.c.bf16 %v2066_v36, %v2065_v12  ;;  %v2074_v46 = vld [vmem:[%s3913_s4 + $0xf8] sm:$0xff] }
 0x5a6   : > { %v3008_v25 = vpack.c.bf16 %v2074_v46, %v2073_v45 }
 0x5a7   : > { %2918 = vmatmul.mubr.msk.f32.vlgmr.msra.gmra.mrb[30].mxu1 %vm1086_vm3, %v1750_v8  ;;  %2987 = vmatpush3.bf16.msra.mxu0 %v2986_v3  ;;  %v2172_v28 = vpop.permute.xlu1 %2171 }
 0x5a8   : > { %2989 = vmatprep.subr.bf16.mxu0 %v2988_v5  ;;  %v2181_v36 = vsel %vm522_vm1, %v3426_v41, %v2172_v28 }
 0x5ab   : > { %2991 = vmatpush3.bf16.msra.mxu0 %v2990_v11 }
 0x5ac   : > { %2993 = vmatprep.subr.bf16.mxu0 %v2992_v13  ;;  %v2174_v13 = vpop.permute.xlu1 %2173 }
 0x5af   : > { %2995 = vmatpush3.bf16.msra.mxu0 %v2994_v20 }
 0x5b0   : > { %2997 = vmatprep.subr.bf16.mxu0 %v2996_v22 }
 0x5b3   : > { %2999 = vmatpush3.bf16.msra.mxu0 %v2998_v30 }
 0x5b4   : > { %3001 = vmatprep.subr.bf16.mxu0 %v3000_v31 }
 0x5b7   : > { %3003 = vmatpush3.bf16.msra.mxu0 %v3002_v39 }
 0x5b8   : > { %3005 = vmatprep.subr.bf16.mxu0 %v3004_v40 }
 0x5bb   : > { %3007 = vmatpush3.bf16.msra.mxu0 %v3006_v47 }
 0x5bc   : > { %3009 = vmatprep.subr.bf16.mxu0 %v3008_v25 }
 0x5bf   : > { %3011 = vmatpush3.bf16.msra.mxu0 %v3010_v54  ;;  %v3012_v54 = vpack.c.bf16 %v2270_v49, %v2269_v48 }
 0x5c1   : > { %3013 = vmatprep.subr.bf16.mxu1 %v3012_v54 }
 0x5c2   : > { %3015 = vmatpush3.bf16.msra.mxu1 %v3012_v54 }
 0x671   : > { %v1820_v33 = vpop.f32.mrb[20].mxu0 }
 0x672   : > { %v2904_v50 = vpop.f32.mrb[21].mxu0  ;;  %2146 = vmatprep.mubr.f32.mxu0 %v1820_v33  ;;  %v2271_v33 = vld [vmem:[%s3915_s6 + $0x10] sm:$0xff] }
 0x673   : > { %2147 = vmatmul.mubr.f32.vlgmr.msra.gmra.mrb[24].mxu0 %v3594_v0  ;;  %v2725_v0 = vld [vmem:[%s3914_s5] ss:$0 sm:$0xff]  ;;  %v2272_v50 = vld [vmem:[%s3915_s6 + $0x18] sm:$0xff] }
 0x675   : > { %v1966_v53 = vpop.f32.mrb[22].mxu0 }
 0x676   : > { %v1893_v61 = vpop.f32.mrb[28].mxu1  ;;  %v2914_v9 = vpop.f32.mrb[23].mxu0 }
 0x677   : > { %v2909_v58 = vpop.f32.mrb[29].mxu1  ;;  %2151 = vmatprep.mubr.f32.mxu0 %v1893_v61  ;;  %v2273_v61 = vld [vmem:[%s3915_s6 + $0x20] sm:$0xff]  ;;  %v2274_v9 = vld [vmem:[%s3915_s6 + $0x28] sm:$0xff] }
 0x678   : > { %2152 = vmatmul.mubr.f32.gmra.mrb[26].mxu0 %v3596_v26  ;;  %v2179_v26 = vsel %vm522_vm1, %v3429_v42, %v2168_v34  ;;  %v3020_v58 = vpack.c.bf16 %v2274_v9, %v2273_v61  ;;  %v2731_v9 = vld [vmem:[%s3918_s9] ss:$0 sm:$0xff] }
 0x679   : > { %2156 = vmatprep.mubr.f32.mxu0 %v1966_v53  ;;  %v3016_v53 = vpack.c.bf16 %v2272_v50, %v2271_v33 }
 0x67a   : > { %v2039_v18 = vpop.f32.mrb[30].mxu1 }
 0x67b   : > { %v2919_v57 = vpop.f32.mrb[31].mxu1  ;;  %3017 = vmatprep.subr.bf16.mxu1 %v3016_v53 }
 0x67c   : > { %2157 = vmatmul.mubr.f32.gmra.mrb[28].mxu0 %v3598_v55  ;;  %v2170_v55 = vpop.permute.xlu0 %2169  ;;  %3019 = vmatpush3.bf16.msra.mxu1 %v3016_v53  ;;  %v2276_v57 = vld [vmem:[%s3915_s6 + $0x38] sm:$0xff] }
 0x67d   : > { %2161 = vmatprep.mubr.f32.mxu0 %v2039_v18  ;;  %v2180_v4 = vsel %vm522_vm1, %v3443_v52, %v2170_v55  ;;  %v2182_v52 = vsel %vm522_vm1, %v3440_v51, %v2174_v13  ;;  %v2275_v18 = vld [vmem:[%s3915_s6 + $0x30] sm:$0xff]  ;;  %3021 = vmatprep.subr.bf16.mxu1 %v3020_v58 }
 0x680   : > { %2162 = vmatmul.mubr.f32.gmra.mrb[30].mxu0 %v3600_v21  ;;  %3023 = vmatpush3.bf16.msra.mxu1 %v3020_v58 }
 0x746   : > { %v2808_v1 = vpop.f32.mrb[24].mxu0 }
 0x747   : > { %v2809_v10 = vpop.f32.mrb[25].mxu0 }
 0x748   : > { %v2810_v19 = vadd.f32 %v2809_v10, %v2808_v1  ;;  %v3024_v1 = vpack.c.bf16 %v2276_v57, %v2275_v18  ;;  %v2386_v10 = vld [vmem:[%s3917_s8 + $0x8] sm:$0xff] }
 0x74a   : > { %v2149_v56 = vadd.f32 %v2810_v19, %v2725_v0  ;;  %3025 = vmatprep.subr.bf16.mxu1 %v3024_v1 }
 0x74b   : > { %v2811_v59 = vpop.f32.mrb[26].mxu0  ;;  %3027 = vmatpush3.bf16.msra.mxu1 %v3024_v1 }
 0x74c   : > { %v2812_v60 = vpop.f32.mrb[27].mxu0  ;;  %v2183_v62 = vadd.f32 %v2179_v26, %v2149_v56 }
 0x74d   : > { %v2813_v63 = vadd.f32 %v2812_v60, %v2811_v59 }
 0x74e   : > { %v2188_v21 = vsel %vm2187_vm4, %v2183_v62, 0.0 }
 0x74f   : > { %v2154_v2 = vadd.f32 %v2813_v63, %v2725_v0  ;;  %v2814_v3 = vpop.f32.mrb[28].mxu0  ;;  %2189 = vadd.xlane.f32.xlu0 %v2188_v21 }
 0x750   : > { %v2815_v5 = vpop.f32.mrb[29].mxu0 }
 0x751   : > { %v2816_v6 = vadd.f32 %v2815_v5, %v2814_v3  ;;  %v2184_v7 = vadd.f32 %v2180_v4, %v2154_v2 }
 0x753   : > { %v2159_v8 = vadd.f32 %v2816_v6, %v2725_v0  ;;  %v2817_v42 = vpop.f32.mrb[30].mxu0  ;;  %v2191_v12 = vsel %vm2187_vm4, %v2184_v7, 0.0 }
 0x754   : > { %2192 = vadd.xlane.f32.xlu1 %v2191_v12  ;;  %v2818_v11 = vpop.f32.mrb[31].mxu0 }
 0x755   : > { %v2819_v14 = vadd.f32 %v2818_v11, %v2817_v42  ;;  %v2185_v15 = vadd.f32 %v2181_v36, %v2159_v8 }
 0x757   : > { %v2164_v16 = vadd.f32 %v2819_v14, %v2725_v0  ;;  %v2194_v17 = vsel %vm2187_vm4, %v2185_v15, 0.0  ;;  %v2385_v0 = vld [vmem:[%s3917_s8] sm:$0xff] }
 0x758   : > { %2195 = vadd.xlane.f32.xlu0 %v2194_v17  ;;  %v3028_v34 = vpack.c.bf16 %v2386_v10, %v2385_v0 }
 0x759   : > { %v2186_v20 = vadd.f32 %v2182_v52, %v2164_v16 }
 0x75a   : > { %3029 = vmatprep.subr.bf16.mxu1 %v3028_v34 }
 0x75b   : > { %v2197_v22 = vsel %vm2187_vm4, %v2186_v20, 0.0 }
 0x75c   : > { %2198 = vadd.xlane.f32.xlu0 %v2197_v22 }
 0x7dc   : > { %v2190_v23 = vpop.xlane.xlu0 %2189 }
 0x7dd   : > { %v2201_v24 = vmul.f32 0.015625, %v2190_v23 }
 0x7df   : > { %v3739_v27 = vsub.f32 %v2183_v62, %v2201_v24 }
 0x7e1   : > { %v2193_v41 = vpop.xlane.xlu1 %2192  ;;  %v2209_v29 = vmul.f32 %v3739_v27, %v3739_v27 }
 0x7e2   : > { %v2202_v30 = vmul.f32 0.015625, %v2193_v41 }
 0x7e3   : > { %v2213_v31 = vsel %vm2187_vm4, %v2209_v29, 0.0 }
 0x7e4   : > { %v3744_v32 = vsub.f32 %v2184_v7, %v2202_v30  ;;  %2214 = vadd.xlane.f32.xlu1 %v2213_v31 }
 0x7e5   : > { %v2196_v51 = vpop.xlane.xlu0 %2195 }
 0x7e6   : > { %v2203_v35 = vmul.f32 0.015625, %v2196_v51  ;;  %v2210_v37 = vmul.f32 %v3744_v32, %v3744_v32 }
 0x7e8   : > { %v3748_v38 = vsub.f32 %v2185_v15, %v2203_v35  ;;  %v2216_v39 = vsel %vm2187_vm4, %v2210_v37, 0.0 }
 0x7e9   : > { %2217 = vadd.xlane.f32.xlu0 %v2216_v39  ;;  %v2199_v40 = vpop.xlane.xlu0 %2198 }
 0x7ea   : > { %v2204_v43 = vmul.f32 0.015625, %v2199_v40  ;;  %v2211_v44 = vmul.f32 %v3748_v38, %v3748_v38 }
 0x7ec   : > { %v3753_v45 = vsub.f32 %v2186_v20, %v2204_v43  ;;  %v2219_v46 = vsel %vm2187_vm4, %v2211_v44, 0.0 }
 0x7ed   : > { %2220 = vadd.xlane.f32.xlu1 %v2219_v46 }
 0x7ee   : > { %v2212_v47 = vmul.f32 %v3753_v45, %v3753_v45 }
 0x7f0   : > { %v2222_v25 = vsel %vm2187_vm4, %v2212_v47, 0.0 }
 0x7f1   : > { %2223 = vadd.xlane.f32.xlu0 %v2222_v25 }
 0x871   : > { %v2215_v19 = vpop.xlane.xlu1 %2214 }
 0x872   : > { %v2225_v56 = vmul.f32 0.015873017, %v2215_v19 }
 0x874   : > { %3117 = vrsqrt.f32 %v2225_v56  ;;  %vm2231_vm5 = vcmp.eq.f32.partialorder %v2225_v56, inf  ;;  %v2234_v2 = vand.u32 2147483648, %v2225_v56  ;;  %vm2233_vm6 = vcmp.eq.f32.partialorder %v2225_v56, 0.0 }
 0x876   : > { %v2218_v26 = vpop.xlane.xlu0 %2217 }
 0x877   : > { %v2226_v59 = vmul.f32 0.015873017, %v2218_v26 }
 0x879   : > { %3119 = vrsqrt.f32 %v2226_v59  ;;  %vm2238_vm7 = vcmp.eq.f32.partialorder %v2226_v59, inf  ;;  %v2241_v8 = vand.u32 2147483648, %v2226_v59  ;;  %vm2240_vm8 = vcmp.eq.f32.partialorder %v2226_v59, 0.0 }
 0x87a   : > { %v2221_v60 = vpop.xlane.xlu1 %2220 }
 0x87b   : > { %v2227_v62 = vmul.f32 0.015873017, %v2221_v60 }
 0x87d   : > { %3121 = vrsqrt.f32 %v2227_v62  ;;  %vm2245_vm9 = vcmp.eq.f32.partialorder %v2227_v62, inf  ;;  %v2248_v14 = vand.u32 2147483648, %v2227_v62  ;;  %vm2247_vm10 = vcmp.eq.f32.partialorder %v2227_v62, 0.0 }
 0x87e   : > { %v3118_v55 = vpop.eup %3117  ;;  %v2224_v63 = vpop.xlane.xlu0 %2223 }
 0x87f   : > { %v2230_v21 = vmul.f32 %v3118_v55, %v2225_v56  ;;  %v2228_v28 = vmul.f32 0.015873017, %v2224_v63 }
 0x881   : > { %v2232_v3 = vsel %vm2231_vm5, %v2225_v56, %v2230_v21  ;;  %3123 = vrsqrt.f32 %v2228_v28  ;;  %vm2252_vm11 = vcmp.eq.f32.partialorder %v2228_v28, inf  ;;  %v2255_v22 = vand.u32 2147483648, %v2228_v28  ;;  %v3150_v56 = vld [vmem:[%s3385_s16] sm:$0xff] }
 0x882   : > { %v2235_v4 = vsel %vm2233_vm6, %v2234_v2, %v2232_v3  ;;  %vm2254_vm12 = vcmp.eq.f32.partialorder %v2228_v28, 0.0  ;;  %v3151_v3 = vld [vmem:[%s3385_s16 + $0x18] sm:$0xff] }
 0x883   : > { %v3120_v5 = vpop.eup %3119  ;;  %v2257_v6 = vadd.f32 1e-06, %v2235_v4 }
 0x884   : > { %v2237_v7 = vmul.f32 %v3120_v5, %v2226_v59  ;;  %v3152_v5 = vld [vmem:[%s3385_s16 + $0x10] sm:$0xff] }
 0x885   : > { %3125 = vrcp.f32 %v2257_v6 }
 0x886   : > { %v2239_v42 = vsel %vm2238_vm7, %v2226_v59, %v2237_v7 }
 0x887   : > { %v3122_v12 = vpop.eup %3121  ;;  %v2242_v36 = vsel %vm2240_vm8, %v2241_v8, %v2239_v42 }
 0x888   : > { %v2258_v11 = vadd.f32 1e-06, %v2242_v36  ;;  %v2244_v13 = vmul.f32 %v3122_v12, %v2227_v62 }
 0x88a   : > { %3127 = vrcp.f32 %v2258_v11  ;;  %v2246_v15 = vsel %vm2245_vm9, %v2227_v62, %v2244_v13 }
 0x88b   : > { %v3124_v16 = vpop.eup %3123  ;;  %v2249_v17 = vsel %vm2247_vm10, %v2248_v14, %v2246_v15 }
 0x88c   : > { %v2251_v52 = vmul.f32 %v3124_v16, %v2228_v28  ;;  %v2259_v20 = vadd.f32 1e-06, %v2249_v17 }
 0x88e   : > { %v2253_v23 = vsel %vm2252_vm11, %v2228_v28, %v2251_v52  ;;  %3129 = vrcp.f32 %v2259_v20 }
 0x88f   : > { %v3126_v24 = vpop.eup %3125  ;;  %v2256_v41 = vsel %vm2254_vm12, %v2255_v22, %v2253_v23 }
 0x890   : > { %v2265_v29 = vmul.f32 %v3126_v24, %v3739_v27  ;;  %v2260_v30 = vadd.f32 1e-06, %v2256_v41  ;;  %v2387_v27 = vld [vmem:[%s3917_s8 + $0x10] sm:$0xff] }
 0x892   : > { %2936 = vmatprep.mubr.msk.f32.mxu1 %vm2187_vm4, %v2265_v29  ;;  %3131 = vrcp.f32 %v2260_v30 }
 0x894   : > { %v3128_v31 = vpop.eup %3127 }
 0x895   : > { %v2266_v51 = vmul.f32 %v3128_v31, %v3744_v32  ;;  %v2388_v32 = vld [vmem:[%s3917_s8 + $0x18] sm:$0xff] }
 0x896   : > { %v3032_v43 = vpack.c.bf16 %v2388_v32, %v2387_v27 }
 0x897   : > { %2937 = vmatmul.mubr.msk.f32.vlgmr.msra.gmra.mrb[32].mxu1 %vm2187_vm4, %v2266_v51 }
 0x898   : > { %v3130_v35 = vpop.eup %3129  ;;  %3031 = vmatpush3.bf16.msra.mxu1 %v3028_v34  ;;  %v3149_v34 = vld [vmem:[%s3385_s16 + $0x8] sm:$0xff]  ;;  %s3221_s16 = smov [#allocation2]  }
 0x899   : > { %v2267_v37 = vmul.f32 %v3130_v35, %v3748_v38  ;;  %3033 = vmatprep.subr.bf16.mxu1 %v3032_v43  ;;  %v2726_v38 = vld [vmem:[%s3916_s7] ss:$0 sm:$0xff]  ;;  %s3157_s18 = sshll.u32 %s3221_s16, 4  ;;  %s3158_s18 = int_to_ptr.vmem [resolvable:$false] %s3157_s18 }
 0x89a   : > { %s3159_s26 = scalar_lea.vmem %s3158_s18, 1024  ;;  %p3160_p0 = scmp.lt.s32.totalorder %s3862_s28, %s3158_s18 }
 0x89b   : > { %2939 = vmatprep.mubr.msk.f32.mxu1 %vm2187_vm4, %v2267_v37  ;;  %p3161_p1 = scmp.lt.s32.totalorder %s3159_s26, %s3153_s17 }
 0x89c   : > { %v3132_v39 = vpop.eup %3131  ;;  %3035 = vmatpush3.bf16.msra.mxu1 %v3032_v43 }
 0x89d   : > { %v2268_v40 = vmul.f32 %v3132_v39, %v3753_v45  ;;  %p3162_p2 = por %p3161_p1, %p3160_p0 }
 0x89f   : > { %2940 = vmatmul.mubr.msk.f32.gmra.mrb[34].mxu1 %vm2187_vm4, %v2268_v40  ;;  %p3163_p3 = pnand %p3162_p2, %p3156_p13 }
 0x96a   : > { %v2938_v44 = vpop.f32.mrb[32].mxu1 }
 0x96b   : > { %v2368_v46 = vadd.f32 %v2938_v44, %v2726_v38  ;;  %v2362_v45 = vpop.f32.mrb[33].mxu1 }
 0x96c   : > { %v2363_v47 = vadd.f32 %v2726_v38, %v2362_v45 }
 0x96d   : > { %v2382_v48 = vmax.f32 %v2368_v46, 0.0 }
 0x96e   : > { %v2381_v25 = vmax.f32 %v2363_v47, 0.0 }
 0x970   : > { %2950 = vmatprep.mubr.msk.f32.mxu1 %vm522_vm1, %v2381_v25 }
 0x971   : > { %2951 = vmatmul.mubr.msk.f32.vlgmr.msra.gmra.mrb[36].mxu1 %vm522_vm1, %v2382_v48 }
 0x972   : > { %v2941_v49 = vpop.f32.mrb[34].mxu1 }
 0x973   : > { %v2378_v54 = vadd.f32 %v2941_v49, %v2726_v38  ;;  %v2372_v33 = vpop.f32.mrb[35].mxu1 }
 0x974   : > { %v2373_v50 = vadd.f32 %v2726_v38, %v2372_v33 }
 0x975   : > { %v2384_v61 = vmax.f32 %v2378_v54, 0.0 }
 0x976   : > { %v2383_v53 = vmax.f32 %v2373_v50, 0.0 }
 0x978   : > { %2953 = vmatprep.mubr.msk.f32.mxu1 %vm522_vm1, %v2383_v53 }
 0x979   : > { %2954 = vmatmul.mubr.msk.f32.gmra.mrb[38].mxu1 %vm522_vm1, %v2384_v61 }
 0xa44   : > { %v2952_v58 = vpop.f32.mrb[36].mxu1 }
 0xa45   : > { %v2480_v18 = vadd.f32 %v2952_v58, %v2731_v9  ;;  %v2474_v57 = vpop.f32.mrb[37].mxu1 }
 0xa46   : > { %v2475_v1 = vadd.f32 %v2731_v9, %v2474_v57 }
 0xa47   : > { %v2494_v0 = vmax.f32 %v2480_v18, 0.0 }
 0xa48   : > { %v2493_v10 = vmax.f32 %v2475_v1, 0.0 }
 0xa49   : > { %v2498_v19 = vadd.f32 %v3149_v34, %v2494_v0 }
 0xa4a   : > { %v2497_v26 = vadd.f32 %v3150_v56, %v2493_v10 }
 0xa4b   : > { %v2504_v59 = vsel %vm461_vm0, %v2498_v19, 0.0 }
 0xa4c   : > { %2505 = vadd.xlane.f32.xlu0 %v2504_v59  ;;  %v2955_v60 = vpop.f32.mrb[38].mxu1  ;;  %v2501_v62 = vsel %vm461_vm0, %v2497_v26, 0.0 }
 0xa4d   : > { %v2490_v55 = vadd.f32 %v2955_v60, %v2731_v9  ;;  %v2484_v63 = vpop.f32.mrb[39].mxu1  ;;  %2502 = vadd.xlane.f32.xlu1 %v2501_v62 }
 0xa4e   : > { %v2485_v21 = vadd.f32 %v2731_v9, %v2484_v63 }
 0xa4f   : > { %v2496_v28 = vmax.f32 %v2490_v55, 0.0 }
 0xa50   : > { %v2495_v2 = vmax.f32 %v2485_v21, 0.0 }
 0xa51   : > { %v2500_v4 = vadd.f32 %v3151_v3, %v2496_v28  ;;  %v2737_v28 = vld [vmem:[%s3920_s11] ss:$0 sm:$0xff] }
 0xa52   : > { %v2499_v6 = vadd.f32 %v3152_v5, %v2495_v2 }
 0xa53   : > { %v2510_v7 = vsel %vm461_vm0, %v2500_v4, 0.0 }
 0xa54   : > { %2511 = vadd.xlane.f32.xlu0 %v2510_v7  ;;  %v2507_v8 = vsel %vm461_vm0, %v2499_v6, 0.0 }
 0xa55   : > { %2508 = vadd.xlane.f32.xlu1 %v2507_v8 }
 0xad9   : > { %v2506_v42 = vpop.xlane.xlu0 %2505 }
 0xada   : > { %v2515_v12 = vmul.f32 0.0625, %v2506_v42  ;;  %v2503_v36 = vpop.xlane.xlu1 %2502 }
 0xadb   : > { %v2514_v11 = vmul.f32 0.0625, %v2503_v36 }
 0xadc   : > { %v3821_v13 = vsub.f32 %v2498_v19, %v2515_v12 }
 0xadd   : > { %v3823_v14 = vsub.f32 %v2497_v26, %v2514_v11  ;;  %v2736_v26 = vld [vmem:[%s3919_s10] ss:$0 sm:$0xff] }
 0xade   : > { %v2523_v15 = vmul.f32 %v3821_v13, %v3821_v13  ;;  %v2550_v55 = vmul.f32 %v2736_v26, %v3821_v13 }
 0xadf   : > { %v2522_v16 = vmul.f32 %v3823_v14, %v3823_v14  ;;  %v2549_v21 = vmul.f32 %v2736_v26, %v3823_v14 }
 0xae0   : > { %v2529_v17 = vsel %vm461_vm0, %v2523_v15, 0.0 }
 0xae1   : > { %2530 = vadd.xlane.f32.xlu0 %v2529_v17  ;;  %v2512_v52 = vpop.xlane.xlu0 %2511  ;;  %v2526_v20 = vsel %vm461_vm0, %v2522_v16, 0.0 }
 0xae2   : > { %v2517_v22 = vmul.f32 0.0625, %v2512_v52  ;;  %2527 = vadd.xlane.f32.xlu1 %v2526_v20  ;;  %v2509_v23 = vpop.xlane.xlu1 %2508 }
 0xae3   : > { %v2516_v24 = vmul.f32 0.0625, %v2509_v23 }
 0xae4   : > { %v3831_v41 = vsub.f32 %v2500_v4, %v2517_v22 }
 0xae5   : > { %v3833_v29 = vsub.f32 %v2499_v6, %v2516_v24 }
 0xae6   : > { %v2525_v30 = vmul.f32 %v3831_v41, %v3831_v41  ;;  %v2552_v7 = vmul.f32 %v2736_v26, %v3831_v41 }
 0xae7   : > { %v2524_v31 = vmul.f32 %v3833_v29, %v3833_v29  ;;  %v2551_v42 = vmul.f32 %v2736_v26, %v3833_v29 }
 0xae8   : > { %v2535_v51 = vsel %vm461_vm0, %v2525_v30, 0.0 }
 0xae9   : > { %2536 = vadd.xlane.f32.xlu0 %v2535_v51  ;;  %v2532_v35 = vsel %vm461_vm0, %v2524_v31, 0.0 }
 0xaea   : > { %2533 = vadd.xlane.f32.xlu1 %v2532_v35 }
 0xb6e   : > { %v2531_v37 = vpop.xlane.xlu0 %2530 }
 0xb6f   : > { %v2539_v39 = vmul.f32 0.06666667, %v2531_v37  ;;  %v2528_v40 = vpop.xlane.xlu1 %2527 }
 0xb70   : > { %v2538_v27 = vmul.f32 0.06666667, %v2528_v40 }
 0xb71   : > { %3133 = vrsqrt.f32 %v2539_v39  ;;  %vm2562_vm13 = vcmp.eq.f32.partialorder %v2539_v39, inf  ;;  %v2565_v25 = vand.u32 2147483648, %v2539_v39  ;;  %vm2564_vm14 = vcmp.eq.f32.partialorder %v2539_v39, 0.0 }
 0xb72   : > { %3135 = vrsqrt.f32 %v2538_v27  ;;  %vm2555_vm15 = vcmp.eq.f32.partialorder %v2538_v27, inf  ;;  %v2558_v54 = vand.u32 2147483648, %v2538_v27  ;;  %vm2557_vm1 = vcmp.eq.f32.partialorder %v2538_v27, 0.0 }
 0xb76   : > { %v2537_v32 = vpop.xlane.xlu0 %2536 }
 0xb77   : > { %v2541_v43 = vmul.f32 0.06666667, %v2537_v32  ;;  %v2534_v38 = vpop.xlane.xlu1 %2533 }
 0xb78   : > { %v2540_v44 = vmul.f32 0.06666667, %v2534_v38 }
 0xb79   : > { %3137 = vrsqrt.f32 %v2541_v43  ;;  %vm2576_vm2 = vcmp.eq.f32.partialorder %v2541_v43, inf  ;;  %v2579_v1 = vand.u32 2147483648, %v2541_v43  ;;  %vm2578_vm3 = vcmp.eq.f32.partialorder %v2541_v43, 0.0 }
 0xb7a   : > { %3139 = vrsqrt.f32 %v2540_v44  ;;  %vm2569_vm4 = vcmp.eq.f32.partialorder %v2540_v44, inf  ;;  %v2572_v34 = vand.u32 2147483648, %v2540_v44  ;;  %vm2571_vm5 = vcmp.eq.f32.partialorder %v2540_v44, 0.0 }
 0xb7b   : > { %v3134_v46 = vpop.eup %3133 }
 0xb7c   : > { %v3136_v45 = vpop.eup %3135  ;;  %v2561_v47 = vmul.f32 %v3134_v46, %v2539_v39 }
 0xb7d   : > { %v2554_v48 = vmul.f32 %v3136_v45, %v2538_v27 }
 0xb7e   : > { %v2563_v49 = vsel %vm2562_vm13, %v2539_v39, %v2561_v47 }
 0xb7f   : > { %v2566_v33 = vsel %vm2564_vm14, %v2565_v25, %v2563_v49  ;;  %v2556_v50 = vsel %vm2555_vm15, %v2538_v27, %v2554_v48 }
 0xb80   : > { %v2582_v53 = vadd.f32 1e-06, %v2566_v33  ;;  %v2559_v61 = vsel %vm2557_vm1, %v2558_v54, %v2556_v50 }
 0xb81   : > { %v2581_v9 = vadd.f32 1e-06, %v2559_v61 }
 0xb82   : > { %3141 = vrcp.f32 %v2582_v53 }
 0xb83   : > { %v3138_v58 = vpop.eup %3137  ;;  %3143 = vrcp.f32 %v2581_v9 }
 0xb84   : > { %v3140_v18 = vpop.eup %3139  ;;  %v2575_v57 = vmul.f32 %v3138_v58, %v2541_v43 }
 0xb85   : > { %v2568_v0 = vmul.f32 %v3140_v18, %v2540_v44 }
 0xb86   : > { %v2577_v10 = vsel %vm2576_vm2, %v2541_v43, %v2575_v57 }
 0xb87   : > { %v2580_v19 = vsel %vm2578_vm3, %v2579_v1, %v2577_v10  ;;  %v2570_v56 = vsel %vm2569_vm4, %v2540_v44, %v2568_v0 }
 0xb88   : > { %v2584_v59 = vadd.f32 1e-06, %v2580_v19  ;;  %v2573_v60 = vsel %vm2571_vm5, %v2572_v34, %v2570_v56 }
 0xb89   : > { %v2583_v62 = vadd.f32 1e-06, %v2573_v60 }
 0xb8a   : > { %3145 = vrcp.f32 %v2584_v59 }
 0xb8b   : > { %3147 = vrcp.f32 %v2583_v62 }
 0xb8c   : > { %v3142_v63 = vpop.eup %3141 }
 0xb8d   : > { %v3144_v2 = vpop.eup %3143  ;;  %v2590_v3 = vmul.f32 %v3142_v63, %v2550_v55 }
 0xb8e   : > { %v2589_v4 = vmul.f32 %v3144_v2, %v2549_v21 }
 0xb8f   : > { %v2601_v5 = vadd.f32 %v2737_v28, %v2590_v3 }
 0xb90   : > { %v2600_v6 = vadd.f32 %v2737_v28, %v2589_v4 }
 0xb91   : > { %2605 = vst.msk [vmem:[%s423_s0 + $0x8] sm:$0xff] %vm461_vm0, %v2601_v5 }
 0xb92   : > { %2604 = vst.msk [vmem:[%s423_s0] sm:$0xff] %vm461_vm0, %v2600_v6 }
 0xb94   : > { %v3146_v8 = vpop.eup %3145 }
 0xb95   : > { %v3148_v12 = vpop.eup %3147  ;;  %v2592_v36 = vmul.f32 %v3146_v8, %v2552_v7 }
 0xb96   : > { %v2591_v11 = vmul.f32 %v3148_v12, %v2551_v42 }
 0xb97   : > { %v2603_v13 = vadd.f32 %v2737_v28, %v2592_v36 }
 0xb98   : > { %v2602_v14 = vadd.f32 %v2737_v28, %v2591_v11 }
 0xb99   : > { %2607 = vst.msk [vmem:[%s423_s0 + $0x18] sm:$0xff] %vm461_vm0, %v2603_v13 }
 0xb9a   : > { %2606 = vst.msk [vmem:[%s423_s0 + $0x10] sm:$0xff] %vm461_vm0, %v2602_v14 }
 0xb9b   : > { %3166 = shalt.err (!%p3163_p3)
}
 0xb9c   : > { %s3167_s19 = scalar_lea.hbm %s3860_s29, 512  ;;  %s3171_s0 = scalar_lea.hbm %s3921_s12, 1024 }
 0xb9d   : > { %p3168_p4 = scmp.ne.s32.totalorder %s3860_s29, %s3167_s19  ;;  %p3172_p9 = scmp.lt.u32.totalorder %s3860_s29, %s3921_s12 }
 0xb9e   : > { %p3173_p10 = scmp.lt.u32.totalorder %s3171_s0, %s3167_s19  ;;  %p3175_p12 = scmp.lt.u32.totalorder %s3167_s19, %s3860_s29 }
 0xb9f   : > { %p3169_p7 = pnand %p3168_p4, %p3327_p5 }
 0xba0   : > { %p3174_p11 = por %p3173_p10, %p3172_p9 }
 0xba1   : > { %p3170_p8 = pneg %p3169_p7 }
 0xba2   : > { %p3176_p13 = por %p3175_p12, %p3174_p11 }
 0xba4   : > { %p3177_p0 = pnand %p3176_p13, %p3170_p8 }
 0xba6   : > { %3180 = shalt.err (!%p3177_p0)
}
 0xba7   : > { %s3222_s15 = smov 128   ;;  %s3223_s17 = smov 8  }
 0xba8   : > { %3040 = dma.vmem_to_hbm [thread:$0]  (%p3327_p5), %s3862_s28, 512, %s3860_s29, %s3868_s25, %s3222_s15, %s3222_s15, %s3223_s17  }
 0xba9 PF: > { %p3046_p1 = scmp.ge.s32.totalorder %s3215_s24, 2  ;;  %s2637_s16 = sand.u32 1, %s3203_s21  }
 0xbaa   : > { %s2638_s18 = scalar_lea.sflag [#allocation3], %s2637_s16 }
 0xbab   : > { %p3043_p2 = pnand %p3046_p1, %p3331_p6 }
 0xbad   : > { %3198 = dma.done.wait (!%p3043_p2), %s2638_s18, 512  }
 0xbae   : > { %3200 = vsyncadd (!%p3043_p2), %s2638_s18, 4294966784  ;;  %s3931_s26 = sld [smem:[#allocation5_spill]]  ;;  %s3932_s23 = sld [smem:[#allocation6_spill]] }
 0xbaf   : > { %p22_p3 = scmp.ge.s32.totalorder %s3314_s27, 4   ;;  %s3933_s21 = smov %s3207_s22 }
 0xbb0   : > { %s3935_s24 = smov %s3314_s27 }
 0xbb1   :  { %24 = sbr.rel (!%p22_p3) target bundleno = 6 (0x6), region = 106 }
 0xbb4   : > { %s3934_s22 = smov %s3931_s26 }
 0xbb8   :  { %2643 = vsyncpa [#allocation3], 1 }
 0xbb9   :  { %2645 = vsyncpa [#allocation3 + $0x1], 1 }

// kernel: tpu_custom_call.1
= control target key start
LH: loop header
LB: loop body
LE: loop exit
PB: predicated region body
PF: predicated region fallthrough
CT: control target
= control target key end

     0   :  { %s3909_s0 = inlined_call_operand.vmem [shape: f32[8,8,16], index: 0, kind: input, shape index: {}]   ;;  %s3910_s1 = inlined_call_operand.vmem [shape: f32[8,8,16], index: 1, kind: input, shape index: {}]   ;;  %s3911_s2 = inlined_call_operand.vmem [shape: f32[32,768], index: 2, kind: input, shape index: {}]   ;;  %s3912_s3 = inlined_call_operand.vmem [shape: f32[1,768], index: 3, kind: input, shape index: {}]   ;;  %s3913_s4 = inlined_call_operand.vmem [shape: f32[256,64], index: 4, kind: input, shape index: {}]   ;;  %s3914_s5 = inlined_call_operand.vmem [shape: f32[1,64], index: 5, kind: input, shape index: {}]   ;;  %s3915_s6 = inlined_call_operand.vmem [shape: f32[64,32], index: 6, kind: input, shape index: {}]   ;;  %s3916_s7 = inlined_call_operand.vmem [shape: f32[1,32], index: 7, kind: input, shape index: {}]   ;;  %s3917_s8 = inlined_call_operand.vmem [shape: f32[32,16], index: 8, kind: input, shape index: {}]   ;;  %s3918_s9 = inlined_call_operand.vmem [shape: f32[1,16], index: 9, kind: input, shape index: {}]   ;;  %s3919_s10 = inlined_call_operand.vmem [shape: f32[1,16], index: 10, kind: input, shape index: {}]   ;;  %s3920_s11 = inlined_call_operand.vmem [shape: f32[1,16], index: 11, kind: input, shape index: {}]   ;;  %s3921_s12 = inlined_call_operand.hbm [shape: f32[8,8,16], index: 12, kind: output, shape index: {}]  }
   0x1   :  { %3923 = sst [smem:[#allocation7_spill]] %s3909_s0 }
   0x2   :  { %3924 = sst [smem:[#allocation8_spill]] %s3910_s1 }
   0x3   :  { %17 = vsyncpa [#allocation3], 0 }
   0x4   :  { %19 = vsyncpa [#allocation3 + $0x1], 0  ;;  %s3289_s21 = smov 0   ;;  %s3291_s22 = smov 0  }
   0x5   :  { %s3293_s23 = smov 0   ;;  %s3295_s24 = smov 0  }
   0x6 LB: > { %3925 = sst [smem:[#allocation5_spill]] %s3211_s23  ;;  %s3310_s25 = sadd.s32 4294967295, %s3215_s24   ;;  %s3215_s24 = sphi %s3295_s24, %s3935_s24   ;;  %s3211_s23 = sphi %s3293_s23, %s3932_s23   ;;  %s3207_s22 = sphi %s3291_s22, %s3934_s22   ;;  %s3203_s21 = sphi %s3289_s21, %s3933_s21  }
   0x7   : > { %s2696_s26 = sadd.s32 4294967294, %s3215_s24   ;;  %s3314_s27 = sadd.s32 1, %s3215_s24  }
   0x8   : > { %s294_s28 = sadd.s32 1, %s3211_s23  ;;  %s291_s29 = ssub.s32 %s3215_s24, %s3314_s27 }
   0x9   : > { %p304_p0 = scmp.ne.s32.totalorder %s3211_s23, %s3207_s22  ;;  %p292_p1 = scmp.eq.s32.totalorder %s291_s29, 0 }
   0xa   : > { %p305_p2 = scmp.eq.s32.totalorder %s3310_s25, 1  ;;  %p310_p3 = scmp.ne.s32.totalorder %s3207_s22, %s3203_s21 }
   0xb   : > { %p311_p4 = scmp.eq.s32.totalorder %s2696_s26, 1  ;;  %p2699_p7 = scmp.ge.s32.totalorder %s3215_s24, 1 }
   0xc   : > { %s3325_s30 = scalar_select %p292_p1, %s3211_s23, %s294_s28  }
   0xd   : > { %p3327_p5 = por %p305_p2, %p304_p0  ;;  %p3331_p6 = por %p311_p4, %p310_p3 }
   0xe   : > { %3926 = sst [smem:[#allocation6_spill]] %s3325_s30  ;;  %p377_p8 = scmp.lt.s32.totalorder %s3215_s24, 3 }
  0x10   : > { %p378_p9 = pnand %p2699_p7, %p377_p8 }
  0x11   : > { %s2701_s15 = sshll.u32 (!%p378_p9), %s3310_s25, 2  ;;  %v467_v0 = vld [vmem:[%s3911_s2 + $0x8] sm:$0xff] (!%p378_p9)  ;;  %v473_v1 = vld [vmem:[%s3911_s2 + $0x38] sm:$0xff] (!%p378_p9)  ;;  %v466_v2 = vld [vmem:[%s3911_s2] sm:$0xff] (!%p378_p9)  ;;  %v3217_v11 = vmov (!%p378_p9), 0.0   ;;  %s3929_s1 = sld [smem:[#allocation8_spill]] (!%p378_p9)  ;;  %v492_v53 = vlaneseq (!%p378_p9) }
  0x12   : > { %381 = sbr.rel (%p378_p9) target bundleno = 2985 (0xba9), region = 68  ;;  %p425_p10 = scmp.lt.s32.totalorder (!%p378_p9), %s2701_s15, 7  ;;  %v2956_v3 = vpack.c.bf16 (!%p378_p9), %v473_v1, %v467_v0  ;;  %v472_v4 = vld [vmem:[%s3911_s2 + $0x30] sm:$0xff] (!%p378_p9)  ;;  %v479_v5 = vld [vmem:[%s3911_s2 + $0x68] sm:$0xff] (!%p378_p9)  ;;  %v485_v6 = vld [vmem:[%s3911_s2 + $0x98] sm:$0xff] (!%p378_p9)  ;;  %599 = vmatprep.mubr.f32.mxu0 (!%p378_p9), %v3217_v11  ;;  %611 = vmatprep.mubr.f32.mxu1 (!%p378_p9), %v3217_v11  ;;  %vm461_vm0 = vcmask (!%p378_p9), 130048  }
  0x13   : > { %v2958_v7 = vpack.c.bf16 (!%p378_p9), %v472_v4, %v466_v2  ;;  %v2960_v8 = vpack.c.bf16 (!%p378_p9), %v485_v6, %v479_v5  ;;  %v478_v9 = vld [vmem:[%s3911_s2 + $0x60] sm:$0xff] (!%p378_p9)  ;;  %v484_v10 = vld [vmem:[%s3911_s2 + $0x90] sm:$0xff] (!%p378_p9)  ;;  %v469_v12 = vld [vmem:[%s3911_s2 + $0x18] sm:$0xff] (!%p378_p9)  ;;  %s3218_s28 = smov (!%p378_p9), 16   ;;  %s3930_s0 = sld [smem:[#allocation7_spill]] (!%p378_p9)  ;;  %vm522_vm1 = vcmask (!%p378_p9), 261120  }
  0x14   : > { %2957 = vmatprep.subr.bf16.mxu0 (!%p378_p9), %v2956_v3  ;;  %3036 = vmatprep.subr.bf16.mxu1 (!%p378_p9), %v2956_v3  ;;  %v475_v13 = vld [vmem:[%s3911_s2 + $0x48] sm:$0xff] (!%p378_p9)  ;;  %v477_v15 = vld [vmem:[%s3911_s2 + $0x58] sm:$0xff] (!%p378_p9)  ;;  %v2962_v16 = vpack.c.bf16 (!%p378_p9), %v484_v10, %v478_v9  ;;  %v468_v23 = vld [vmem:[%s3911_s2 + $0x10] sm:$0xff] (!%p378_p9)  ;;  %vm3219_vm2 = vmmov (!%p378_p9), 0   ;;  %v3479_v54 = vshrl.u32 (!%p378_p9), %v492_v53, 7  ;;  %vm1086_vm3 = vcmask (!%p378_p9), 64512  }
  0x15   : > { %v471_v14 = vld [vmem:[%s3911_s2 + $0x28] sm:$0xff] (!%p378_p9)  ;;  %2959 = vmatpush1.bf16.msra.mxu0 (!%p378_p9), %v2958_v7  ;;  %3038 = vmatpush1.bf16.msra.mxu1 (!%p378_p9), %v2958_v7  ;;  %v2964_v17 = vpack.c.bf16 (!%p378_p9), %v475_v13, %v469_v12  ;;  %v474_v24 = vld [vmem:[%s3911_s2 + $0x40] sm:$0xff] (!%p378_p9)  ;;  %v476_v26 = vld [vmem:[%s3911_s2 + $0x50] sm:$0xff] (!%p378_p9)  ;;  %s3220_s19 = smov (!%p378_p9), 32   ;;  %vm2187_vm4 = vcmask (!%p378_p9), 523264  }
  0x16   : > { %2961 = vmatprep.subr.bf16.mxu0 (!%p378_p9), %v2960_v8  ;;  %3037 = vmatprep.subr.bf16.mxu1 (!%p378_p9), %v2960_v8  ;;  %v2972_v18 = vpack.c.bf16 (!%p378_p9), %v477_v15, %v471_v14  ;;  %v470_v25 = vld [vmem:[%s3911_s2 + $0x20] sm:$0xff] (!%p378_p9)  ;;  %v481_v27 = vld [vmem:[%s3911_s2 + $0x78] sm:$0xff] (!%p378_p9)  ;;  %v487_v28 = vld [vmem:[%s3911_s2 + $0xa8] sm:$0xff] (!%p378_p9)  ;;  %v2966_v33 = vpack.c.bf16 (!%p378_p9), %v474_v24, %v468_v23  ;;  %v502_v59 = vsub.s32 (!%p378_p9), 2, %v3479_v54  ;;  %v510_v60 = vsub.s32 (!%p378_p9), 4, %v3479_v54 }
  0x17   : > { %v483_v29 = vld [vmem:[%s3911_s2 + $0x88] sm:$0xff] (!%p378_p9)  ;;  %v489_v32 = vld [vmem:[%s3911_s2 + $0xb8] sm:$0xff] (!%p378_p9)  ;;  %v2974_v34 = vpack.c.bf16 (!%p378_p9), %v476_v26, %v470_v25  ;;  %v480_v35 = vld [vmem:[%s3911_s2 + $0x70] sm:$0xff] (!%p378_p9)  ;;  %v2968_v43 = vpack.c.bf16 (!%p378_p9), %v487_v28, %v481_v27  ;;  %v494_v4 = vsub.s32 (!%p378_p9), 0, %v3479_v54  ;;  %v514_v14 = vsub.s32 (!%p378_p9), 5, %v3479_v54 }
  0x18   : > { %v486_v38 = vld [vmem:[%s3911_s2 + $0xa0] sm:$0xff] (!%p378_p9)  ;;  %v488_v40 = vld [vmem:[%s3911_s2 + $0xb0] sm:$0xff] (!%p378_p9)  ;;  %v2976_v44 = vpack.c.bf16 (!%p378_p9), %v489_v32, %v483_v29 }
  0x19   : > { %s3937_s15 = smov (!%p425_p10, %s2701_s15), 7  ;;  %2963 = vmatpush1.bf16.msra.mxu0 %v2962_v16  ;;  %3039 = vmatpush1.bf16.msra.mxu1 %v2962_v16  ;;  %v482_v39 = vld [vmem:[%s3911_s2 + $0x80] sm:$0xff]  ;;  %v2970_v47 = vpack.c.bf16 %v486_v38, %v480_v35 }
  0x1a   : > { %s2702_s20 = sshll.u32 %s3937_s15, 3  ;;  %2965 = vmatprep.subr.bf16.mxu1 %v2964_v17  ;;  %2973 = vmatprep.subr.bf16.mxu0 %v2972_v18  ;;  %v2978_v48 = vpack.c.bf16 %v488_v40, %v482_v39  ;;  %v3490_v61 = vld [vmem:[%s3912_s3] sm:$0x3f] }
  0x1b   : > { %s434_s30 = scalar_lea.vmem %s3929_s1, %s2702_s20  ;;  %s3385_s16 = scalar_lea.vmem %s3930_s0, %s2702_s20  ;;  %v503_v2 = vrot.slane %v3490_v61, %v502_v59  ;;  %v511_v3 = vrot.slane %v3490_v61, %v510_v60  ;;  %v495_v12 = vrot.slane %v3490_v61, %v494_v4 }
  0x1c   : > { %v443_v19 = vld [vmem:[%s434_s30 + $0x10] sm:$0xff]  ;;  %v441_v20 = vld [vmem:[%s434_s30] sm:$0xff]  ;;  %v444_v21 = vld [vmem:[%s434_s30 + $0x18] sm:$0xff] }
  0x1d   : > { %453 = vrot.lane.b32.xlu0 %v443_v19, %s3218_s28  ;;  %449 = vrot.lane.b32.xlu1 %v441_v20, %s3218_s28  ;;  %v442_v22 = vld [vmem:[%s434_s30 + $0x8] sm:$0xff]  ;;  %v439_v30 = vld [vmem:[%s3385_s16 + $0x10] sm:$0xff]  ;;  %s2743_s30 = sshll.u32 %s3310_s25, 9 }
  0x1e   : > { %v437_v31 = vld [vmem:[%s3385_s16] sm:$0xff]  ;;  %v440_v45 = vld [vmem:[%s3385_s16 + $0x18] sm:$0xff]  ;;  %v438_v46 = vld [vmem:[%s3385_s16 + $0x8] sm:$0xff]  ;;  %s3860_s29 = scalar_lea.hbm %s3921_s12, %s2743_s30 }
  0x21   : > { %455 = vrot.lane.b32.xlu0 %v444_v21, %s3218_s28  ;;  %451 = vrot.lane.b32.xlu1 %v442_v22, %s3218_s28  ;;  %v3514_v21 = vrot.slane %v3490_v61, %v514_v14 }
  0x8f   : > { %v454_v36 = vpop.permute.xlu0 %453  ;;  %v450_v37 = vpop.permute.xlu1 %449 }
  0x90   : > { %v3426_v41 = vsel %vm461_vm0, %v439_v30, %v454_v36  ;;  %v3429_v42 = vsel %vm461_vm0, %v437_v31, %v450_v37 }
  0x91   : > { %2705 = vmatmul.mubr.msk.f32.vlgmr.msra.gmra.mrb[0].mxu0 %vm522_vm1, %v3429_v42  ;;  %2707 = vmatmul.mubr.msk.f32.vlgmr.msra.gmra.mrb[0].mxu1 %vm522_vm1, %v3426_v41 }
  0x92   : > { %2967 = vmatpush1.bf16.msra.mxu1 %v2966_v33  ;;  %2975 = vmatpush1.bf16.msra.mxu0 %v2974_v34 }
  0x93   : > { %v456_v49 = vpop.permute.xlu0 %455  ;;  %v452_v50 = vpop.permute.xlu1 %451  ;;  %605 = vmatprep.mubr.f32.mxu0 %v3217_v11  ;;  %617 = vmatprep.mubr.f32.mxu1 %v3217_v11 }
  0x94   : > { %v3440_v51 = vsel %vm461_vm0, %v440_v45, %v456_v49  ;;  %v3443_v52 = vsel %vm461_vm0, %v438_v46, %v452_v50  ;;  %2969 = vmatprep.subr.bf16.mxu1 %v2968_v43  ;;  %2977 = vmatprep.subr.bf16.mxu0 %v2976_v44 }
  0x95   : > { %2706 = vmatmul.mubr.msk.f32.gmra.mrb[2].mxu0 %vm522_vm1, %v3443_v52  ;;  %2708 = vmatmul.mubr.msk.f32.gmra.mrb[2].mxu1 %vm522_vm1, %v3440_v51 }
  0x96   : > { %2971 = vmatpush1.bf16.msra.mxu1 %v2970_v47  ;;  %2979 = vmatpush1.bf16.msra.mxu0 %v2978_v48 }
  0x97   : > { %688 = vmatprep.mubr.f32.mxu1 %v3217_v11  ;;  %777 = vmatprep.mubr.f32.mxu0 %v3217_v11 }
  0x98   : > { %2840 = vmatprep.subr.mxu1 %v3217_v11  ;;  %2860 = vmatprep.subr.mxu0 %v3217_v11 }
  0x99   : > { %2709 = vmatmul.mubr.msk.f32.vlgmr.msra.gmra.mrb[4].mxu1 %vm522_vm1, %v3429_v42  ;;  %2713 = vmatmul.mubr.msk.f32.vlgmr.msra.gmra.mrb[4].mxu0 %vm522_vm1, %v3429_v42 }
  0x9a   : > { %694 = vmatprep.mubr.f32.mxu1 %v3217_v11  ;;  %783 = vmatprep.mubr.f32.mxu0 %v3217_v11 }
  0x9d   : > { %2710 = vmatmul.mubr.msk.f32.gmra.mrb[6].mxu1 %vm522_vm1, %v3443_v52  ;;  %2714 = vmatmul.mubr.msk.f32.gmra.mrb[6].mxu0 %vm522_vm1, %v3443_v52 }
  0x9e   : > { %700 = vmatprep.mubr.f32.mxu1 %v3217_v11  ;;  %789 = vmatprep.mubr.f32.mxu0 %v3217_v11 }
  0xa1   : > { %2711 = vmatmul.mubr.msk.f32.gmra.mrb[8].mxu1 %vm522_vm1, %v3426_v41  ;;  %2715 = vmatmul.mubr.msk.f32.gmra.mrb[8].mxu0 %vm522_vm1, %v3426_v41 }
  0xa2   : > { %706 = vmatprep.mubr.f32.mxu1 %v3217_v11  ;;  %795 = vmatprep.mubr.f32.mxu0 %v3217_v11 }
  0xa5   : > { %2712 = vmatmul.mubr.msk.f32.gmra.mrb[10].mxu1 %vm522_vm1, %v3440_v51  ;;  %2716 = vmatmul.mubr.msk.f32.gmra.mrb[10].mxu0 %vm522_vm1, %v3440_v51 }
  0xa6   : > { %2842 = vmatprep.mubr.msk.f32.mxu1 %vm3219_vm2, %v3217_v11  ;;  %2862 = vmatprep.mubr.msk.f32.mxu0 %vm3219_vm2, %v3217_v11 }
 0x164   : > { %v613_v55 = vpop.f32.mrb[0].mxu1  ;;  %v601_v56 = vpop.f32.mrb[0].mxu0 }
 0x165   : > { %v3481_v57 = vpop.f32.mrb[1].mxu1  ;;  %v3483_v58 = vpop.f32.mrb[1].mxu0  ;;  %v602_v13 = vadd.f32 %v601_v56, %v495_v12  ;;  %v614_v29 = vadd.f32 %v613_v55, %v495_v12 }
 0x168   : > { %v619_v62 = vpop.f32.mrb[2].mxu1  ;;  %v607_v63 = vpop.f32.mrb[2].mxu0 }
 0x169   : > { %v3492_v0 = vpop.f32.mrb[3].mxu1  ;;  %v3494_v1 = vpop.f32.mrb[3].mxu0  ;;  %v608_v20 = vadd.f32 %v607_v63, %v495_v12  ;;  %v620_v37 = vadd.f32 %v619_v62, %v495_v12 }
 0x16c   : > { %v690_v5 = vpop.f32.mrb[4].mxu1  ;;  %v779_v6 = vpop.f32.mrb[4].mxu0 }
 0x16d   : > { %v691_v7 = vadd.f32 %v690_v5, %v503_v2  ;;  %v780_v8 = vadd.f32 %v779_v6, %v511_v3  ;;  %v3499_v9 = vpop.f32.mrb[5].mxu1  ;;  %v3501_v10 = vpop.f32.mrb[5].mxu0 }
 0x16f   : > { %2841 = vmatpush3.xpose.msra.mxu1 %v691_v7  ;;  %2861 = vmatpush3.msra.mxu0 %v780_v8 }
 0x170   : > { %v696_v15 = vpop.f32.mrb[6].mxu1  ;;  %v785_v16 = vpop.f32.mrb[6].mxu0  ;;  %2845 = vmatprep.subr.mxu1 %v3217_v11  ;;  %2870 = vmatprep.subr.mxu0 %v3217_v11 }
 0x171   : > { %v697_v17 = vadd.f32 %v696_v15, %v503_v2  ;;  %v3507_v18 = vpop.f32.mrb[7].mxu1  ;;  %v3509_v19 = vpop.f32.mrb[7].mxu0  ;;  %v786_v38 = vadd.f32 %v785_v16, %v511_v3 }
 0x172   : > { %2843 = vmatmul.mubr.f32.vlgmr.msra.gmra.mrb[12].mxu1 %v602_v13 }
 0x173   : > { %2846 = vmatpush3.xpose.msra.mxu1 %v697_v17  ;;  %2847 = vmatprep.mubr.msk.f32.mxu1 %vm3219_vm2, %v3217_v11 }
 0x174   : > { %v702_v22 = vpop.f32.mrb[8].mxu1  ;;  %v791_v23 = vpop.f32.mrb[8].mxu0  ;;  %2850 = vmatprep.subr.mxu1 %v3217_v11 }
 0x175   : > { %v703_v24 = vadd.f32 %v702_v22, %v503_v2  ;;  %v3517_v25 = vadd.f32 %v791_v23, %v511_v3  ;;  %v3519_v26 = vpop.f32.mrb[9].mxu1  ;;  %v793_v27 = vpop.f32.mrb[9].mxu0 }
 0x176   : > { %v3522_v28 = vadd.f32 %v793_v27, %v3514_v21  ;;  %2848 = vmatmul.mubr.f32.vlgmr.msra.gmra.mrb[14].mxu1 %v608_v20 }
 0x177   : > { %2851 = vmatpush3.xpose.msra.mxu1 %v703_v24  ;;  %2852 = vmatprep.mubr.msk.f32.mxu1 %vm3219_vm2, %v3217_v11 }
 0x178   : > { %v708_v30 = vpop.f32.mrb[10].mxu1  ;;  %v797_v31 = vpop.f32.mrb[10].mxu0  ;;  %2855 = vmatprep.subr.mxu1 %v3217_v11 }
 0x179   : > { %v709_v32 = vadd.f32 %v708_v30, %v503_v2  ;;  %v3527_v33 = vadd.f32 %v797_v31, %v511_v3  ;;  %v3529_v34 = vpop.f32.mrb[11].mxu1  ;;  %v799_v35 = vpop.f32.mrb[11].mxu0 }
 0x17a   : > { %v3532_v36 = vadd.f32 %v799_v35, %v3514_v21  ;;  %2853 = vmatmul.mubr.f32.vlgmr.msra.gmra.mrb[16].mxu1 %v614_v29 }
 0x17b   : > { %2856 = vmatpush3.xpose.msra.mxu1 %v709_v32  ;;  %2857 = vmatprep.mubr.msk.f32.mxu1 %vm3219_vm2, %v3217_v11 }
 0x17c   : > { %2865 = vmatprep.subr.mxu1 %v3217_v11 }
 0x17e   : > { %2858 = vmatmul.mubr.f32.vlgmr.msra.gmra.mrb[18].mxu1 %v620_v37 }
 0x17f   : > { %2866 = vmatpush3.msra.mxu1 %v786_v38  ;;  %2867 = vmatprep.mubr.msk.f32.mxu1 %vm3219_vm2, %v3217_v11 }
 0x180   : > { %2875 = vmatprep.subr.mxu1 %v3217_v11 }
 0x245   : > { %v868_v39 = vpop.f32.mrb[12].mxu1 }
 0x246   : > { %v1082_v40 = vmul.f32 0.17677669, %v868_v39  ;;  %v2844_v43 = vpop.f32.mrb[13].mxu1  ;;  %v506_v39 = vsub.s32 3, %v3479_v54 }
 0x248   : > { %v1087_v44 = vsel %vm1086_vm3, %v1082_v40, -inf }
 0x249   : > { %1088 = vmax.xlane.f32.xlu0 %v1087_v44  ;;  %v938_v45 = vpop.f32.mrb[14].mxu1  ;;  %v507_v44 = vrot.slane %v3490_v61, %v506_v39 }
 0x24a   : > { %v1083_v46 = vmul.f32 0.17677669, %v938_v45  ;;  %v2849_v47 = vpop.f32.mrb[15].mxu1  ;;  %v498_v45 = vsub.s32 1, %v3479_v54 }
 0x24c   : > { %v1090_v48 = vsel %vm1086_vm3, %v1083_v46, -inf }
 0x24d   : > { %1091 = vmax.xlane.f32.xlu1 %v1090_v48  ;;  %v1008_v49 = vpop.f32.mrb[16].mxu1  ;;  %v499_v48 = vrot.slane %v3490_v61, %v498_v45 }
 0x24e   : > { %v1084_v50 = vmul.f32 0.17677669, %v1008_v49  ;;  %v2854_v53 = vpop.f32.mrb[17].mxu1 }
 0x24f   : > { %v604_v54 = vadd.f32 %v3483_v58, %v499_v48  ;;  %v705_v53 = vadd.f32 %v3519_v26, %v507_v44  ;;  %v616_v61 = vadd.f32 %v3481_v57, %v499_v48  ;;  %v782_v58 = vadd.f32 %v3501_v10, %v3514_v21 }
 0x250   : > { %v1093_v55 = vsel %vm1086_vm3, %v1084_v50, -inf  ;;  %v622_v57 = vadd.f32 %v3492_v0, %v499_v48 }
 0x251   : > { %1094 = vmax.xlane.f32.xlu0 %v1093_v55  ;;  %v1078_v56 = vpop.f32.mrb[18].mxu1 }
 0x252   : > { %v1085_v59 = vmul.f32 0.17677669, %v1078_v56  ;;  %v2859_v60 = vpop.f32.mrb[19].mxu1 }
 0x254   : > { %v1096_v62 = vsel %vm1086_vm3, %v1085_v59, -inf }
 0x255   : > { %1097 = vmax.xlane.f32.xlu0 %v1096_v62 }
 0x2d6   : > { %v1089_v63 = vpop.xlane.xlu0 %1088 }
 0x2d7   : > { %v1099_v2 = vsub.f32 %v1082_v40, %v1089_v63 }
 0x2d9   : > { %v1103_v3 = vmul.f32 1.442695, %v1099_v2 }
 0x2da   : > { %v1092_v4 = vpop.xlane.xlu1 %1091 }
 0x2db   : > { %3085 = vpow2.f32 %v1103_v3  ;;  %v1100_v5 = vsub.f32 %v1083_v46, %v1092_v4 }
 0x2dd   : > { %v1105_v6 = vmul.f32 1.442695, %v1100_v5 }
 0x2de   : > { %v1095_v7 = vpop.xlane.xlu0 %1094 }
 0x2df   : > { %3087 = vpow2.f32 %v1105_v6  ;;  %v1101_v8 = vsub.f32 %v1084_v50, %v1095_v7  ;;  %v699_v50 = vadd.f32 %v3507_v18, %v507_v44  ;;  %v711_v18 = vadd.f32 %v3529_v34, %v507_v44 }
 0x2e1   : > { %v1107_v12 = vmul.f32 1.442695, %v1101_v8 }
 0x2e2   : > { %v1098_v13 = vpop.xlane.xlu0 %1097 }
 0x2e3   : > { %3089 = vpow2.f32 %v1107_v12  ;;  %v1102_v14 = vsub.f32 %v1085_v59, %v1098_v13 }
 0x2e5   : > { %v3086_v15 = vpop.eup %3085  ;;  %v1109_v16 = vmul.f32 1.442695, %v1102_v14 }
 0x2e6   : > { %v1111_v17 = vsel %vm1086_vm3, %v3086_v15, 0.0 }
 0x2e7   : > { %3091 = vpow2.f32 %v1109_v16  ;;  %1112 = vadd.xlane.f32.xlu1 %v1111_v17 }
 0x2e9   : > { %v3088_v20 = vpop.eup %3087 }
 0x2ea   : > { %v1114_v22 = vsel %vm1086_vm3, %v3088_v20, 0.0 }
 0x2eb   : > { %1115 = vadd.xlane.f32.xlu0 %v1114_v22 }
 0x2ed   : > { %v3090_v23 = vpop.eup %3089 }
 0x2ee   : > { %v1117_v24 = vsel %vm1086_vm3, %v3090_v23, 0.0 }
 0x2ef   : > { %1118 = vadd.xlane.f32.xlu1 %v1117_v24 }
 0x2f1   : > { %v3092_v27 = vpop.eup %3091 }
 0x2f2   : > { %v1120_v29 = vsel %vm1086_vm3, %v3092_v27, 0.0 }
 0x2f3   : > { %1121 = vadd.xlane.f32.xlu0 %v1120_v29 }
 0x374   : > { %v1113_v30 = vpop.xlane.xlu1 %1112 }
 0x375   : > { %3093 = vrcp.f32 %v1113_v30 }
 0x378   : > { %v1116_v31 = vpop.xlane.xlu0 %1115 }
 0x379   : > { %3095 = vrcp.f32 %v1116_v31 }
 0x37c   : > { %v1119_v32 = vpop.xlane.xlu1 %1118 }
 0x37d   : > { %3097 = vrcp.f32 %v1119_v32 }
 0x37f   : > { %v3094_v35 = vpop.eup %3093 }
 0x380   : > { %v1127_v37 = vmul.f32 %v3094_v35, %v3086_v15  ;;  %v1122_v38 = vpop.xlane.xlu0 %1121 }
 0x381   : > { %3099 = vrcp.f32 %v1122_v38 }
 0x382   : > { %2863 = vmatmul.mubr.msk.f32.vlgmr.msra.gmra.mrb[12].mxu0 %vm1086_vm3, %v1127_v37 }
 0x383   : > { %v3096_v40 = vpop.eup %3095  ;;  %2871 = vmatpush3.msra.mxu0 %v3517_v25  ;;  %2872 = vmatprep.mubr.msk.f32.mxu0 %vm3219_vm2, %v3217_v11  ;;  %v693_v25 = vadd.f32 %v3499_v9, %v507_v44  ;;  %v610_v9 = vadd.f32 %v3494_v1, %v499_v48  ;;  %v788_v1 = vadd.f32 %v3509_v19, %v3514_v21 }
 0x384   : > { %v1128_v43 = vmul.f32 %v3096_v40, %v3088_v20  ;;  %2880 = vmatprep.subr.mxu0 %v3217_v11 }
 0x386   : > { %2868 = vmatmul.mubr.msk.f32.vlgmr.msra.gmra.mrb[20].mxu1 %vm1086_vm3, %v1128_v43 }
 0x387   : > { %v3098_v46 = vpop.eup %3097  ;;  %2876 = vmatpush3.msra.mxu1 %v3527_v33  ;;  %2877 = vmatprep.mubr.msk.f32.mxu1 %vm3219_vm2, %v3217_v11 }
 0x388   : > { %v1129_v47 = vmul.f32 %v3098_v46, %v3090_v23  ;;  %2885 = vmatprep.subr.mxu1 %v3217_v11 }
 0x38a   : > { %2873 = vmatmul.mubr.msk.f32.vlgmr.msra.gmra.mrb[14].mxu0 %vm1086_vm3, %v1129_v47 }
 0x38b   : > { %v3100_v49 = vpop.eup %3099  ;;  %2881 = vmatpush3.xpose.msra.mxu0 %v693_v25  ;;  %2882 = vmatprep.mubr.msk.f32.mxu0 %vm3219_vm2, %v3217_v11 }
 0x38c   : > { %v1130_v33 = vmul.f32 %v3100_v49, %v3092_v27  ;;  %2890 = vmatprep.subr.mxu0 %v3217_v11 }
 0x38e   : > { %2878 = vmatmul.mubr.msk.f32.vlgmr.msra.gmra.mrb[22].mxu1 %vm1086_vm3, %v1130_v33  ;;  %2883 = vmatmul.mubr.f32.vlgmr.msra.gmra.mrb[16].mxu0 %v604_v54  ;;  %v2059_v33 = vld [vmem:[%s3913_s4 + $0x80] sm:$0xff] }
 0x38f   : > { %2886 = vmatpush3.xpose.msra.mxu1 %v699_v50  ;;  %2891 = vmatpush3.xpose.msra.mxu0 %v705_v53  ;;  %v2060_v50 = vld [vmem:[%s3913_s4 + $0x88] sm:$0xff] }
 0x390   : > { %2887 = vmatprep.mubr.msk.f32.mxu1 %vm3219_vm2, %v3217_v11  ;;  %2892 = vmatprep.mubr.msk.f32.mxu0 %vm3219_vm2, %v3217_v11 }
 0x391   : > { %2895 = vmatprep.subr.mxu1 %v3217_v11  ;;  %2900 = vmatprep.subr.mxu0 %v3217_v11 }
 0x392   : > { %2888 = vmatmul.mubr.f32.vlgmr.msra.gmra.mrb[24].mxu1 %v610_v9  ;;  %2893 = vmatmul.mubr.f32.vlgmr.msra.gmra.mrb[18].mxu0 %v616_v61  ;;  %v2980_v9 = vpack.c.bf16 %v2060_v50, %v2059_v33 }
 0x393   : > { %2896 = vmatpush3.xpose.msra.mxu1 %v711_v18  ;;  %2901 = vmatpush3.msra.mxu0 %v782_v58  ;;  %v2043_v58 = vld [vmem:[%s3913_s4] sm:$0xff]  ;;  %v2044_v18 = vld [vmem:[%s3913_s4 + $0x8] sm:$0xff] }
 0x394   : > { %2897 = vmatprep.mubr.msk.f32.mxu1 %vm3219_vm2, %v3217_v11  ;;  %2905 = vmatprep.subr.mxu1 %v3217_v11 }
 0x395   : > { %2902 = vmatprep.mubr.msk.f32.mxu0 %vm3219_vm2, %v3217_v11  ;;  %2910 = vmatprep.subr.mxu0 %v3217_v11 }
 0x396   : > { %2898 = vmatmul.mubr.f32.vlgmr.msra.gmra.mrb[26].mxu1 %v622_v57  ;;  %v2061_v57 = vld [vmem:[%s3913_s4 + $0x90] sm:$0xff] }
 0x397   : > { %2906 = vmatpush3.msra.mxu1 %v788_v1  ;;  %2907 = vmatprep.mubr.msk.f32.mxu1 %vm3219_vm2, %v3217_v11  ;;  %v2062_v1 = vld [vmem:[%s3913_s4 + $0x98] sm:$0xff] }
 0x398   : > { %2915 = vmatprep.subr.mxu1 %v3217_v11 }
 0x455   : > { %v3594_v0 = vpop.f32.mrb[12].mxu0 }
 0x456   : > { %v2864_v10 = vpop.f32.mrb[13].mxu0 }
 0x459   : > { %v3596_v26 = vpop.f32.mrb[20].mxu1 }
 0x45a   : > { %v2869_v34 = vpop.f32.mrb[21].mxu1 }
 0x45b   : > { %v2982_v34 = vpack.c.bf16 %v2044_v18, %v2043_v58 }
 0x45d   : > { %v3598_v55 = vpop.f32.mrb[14].mxu0 }
 0x45e   : > { %v2874_v19 = vpop.f32.mrb[15].mxu0 }
 0x461   : > { %v3600_v21 = vpop.f32.mrb[22].mxu1  ;;  %v1489_v56 = vpop.f32.mrb[16].mxu0 }
 0x462   : > { %v1703_v59 = vmul.f32 0.17677669, %v1489_v56  ;;  %v2879_v60 = vpop.f32.mrb[23].mxu1  ;;  %v2884_v62 = vpop.f32.mrb[17].mxu0 }
 0x463   : > { %v2046_v60 = vld [vmem:[%s3913_s4 + $0x18] sm:$0xff] }
 0x464   : > { %v1707_v63 = vsel %vm1086_vm3, %v1703_v59, -inf }
 0x465   : > { %1708 = vmax.xlane.f32.xlu1 %v1707_v63  ;;  %v1559_v2 = vpop.f32.mrb[24].mxu1  ;;  %v1629_v3 = vpop.f32.mrb[18].mxu0  ;;  %v2984_v63 = vpack.c.bf16 %v2062_v1, %v2061_v57 }
 0x466   : > { %v1704_v4 = vmul.f32 0.17677669, %v1559_v2  ;;  %v1705_v5 = vmul.f32 0.17677669, %v1629_v3  ;;  %v2889_v6 = vpop.f32.mrb[25].mxu1  ;;  %v2894_v7 = vpop.f32.mrb[19].mxu0 }
 0x467   : > { %v2064_v2 = vld [vmem:[%s3913_s4 + $0xa8] sm:$0xff]  ;;  %v2047_v6 = vld [vmem:[%s3913_s4 + $0x20] sm:$0xff] }
 0x468   : > { %v1713_v8 = vsel %vm1086_vm3, %v1705_v5, -inf  ;;  %v1710_v12 = vsel %vm1086_vm3, %v1704_v4, -inf  ;;  %v2048_v7 = vld [vmem:[%s3913_s4 + $0x28] sm:$0xff] }
 0x469   : > { %1714 = vmax.xlane.f32.xlu1 %v1713_v8  ;;  %1711 = vmax.xlane.f32.xlu0 %v1710_v12  ;;  %v1699_v13 = vpop.f32.mrb[26].mxu1  ;;  %v2065_v12 = vld [vmem:[%s3913_s4 + $0xb0] sm:$0xff] }
 0x46a   : > { %v1706_v14 = vmul.f32 0.17677669, %v1699_v13  ;;  %v2899_v15 = vpop.f32.mrb[27].mxu1 }
 0x46b   : > { %v2050_v15 = vld [vmem:[%s3913_s4 + $0x38] sm:$0xff] }
 0x46c   : > { %v1716_v16 = vsel %vm1086_vm3, %v1706_v14, -inf }
 0x46d   : > { %1717 = vmax.xlane.f32.xlu0 %v1716_v16  ;;  %v2067_v16 = vld [vmem:[%s3913_s4 + $0xc0] sm:$0xff] }
 0x4f2   : > { %v1709_v17 = vpop.xlane.xlu1 %1708 }
 0x4f3   : > { %v1719_v20 = vsub.f32 %v1703_v59, %v1709_v17  ;;  %v2045_v59 = vld [vmem:[%s3913_s4 + $0x10] sm:$0xff]  ;;  %v2068_v17 = vld [vmem:[%s3913_s4 + $0xc8] sm:$0xff] }
 0x4f4   : > { %v2986_v3 = vpack.c.bf16 %v2046_v60, %v2045_v59 }
 0x4f5   : > { %v1723_v22 = vmul.f32 1.442695, %v1719_v20 }
 0x4f6   : > { %v1715_v23 = vpop.xlane.xlu1 %1714  ;;  %v1712_v24 = vpop.xlane.xlu0 %1711 }
 0x4f7   : > { %3101 = vpow2.f32 %v1723_v22  ;;  %v1721_v27 = vsub.f32 %v1705_v5, %v1715_v23  ;;  %v1720_v29 = vsub.f32 %v1704_v4, %v1712_v24  ;;  %v2996_v22 = vpack.c.bf16 %v2068_v17, %v2067_v16  ;;  %v2051_v23 = vld [vmem:[%s3913_s4 + $0x40] sm:$0xff]  ;;  %v2052_v24 = vld [vmem:[%s3913_s4 + $0x48] sm:$0xff] }
 0x4f9   : > { %v1727_v30 = vmul.f32 1.442695, %v1721_v27  ;;  %v1725_v31 = vmul.f32 1.442695, %v1720_v29  ;;  %v2069_v27 = vld [vmem:[%s3913_s4 + $0xd0] sm:$0xff]  ;;  %v2070_v29 = vld [vmem:[%s3913_s4 + $0xd8] sm:$0xff] }
 0x4fa   : > { %v1718_v32 = vpop.xlane.xlu0 %1717 }
 0x4fb   : > { %3103 = vpow2.f32 %v1727_v30  ;;  %v1722_v35 = vsub.f32 %v1706_v14, %v1718_v32  ;;  %v2049_v14 = vld [vmem:[%s3913_s4 + $0x30] sm:$0xff]  ;;  %v2998_v30 = vpack.c.bf16 %v2052_v24, %v2051_v23 }
 0x4fc   : > { %3105 = vpow2.f32 %v1725_v31  ;;  %v2994_v20 = vpack.c.bf16 %v2050_v15, %v2049_v14  ;;  %v3000_v31 = vpack.c.bf16 %v2070_v29, %v2069_v27  ;;  %v2053_v32 = vld [vmem:[%s3913_s4 + $0x50] sm:$0xff] }
 0x4fd   : > { %v1729_v37 = vmul.f32 1.442695, %v1722_v35  ;;  %v2054_v35 = vld [vmem:[%s3913_s4 + $0x58] sm:$0xff] }
 0x4ff   : > { %3107 = vpow2.f32 %v1729_v37  ;;  %v2071_v37 = vld [vmem:[%s3913_s4 + $0xe0] sm:$0xff] }
 0x501   : > { %v3102_v38 = vpop.eup %3101 }
 0x502   : > { %v1731_v39 = vsel %vm1086_vm3, %v3102_v38, 0.0 }
 0x503   : > { %1732 = vadd.xlane.f32.xlu1 %v1731_v39  ;;  %v3002_v39 = vpack.c.bf16 %v2054_v35, %v2053_v32 }
 0x505   : > { %v3104_v40 = vpop.eup %3103 }
 0x506   : > { %v3106_v43 = vpop.eup %3105  ;;  %v1737_v44 = vsel %vm1086_vm3, %v3104_v40, 0.0 }
 0x507   : > { %1738 = vadd.xlane.f32.xlu1 %v1737_v44  ;;  %v1734_v45 = vsel %vm1086_vm3, %v3106_v43, 0.0  ;;  %v2056_v44 = vld [vmem:[%s3913_s4 + $0x68] sm:$0xff] }
 0x508   : > { %1735 = vadd.xlane.f32.xlu0 %v1734_v45  ;;  %v2073_v45 = vld [vmem:[%s3913_s4 + $0xf0] sm:$0xff] }
 0x509   : > { %v3108_v46 = vpop.eup %3107 }
 0x50a   : > { %v1740_v47 = vsel %vm1086_vm3, %v3108_v46, 0.0 }
 0x50c   : > { %1741 = vadd.xlane.f32.xlu0 %v1740_v47 }
 0x518   : > { %2167 = vrot.lane.b32.xlu1 %v3429_v42, %s3220_s19 }
 0x51c   : > { %2171 = vrot.lane.b32.xlu1 %v3426_v41, %s3220_s19 }
 0x520   : > { %2173 = vrot.lane.b32.xlu1 %v3440_v51, %s3220_s19 }
 0x522   : > { %2169 = vrot.lane.b32.xlu0 %v3443_v52, %s3220_s19  ;;  %s421_s19 = sand.u32 1, %s3207_s22  }
 0x523   : > { %s2700_s26 = sshll.u32 %s421_s19, 5  ;;  %s3868_s25 = scalar_lea.sflag [#allocation3], %s421_s19 }
 0x524   : > { %s423_s0 = scalar_lea.vmem [#allocation2], %s2700_s26 }
 0x525   : > { %s2622_s28 = sshll.u32 %s423_s0, 4  ;;  %s3862_s28 = int_to_ptr.vmem [resolvable:$true] %s2622_s28 }
 0x526   : > { %s3153_s17 = scalar_lea.vmem %s3862_s28, 512 }
 0x527   : > { %p3154_p11 = scmp.ne.s32.totalorder %s3862_s28, %s3153_s17 }
 0x529   : > { %p3155_p12 = pnand %p3154_p11, %p3327_p5 }
 0x52b   : > { %p3156_p13 = pneg %p3155_p12 }
 0x590   : > { %v1733_v25 = vpop.xlane.xlu1 %1732 }
 0x591   : > { %3109 = vrcp.f32 %v1733_v25 }
 0x594   : > { %v1739_v48 = vpop.xlane.xlu1 %1738 }
 0x595   : > { %3111 = vrcp.f32 %v1739_v48  ;;  %v1736_v49 = vpop.xlane.xlu0 %1735  ;;  %v2057_v48 = vld [vmem:[%s3913_s4 + $0x70] sm:$0xff] }
 0x596   : > { %3113 = vrcp.f32 %v1736_v49  ;;  %v2058_v49 = vld [vmem:[%s3913_s4 + $0x78] sm:$0xff] }
 0x599   : > { %v1742_v54 = vpop.xlane.xlu0 %1741 }
 0x59a   : > { %3115 = vrcp.f32 %v1742_v54  ;;  %v3010_v54 = vpack.c.bf16 %v2058_v49, %v2057_v48  ;;  %v2269_v48 = vld [vmem:[%s3915_s6] sm:$0xff]  ;;  %v2270_v49 = vld [vmem:[%s3915_s6 + $0x8] sm:$0xff] }
 0x59b   : > { %v3110_v53 = vpop.eup %3109 }
 0x59c   : > { %v1747_v61 = vmul.f32 %v3110_v53, %v3102_v38  ;;  %v2072_v38 = vld [vmem:[%s3913_s4 + $0xe8] sm:$0xff] }
 0x59e   : > { %2903 = vmatmul.mubr.msk.f32.vlgmr.msra.gmra.mrb[20].mxu0 %vm1086_vm3, %v1747_v61 }
 0x59f   : > { %v3112_v10 = vpop.eup %3111  ;;  %2911 = vmatpush3.msra.mxu0 %v3522_v28  ;;  %2912 = vmatprep.mubr.msk.f32.mxu0 %vm3219_vm2, %v3217_v11  ;;  %v2063_v28 = vld [vmem:[%s3913_s4 + $0xa0] sm:$0xff] }
 0x5a0   : > { %v3114_v19 = vpop.eup %3113  ;;  %v1749_v56 = vmul.f32 %v3112_v10, %v3104_v40  ;;  %2981 = vmatprep.subr.bf16.mxu0 %v2980_v9  ;;  %v2988_v5 = vpack.c.bf16 %v2064_v2, %v2063_v28  ;;  %v3004_v40 = vpack.c.bf16 %v2072_v38, %v2071_v37 }
 0x5a1   : > { %v1748_v62 = vmul.f32 %v3114_v19, %v3106_v43  ;;  %v2055_v43 = vld [vmem:[%s3913_s4 + $0x60] sm:$0xff] }
 0x5a2   : > { %2913 = vmatmul.mubr.msk.f32.vlgmr.msra.gmra.mrb[22].mxu0 %vm1086_vm3, %v1749_v56  ;;  %v3006_v47 = vpack.c.bf16 %v2056_v44, %v2055_v43 }
 0x5a3   : > { %2908 = vmatmul.mubr.msk.f32.vlgmr.msra.gmra.mrb[28].mxu1 %vm1086_vm3, %v1748_v62  ;;  %2983 = vmatpush3.bf16.msra.mxu0 %v2982_v34  ;;  %v2168_v34 = vpop.permute.xlu1 %2167 }
 0x5a4   : > { %v3116_v4 = vpop.eup %3115  ;;  %2916 = vmatpush3.msra.mxu1 %v3532_v36  ;;  %2917 = vmatprep.mubr.msk.f32.mxu1 %vm3219_vm2, %v3217_v11  ;;  %v2066_v36 = vld [vmem:[%s3913_s4 + $0xb8] sm:$0xff]  ;;  %v2990_v11 = vpack.c.bf16 %v2048_v7, %v2047_v6 }
 0x5a5   : > { %v1750_v8 = vmul.f32 %v3116_v4, %v3108_v46  ;;  %2985 = vmatprep.subr.bf16.mxu0 %v2984_v63  ;;  %v2992_v13 = vpack.c.bf16 %v2066_v36, %v2065_v12  ;;  %v2074_v46 = vld [vmem:[%s3913_s4 + $0xf8] sm:$0xff] }
 0x5a6   : > { %v3008_v25 = vpack.c.bf16 %v2074_v46, %v2073_v45 }
 0x5a7   : > { %2918 = vmatmul.mubr.msk.f32.vlgmr.msra.gmra.mrb[30].mxu1 %vm1086_vm3, %v1750_v8  ;;  %2987 = vmatpush3.bf16.msra.mxu0 %v2986_v3  ;;  %v2172_v28 = vpop.permute.xlu1 %2171 }
 0x5a8   : > { %2989 = vmatprep.subr.bf16.mxu0 %v2988_v5  ;;  %v2181_v36 = vsel %vm522_vm1, %v3426_v41, %v2172_v28 }
 0x5ab   : > { %2991 = vmatpush3.bf16.msra.mxu0 %v2990_v11 }
 0x5ac   : > { %2993 = vmatprep.subr.bf16.mxu0 %v2992_v13  ;;  %v2174_v13 = vpop.permute.xlu1 %2173 }
 0x5af   : > { %2995 = vmatpush3.bf16.msra.mxu0 %v2994_v20 }
 0x5b0   : > { %2997 = vmatprep.subr.bf16.mxu0 %v2996_v22 }
 0x5b3   : > { %2999 = vmatpush3.bf16.msra.mxu0 %v2998_v30 }
 0x5b4   : > { %3001 = vmatprep.subr.bf16.mxu0 %v3000_v31 }
 0x5b7   : > { %3003 = vmatpush3.bf16.msra.mxu0 %v3002_v39 }
 0x5b8   : > { %3005 = vmatprep.subr.bf16.mxu0 %v3004_v40 }
 0x5bb   : > { %3007 = vmatpush3.bf16.msra.mxu0 %v3006_v47 }
 0x5bc   : > { %3009 = vmatprep.subr.bf16.mxu0 %v3008_v25 }
 0x5bf   : > { %3011 = vmatpush3.bf16.msra.mxu0 %v3010_v54  ;;  %v3012_v54 = vpack.c.bf16 %v2270_v49, %v2269_v48 }
 0x5c1   : > { %3013 = vmatprep.subr.bf16.mxu1 %v3012_v54 }
 0x5c2   : > { %3015 = vmatpush3.bf16.msra.mxu1 %v3012_v54 }
 0x671   : > { %v1820_v33 = vpop.f32.mrb[20].mxu0 }
 0x672   : > { %v2904_v50 = vpop.f32.mrb[21].mxu0  ;;  %2146 = vmatprep.mubr.f32.mxu0 %v1820_v33  ;;  %v2271_v33 = vld [vmem:[%s3915_s6 + $0x10] sm:$0xff] }
 0x673   : > { %2147 = vmatmul.mubr.f32.vlgmr.msra.gmra.mrb[24].mxu0 %v3594_v0  ;;  %v2725_v0 = vld [vmem:[%s3914_s5] ss:$0 sm:$0xff]  ;;  %v2272_v50 = vld [vmem:[%s3915_s6 + $0x18] sm:$0xff] }
 0x675   : > { %v1966_v53 = vpop.f32.mrb[22].mxu0 }
 0x676   : > { %v1893_v61 = vpop.f32.mrb[28].mxu1  ;;  %v2914_v9 = vpop.f32.mrb[23].mxu0 }
 0x677   : > { %v2909_v58 = vpop.f32.mrb[29].mxu1  ;;  %2151 = vmatprep.mubr.f32.mxu0 %v1893_v61  ;;  %v2273_v61 = vld [vmem:[%s3915_s6 + $0x20] sm:$0xff]  ;;  %v2274_v9 = vld [vmem:[%s3915_s6 + $0x28] sm:$0xff] }
 0x678   : > { %2152 = vmatmul.mubr.f32.gmra.mrb[26].mxu0 %v3596_v26  ;;  %v2179_v26 = vsel %vm522_vm1, %v3429_v42, %v2168_v34  ;;  %v3020_v58 = vpack.c.bf16 %v2274_v9, %v2273_v61  ;;  %v2731_v9 = vld [vmem:[%s3918_s9] ss:$0 sm:$0xff] }
 0x679   : > { %2156 = vmatprep.mubr.f32.mxu0 %v1966_v53  ;;  %v3016_v53 = vpack.c.bf16 %v2272_v50, %v2271_v33 }
 0x67a   : > { %v2039_v18 = vpop.f32.mrb[30].mxu1 }
 0x67b   : > { %v2919_v57 = vpop.f32.mrb[31].mxu1  ;;  %3017 = vmatprep.subr.bf16.mxu1 %v3016_v53 }
 0x67c   : > { %2157 = vmatmul.mubr.f32.gmra.mrb[28].mxu0 %v3598_v55  ;;  %v2170_v55 = vpop.permute.xlu0 %2169  ;;  %3019 = vmatpush3.bf16.msra.mxu1 %v3016_v53  ;;  %v2276_v57 = vld [vmem:[%s3915_s6 + $0x38] sm:$0xff] }
 0x67d   : > { %2161 = vmatprep.mubr.f32.mxu0 %v2039_v18  ;;  %v2180_v4 = vsel %vm522_vm1, %v3443_v52, %v2170_v55  ;;  %v2182_v52 = vsel %vm522_vm1, %v3440_v51, %v2174_v13  ;;  %v2275_v18 = vld [vmem:[%s3915_s6 + $0x30] sm:$0xff]  ;;  %3021 = vmatprep.subr.bf16.mxu1 %v3020_v58 }
 0x680   : > { %2162 = vmatmul.mubr.f32.gmra.mrb[30].mxu0 %v3600_v21  ;;  %3023 = vmatpush3.bf16.msra.mxu1 %v3020_v58 }
 0x746   : > { %v2808_v1 = vpop.f32.mrb[24].mxu0 }
 0x747   : > { %v2809_v10 = vpop.f32.mrb[25].mxu0 }
 0x748   : > { %v2810_v19 = vadd.f32 %v2809_v10, %v2808_v1  ;;  %v3024_v1 = vpack.c.bf16 %v2276_v57, %v2275_v18  ;;  %v2386_v10 = vld [vmem:[%s3917_s8 + $0x8] sm:$0xff] }
 0x74a   : > { %v2149_v56 = vadd.f32 %v2810_v19, %v2725_v0  ;;  %3025 = vmatprep.subr.bf16.mxu1 %v3024_v1 }
 0x74b   : > { %v2811_v59 = vpop.f32.mrb[26].mxu0  ;;  %3027 = vmatpush3.bf16.msra.mxu1 %v3024_v1 }
 0x74c   : > { %v2812_v60 = vpop.f32.mrb[27].mxu0  ;;  %v2183_v62 = vadd.f32 %v2179_v26, %v2149_v56 }
 0x74d   : > { %v2813_v63 = vadd.f32 %v2812_v60, %v2811_v59 }
 0x74e   : > { %v2188_v21 = vsel %vm2187_vm4, %v2183_v62, 0.0 }
 0x74f   : > { %v2154_v2 = vadd.f32 %v2813_v63, %v2725_v0  ;;  %v2814_v3 = vpop.f32.mrb[28].mxu0  ;;  %2189 = vadd.xlane.f32.xlu0 %v2188_v21 }
 0x750   : > { %v2815_v5 = vpop.f32.mrb[29].mxu0 }
 0x751   : > { %v2816_v6 = vadd.f32 %v2815_v5, %v2814_v3  ;;  %v2184_v7 = vadd.f32 %v2180_v4, %v2154_v2 }
 0x753   : > { %v2159_v8 = vadd.f32 %v2816_v6, %v2725_v0  ;;  %v2817_v42 = vpop.f32.mrb[30].mxu0  ;;  %v2191_v12 = vsel %vm2187_vm4, %v2184_v7, 0.0 }
 0x754   : > { %2192 = vadd.xlane.f32.xlu1 %v2191_v12  ;;  %v2818_v11 = vpop.f32.mrb[31].mxu0 }
 0x755   : > { %v2819_v14 = vadd.f32 %v2818_v11, %v2817_v42  ;;  %v2185_v15 = vadd.f32 %v2181_v36, %v2159_v8 }
 0x757   : > { %v2164_v16 = vadd.f32 %v2819_v14, %v2725_v0  ;;  %v2194_v17 = vsel %vm2187_vm4, %v2185_v15, 0.0  ;;  %v2385_v0 = vld [vmem:[%s3917_s8] sm:$0xff] }
 0x758   : > { %2195 = vadd.xlane.f32.xlu0 %v2194_v17  ;;  %v3028_v34 = vpack.c.bf16 %v2386_v10, %v2385_v0 }
 0x759   : > { %v2186_v20 = vadd.f32 %v2182_v52, %v2164_v16 }
 0x75a   : > { %3029 = vmatprep.subr.bf16.mxu1 %v3028_v34 }
 0x75b   : > { %v2197_v22 = vsel %vm2187_vm4, %v2186_v20, 0.0 }
 0x75c   : > { %2198 = vadd.xlane.f32.xlu0 %v2197_v22 }
 0x7dc   : > { %v2190_v23 = vpop.xlane.xlu0 %2189 }
 0x7dd   : > { %v2201_v24 = vmul.f32 0.015625, %v2190_v23 }
 0x7df   : > { %v3739_v27 = vsub.f32 %v2183_v62, %v2201_v24 }
 0x7e1   : > { %v2193_v41 = vpop.xlane.xlu1 %2192  ;;  %v2209_v29 = vmul.f32 %v3739_v27, %v3739_v27 }
 0x7e2   : > { %v2202_v30 = vmul.f32 0.015625, %v2193_v41 }
 0x7e3   : > { %v2213_v31 = vsel %vm2187_vm4, %v2209_v29, 0.0 }
 0x7e4   : > { %v3744_v32 = vsub.f32 %v2184_v7, %v2202_v30  ;;  %2214 = vadd.xlane.f32.xlu1 %v2213_v31 }
 0x7e5   : > { %v2196_v51 = vpop.xlane.xlu0 %2195 }
 0x7e6   : > { %v2203_v35 = vmul.f32 0.015625, %v2196_v51  ;;  %v2210_v37 = vmul.f32 %v3744_v32, %v3744_v32 }
 0x7e8   : > { %v3748_v38 = vsub.f32 %v2185_v15, %v2203_v35  ;;  %v2216_v39 = vsel %vm2187_vm4, %v2210_v37, 0.0 }
 0x7e9   : > { %2217 = vadd.xlane.f32.xlu0 %v2216_v39  ;;  %v2199_v40 = vpop.xlane.xlu0 %2198 }
 0x7ea   : > { %v2204_v43 = vmul.f32 0.015625, %v2199_v40  ;;  %v2211_v44 = vmul.f32 %v3748_v38, %v3748_v38 }
 0x7ec   : > { %v3753_v45 = vsub.f32 %v2186_v20, %v2204_v43  ;;  %v2219_v46 = vsel %vm2187_vm4, %v2211_v44, 0.0 }
 0x7ed   : > { %2220 = vadd.xlane.f32.xlu1 %v2219_v46 }
 0x7ee   : > { %v2212_v47 = vmul.f32 %v3753_v45, %v3753_v45 }
 0x7f0   : > { %v2222_v25 = vsel %vm2187_vm4, %v2212_v47, 0.0 }
 0x7f1   : > { %2223 = vadd.xlane.f32.xlu0 %v2222_v25 }
 0x871   : > { %v2215_v19 = vpop.xlane.xlu1 %2214 }
 0x872   : > { %v2225_v56 = vmul.f32 0.015873017, %v2215_v19 }
 0x874   : > { %3117 = vrsqrt.f32 %v2225_v56  ;;  %vm2231_vm5 = vcmp.eq.f32.partialorder %v2225_v56, inf  ;;  %v2234_v2 = vand.u32 2147483648, %v2225_v56  ;;  %vm2233_vm6 = vcmp.eq.f32.partialorder %v2225_v56, 0.0 }
 0x876   : > { %v2218_v26 = vpop.xlane.xlu0 %2217 }
 0x877   : > { %v2226_v59 = vmul.f32 0.015873017, %v2218_v26 }
 0x879   : > { %3119 = vrsqrt.f32 %v2226_v59  ;;  %vm2238_vm7 = vcmp.eq.f32.partialorder %v2226_v59, inf  ;;  %v2241_v8 = vand.u32 2147483648, %v2226_v59  ;;  %vm2240_vm8 = vcmp.eq.f32.partialorder %v2226_v59, 0.0 }
 0x87a   : > { %v2221_v60 = vpop.xlane.xlu1 %2220 }
 0x87b   : > { %v2227_v62 = vmul.f32 0.015873017, %v2221_v60 }
 0x87d   : > { %3121 = vrsqrt.f32 %v2227_v62  ;;  %vm2245_vm9 = vcmp.eq.f32.partialorder %v2227_v62, inf  ;;  %v2248_v14 = vand.u32 2147483648, %v2227_v62  ;;  %vm2247_vm10 = vcmp.eq.f32.partialorder %v2227_v62, 0.0 }
 0x87e   : > { %v3118_v55 = vpop.eup %3117  ;;  %v2224_v63 = vpop.xlane.xlu0 %2223 }
 0x87f   : > { %v2230_v21 = vmul.f32 %v3118_v55, %v2225_v56  ;;  %v2228_v28 = vmul.f32 0.015873017, %v2224_v63 }
 0x881   : > { %v2232_v3 = vsel %vm2231_vm5, %v2225_v56, %v2230_v21  ;;  %3123 = vrsqrt.f32 %v2228_v28  ;;  %vm2252_vm11 = vcmp.eq.f32.partialorder %v2228_v28, inf  ;;  %v2255_v22 = vand.u32 2147483648, %v2228_v28  ;;  %v3150_v56 = vld [vmem:[%s3385_s16] sm:$0xff] }
 0x882   : > { %v2235_v4 = vsel %vm2233_vm6, %v2234_v2, %v2232_v3  ;;  %vm2254_vm12 = vcmp.eq.f32.partialorder %v2228_v28, 0.0  ;;  %v3151_v3 = vld [vmem:[%s3385_s16 + $0x18] sm:$0xff] }
 0x883   : > { %v3120_v5 = vpop.eup %3119  ;;  %v2257_v6 = vadd.f32 1e-06, %v2235_v4 }
 0x884   : > { %v2237_v7 = vmul.f32 %v3120_v5, %v2226_v59  ;;  %v3152_v5 = vld [vmem:[%s3385_s16 + $0x10] sm:$0xff] }
 0x885   : > { %3125 = vrcp.f32 %v2257_v6 }
 0x886   : > { %v2239_v42 = vsel %vm2238_vm7, %v2226_v59, %v2237_v7 }
 0x887   : > { %v3122_v12 = vpop.eup %3121  ;;  %v2242_v36 = vsel %vm2240_vm8, %v2241_v8, %v2239_v42 }
 0x888   : > { %v2258_v11 = vadd.f32 1e-06, %v2242_v36  ;;  %v2244_v13 = vmul.f32 %v3122_v12, %v2227_v62 }
 0x88a   : > { %3127 = vrcp.f32 %v2258_v11  ;;  %v2246_v15 = vsel %vm2245_vm9, %v2227_v62, %v2244_v13 }
 0x88b   : > { %v3124_v16 = vpop.eup %3123  ;;  %v2249_v17 = vsel %vm2247_vm10, %v2248_v14, %v2246_v15 }
 0x88c   : > { %v2251_v52 = vmul.f32 %v3124_v16, %v2228_v28  ;;  %v2259_v20 = vadd.f32 1e-06, %v2249_v17 }
 0x88e   : > { %v2253_v23 = vsel %vm2252_vm11, %v2228_v28, %v2251_v52  ;;  %3129 = vrcp.f32 %v2259_v20 }
 0x88f   : > { %v3126_v24 = vpop.eup %3125  ;;  %v2256_v41 = vsel %vm2254_vm12, %v2255_v22, %v2253_v23 }
 0x890   : > { %v2265_v29 = vmul.f32 %v3126_v24, %v3739_v27  ;;  %v2260_v30 = vadd.f32 1e-06, %v2256_v41  ;;  %v2387_v27 = vld [vmem:[%s3917_s8 + $0x10] sm:$0xff] }
 0x892   : > { %2936 = vmatprep.mubr.msk.f32.mxu1 %vm2187_vm4, %v2265_v29  ;;  %3131 = vrcp.f32 %v2260_v30 }
 0x894   : > { %v3128_v31 = vpop.eup %3127 }
 0x895   : > { %v2266_v51 = vmul.f32 %v3128_v31, %v3744_v32  ;;  %v2388_v32 = vld [vmem:[%s3917_s8 + $0x18] sm:$0xff] }
 0x896   : > { %v3032_v43 = vpack.c.bf16 %v2388_v32, %v2387_v27 }
 0x897   : > { %2937 = vmatmul.mubr.msk.f32.vlgmr.msra.gmra.mrb[32].mxu1 %vm2187_vm4, %v2266_v51 }
 0x898   : > { %v3130_v35 = vpop.eup %3129  ;;  %3031 = vmatpush3.bf16.msra.mxu1 %v3028_v34  ;;  %v3149_v34 = vld [vmem:[%s3385_s16 + $0x8] sm:$0xff]  ;;  %s3221_s16 = smov [#allocation2]  }
 0x899   : > { %v2267_v37 = vmul.f32 %v3130_v35, %v3748_v38  ;;  %3033 = vmatprep.subr.bf16.mxu1 %v3032_v43  ;;  %v2726_v38 = vld [vmem:[%s3916_s7] ss:$0 sm:$0xff]  ;;  %s3157_s18 = sshll.u32 %s3221_s16, 4  ;;  %s3158_s18 = int_to_ptr.vmem [resolvable:$false] %s3157_s18 }
 0x89a   : > { %s3159_s26 = scalar_lea.vmem %s3158_s18, 1024  ;;  %p3160_p0 = scmp.lt.s32.totalorder %s3862_s28, %s3158_s18 }
 0x89b   : > { %2939 = vmatprep.mubr.msk.f32.mxu1 %vm2187_vm4, %v2267_v37  ;;  %p3161_p1 = scmp.lt.s32.totalorder %s3159_s26, %s3153_s17 }
 0x89c   : > { %v3132_v39 = vpop.eup %3131  ;;  %3035 = vmatpush3.bf16.msra.mxu1 %v3032_v43 }
 0x89d   : > { %v2268_v40 = vmul.f32 %v3132_v39, %v3753_v45  ;;  %p3162_p2 = por %p3161_p1, %p3160_p0 }
 0x89f   : > { %2940 = vmatmul.mubr.msk.f32.gmra.mrb[34].mxu1 %vm2187_vm4, %v2268_v40  ;;  %p3163_p3 = pnand %p3162_p2, %p3156_p13 }
 0x96a   : > { %v2938_v44 = vpop.f32.mrb[32].mxu1 }
 0x96b   : > { %v2368_v46 = vadd.f32 %v2938_v44, %v2726_v38  ;;  %v2362_v45 = vpop.f32.mrb[33].mxu1 }
 0x96c   : > { %v2363_v47 = vadd.f32 %v2726_v38, %v2362_v45 }
 0x96d   : > { %v2382_v48 = vmax.f32 %v2368_v46, 0.0 }
 0x96e   : > { %v2381_v25 = vmax.f32 %v2363_v47, 0.0 }
 0x970   : > { %2950 = vmatprep.mubr.msk.f32.mxu1 %vm522_vm1, %v2381_v25 }
 0x971   : > { %2951 = vmatmul.mubr.msk.f32.vlgmr.msra.gmra.mrb[36].mxu1 %vm522_vm1, %v2382_v48 }
 0x972   : > { %v2941_v49 = vpop.f32.mrb[34].mxu1 }
 0x973   : > { %v2378_v54 = vadd.f32 %v2941_v49, %v2726_v38  ;;  %v2372_v33 = vpop.f32.mrb[35].mxu1 }
 0x974   : > { %v2373_v50 = vadd.f32 %v2726_v38, %v2372_v33 }
 0x975   : > { %v2384_v61 = vmax.f32 %v2378_v54, 0.0 }
 0x976   : > { %v2383_v53 = vmax.f32 %v2373_v50, 0.0 }
 0x978   : > { %2953 = vmatprep.mubr.msk.f32.mxu1 %vm522_vm1, %v2383_v53 }
 0x979   : > { %2954 = vmatmul.mubr.msk.f32.gmra.mrb[38].mxu1 %vm522_vm1, %v2384_v61 }
 0xa44   : > { %v2952_v58 = vpop.f32.mrb[36].mxu1 }
 0xa45   : > { %v2480_v18 = vadd.f32 %v2952_v58, %v2731_v9  ;;  %v2474_v57 = vpop.f32.mrb[37].mxu1 }
 0xa46   : > { %v2475_v1 = vadd.f32 %v2731_v9, %v2474_v57 }
 0xa47   : > { %v2494_v0 = vmax.f32 %v2480_v18, 0.0 }
 0xa48   : > { %v2493_v10 = vmax.f32 %v2475_v1, 0.0 }
 0xa49   : > { %v2498_v19 = vadd.f32 %v3149_v34, %v2494_v0 }
 0xa4a   : > { %v2497_v26 = vadd.f32 %v3150_v56, %v2493_v10 }
 0xa4b   : > { %v2504_v59 = vsel %vm461_vm0, %v2498_v19, 0.0 }
 0xa4c   : > { %2505 = vadd.xlane.f32.xlu0 %v2504_v59  ;;  %v2955_v60 = vpop.f32.mrb[38].mxu1  ;;  %v2501_v62 = vsel %vm461_vm0, %v2497_v26, 0.0 }
 0xa4d   : > { %v2490_v55 = vadd.f32 %v2955_v60, %v2731_v9  ;;  %v2484_v63 = vpop.f32.mrb[39].mxu1  ;;  %2502 = vadd.xlane.f32.xlu1 %v2501_v62 }
 0xa4e   : > { %v2485_v21 = vadd.f32 %v2731_v9, %v2484_v63 }
 0xa4f   : > { %v2496_v28 = vmax.f32 %v2490_v55, 0.0 }
 0xa50   : > { %v2495_v2 = vmax.f32 %v2485_v21, 0.0 }
 0xa51   : > { %v2500_v4 = vadd.f32 %v3151_v3, %v2496_v28  ;;  %v2737_v28 = vld [vmem:[%s3920_s11] ss:$0 sm:$0xff] }
 0xa52   : > { %v2499_v6 = vadd.f32 %v3152_v5, %v2495_v2 }
 0xa53   : > { %v2510_v7 = vsel %vm461_vm0, %v2500_v4, 0.0 }
 0xa54   : > { %2511 = vadd.xlane.f32.xlu0 %v2510_v7  ;;  %v2507_v8 = vsel %vm461_vm0, %v2499_v6, 0.0 }
 0xa55   : > { %2508 = vadd.xlane.f32.xlu1 %v2507_v8 }
 0xad9   : > { %v2506_v42 = vpop.xlane.xlu0 %2505 }
 0xada   : > { %v2515_v12 = vmul.f32 0.0625, %v2506_v42  ;;  %v2503_v36 = vpop.xlane.xlu1 %2502 }
 0xadb   : > { %v2514_v11 = vmul.f32 0.0625, %v2503_v36 }
 0xadc   : > { %v3821_v13 = vsub.f32 %v2498_v19, %v2515_v12 }
 0xadd   : > { %v3823_v14 = vsub.f32 %v2497_v26, %v2514_v11  ;;  %v2736_v26 = vld [vmem:[%s3919_s10] ss:$0 sm:$0xff] }
 0xade   : > { %v2523_v15 = vmul.f32 %v3821_v13, %v3821_v13  ;;  %v2550_v55 = vmul.f32 %v2736_v26, %v3821_v13 }
 0xadf   : > { %v2522_v16 = vmul.f32 %v3823_v14, %v3823_v14  ;;  %v2549_v21 = vmul.f32 %v2736_v26, %v3823_v14 }
 0xae0   : > { %v2529_v17 = vsel %vm461_vm0, %v2523_v15, 0.0 }
 0xae1   : > { %2530 = vadd.xlane.f32.xlu0 %v2529_v17  ;;  %v2512_v52 = vpop.xlane.xlu0 %2511  ;;  %v2526_v20 = vsel %vm461_vm0, %v2522_v16, 0.0 }
 0xae2   : > { %v2517_v22 = vmul.f32 0.0625, %v2512_v52  ;;  %2527 = vadd.xlane.f32.xlu1 %v2526_v20  ;;  %v2509_v23 = vpop.xlane.xlu1 %2508 }
 0xae3   : > { %v2516_v24 = vmul.f32 0.0625, %v2509_v23 }
 0xae4   : > { %v3831_v41 = vsub.f32 %v2500_v4, %v2517_v22 }
 0xae5   : > { %v3833_v29 = vsub.f32 %v2499_v6, %v2516_v24 }
 0xae6   : > { %v2525_v30 = vmul.f32 %v3831_v41, %v3831_v41  ;;  %v2552_v7 = vmul.f32 %v2736_v26, %v3831_v41 }
 0xae7   : > { %v2524_v31 = vmul.f32 %v3833_v29, %v3833_v29  ;;  %v2551_v42 = vmul.f32 %v2736_v26, %v3833_v29 }
 0xae8   : > { %v2535_v51 = vsel %vm461_vm0, %v2525_v30, 0.0 }
 0xae9   : > { %2536 = vadd.xlane.f32.xlu0 %v2535_v51  ;;  %v2532_v35 = vsel %vm461_vm0, %v2524_v31, 0.0 }
 0xaea   : > { %2533 = vadd.xlane.f32.xlu1 %v2532_v35 }
 0xb6e   : > { %v2531_v37 = vpop.xlane.xlu0 %2530 }
 0xb6f   : > { %v2539_v39 = vmul.f32 0.06666667, %v2531_v37  ;;  %v2528_v40 = vpop.xlane.xlu1 %2527 }
 0xb70   : > { %v2538_v27 = vmul.f32 0.06666667, %v2528_v40 }
 0xb71   : > { %3133 = vrsqrt.f32 %v2539_v39  ;;  %vm2562_vm13 = vcmp.eq.f32.partialorder %v2539_v39, inf  ;;  %v2565_v25 = vand.u32 2147483648, %v2539_v39  ;;  %vm2564_vm14 = vcmp.eq.f32.partialorder %v2539_v39, 0.0 }
 0xb72   : > { %3135 = vrsqrt.f32 %v2538_v27  ;;  %vm2555_vm15 = vcmp.eq.f32.partialorder %v2538_v27, inf  ;;  %v2558_v54 = vand.u32 2147483648, %v2538_v27  ;;  %vm2557_vm1 = vcmp.eq.f32.partialorder %v2538_v27, 0.0 }
 0xb76   : > { %v2537_v32 = vpop.xlane.xlu0 %2536 }
 0xb77   : > { %v2541_v43 = vmul.f32 0.06666667, %v2537_v32  ;;  %v2534_v38 = vpop.xlane.xlu1 %2533 }
 0xb78   : > { %v2540_v44 = vmul.f32 0.06666667, %v2534_v38 }
 0xb79   : > { %3137 = vrsqrt.f32 %v2541_v43  ;;  %vm2576_vm2 = vcmp.eq.f32.partialorder %v2541_v43, inf  ;;  %v2579_v1 = vand.u32 2147483648, %v2541_v43  ;;  %vm2578_vm3 = vcmp.eq.f32.partialorder %v2541_v43, 0.0 }
 0xb7a   : > { %3139 = vrsqrt.f32 %v2540_v44  ;;  %vm2569_vm4 = vcmp.eq.f32.partialorder %v2540_v44, inf  ;;  %v2572_v34 = vand.u32 2147483648, %v2540_v44  ;;  %vm2571_vm5 = vcmp.eq.f32.partialorder %v2540_v44, 0.0 }
 0xb7b   : > { %v3134_v46 = vpop.eup %3133 }
 0xb7c   : > { %v3136_v45 = vpop.eup %3135  ;;  %v2561_v47 = vmul.f32 %v3134_v46, %v2539_v39 }
 0xb7d   : > { %v2554_v48 = vmul.f32 %v3136_v45, %v2538_v27 }
 0xb7e   : > { %v2563_v49 = vsel %vm2562_vm13, %v2539_v39, %v2561_v47 }
 0xb7f   : > { %v2566_v33 = vsel %vm2564_vm14, %v2565_v25, %v2563_v49  ;;  %v2556_v50 = vsel %vm2555_vm15, %v2538_v27, %v2554_v48 }
 0xb80   : > { %v2582_v53 = vadd.f32 1e-06, %v2566_v33  ;;  %v2559_v61 = vsel %vm2557_vm1, %v2558_v54, %v2556_v50 }
 0xb81   : > { %v2581_v9 = vadd.f32 1e-06, %v2559_v61 }
 0xb82   : > { %3141 = vrcp.f32 %v2582_v53 }
 0xb83   : > { %v3138_v58 = vpop.eup %3137  ;;  %3143 = vrcp.f32 %v2581_v9 }
 0xb84   : > { %v3140_v18 = vpop.eup %3139  ;;  %v2575_v57 = vmul.f32 %v3138_v58, %v2541_v43 }
 0xb85   : > { %v2568_v0 = vmul.f32 %v3140_v18, %v2540_v44 }
 0xb86   : > { %v2577_v10 = vsel %vm2576_vm2, %v2541_v43, %v2575_v57 }
 0xb87   : > { %v2580_v19 = vsel %vm2578_vm3, %v2579_v1, %v2577_v10  ;;  %v2570_v56 = vsel %vm2569_vm4, %v2540_v44, %v2568_v0 }
 0xb88   : > { %v2584_v59 = vadd.f32 1e-06, %v2580_v19  ;;  %v2573_v60 = vsel %vm2571_vm5, %v2572_v34, %v2570_v56 }
 0xb89   : > { %v2583_v62 = vadd.f32 1e-06, %v2573_v60 }
 0xb8a   : > { %3145 = vrcp.f32 %v2584_v59 }
 0xb8b   : > { %3147 = vrcp.f32 %v2583_v62 }
 0xb8c   : > { %v3142_v63 = vpop.eup %3141 }
 0xb8d   : > { %v3144_v2 = vpop.eup %3143  ;;  %v2590_v3 = vmul.f32 %v3142_v63, %v2550_v55 }
 0xb8e   : > { %v2589_v4 = vmul.f32 %v3144_v2, %v2549_v21 }
 0xb8f   : > { %v2601_v5 = vadd.f32 %v2737_v28, %v2590_v3 }
 0xb90   : > { %v2600_v6 = vadd.f32 %v2737_v28, %v2589_v4 }
 0xb91   : > { %2605 = vst.msk [vmem:[%s423_s0 + $0x8] sm:$0xff] %vm461_vm0, %v2601_v5 }
 0xb92   : > { %2604 = vst.msk [vmem:[%s423_s0] sm:$0xff] %vm461_vm0, %v2600_v6 }
 0xb94   : > { %v3146_v8 = vpop.eup %3145 }
 0xb95   : > { %v3148_v12 = vpop.eup %3147  ;;  %v2592_v36 = vmul.f32 %v3146_v8, %v2552_v7 }
 0xb96   : > { %v2591_v11 = vmul.f32 %v3148_v12, %v2551_v42 }
 0xb97   : > { %v2603_v13 = vadd.f32 %v2737_v28, %v2592_v36 }
 0xb98   : > { %v2602_v14 = vadd.f32 %v2737_v28, %v2591_v11 }
 0xb99   : > { %2607 = vst.msk [vmem:[%s423_s0 + $0x18] sm:$0xff] %vm461_vm0, %v2603_v13 }
 0xb9a   : > { %2606 = vst.msk [vmem:[%s423_s0 + $0x10] sm:$0xff] %vm461_vm0, %v2602_v14 }
 0xb9b   : > { %3166 = shalt.err (!%p3163_p3)
}
 0xb9c   : > { %s3167_s19 = scalar_lea.hbm %s3860_s29, 512  ;;  %s3171_s0 = scalar_lea.hbm %s3921_s12, 1024 }
 0xb9d   : > { %p3168_p4 = scmp.ne.s32.totalorder %s3860_s29, %s3167_s19  ;;  %p3172_p9 = scmp.lt.u32.totalorder %s3860_s29, %s3921_s12 }
 0xb9e   : > { %p3173_p10 = scmp.lt.u32.totalorder %s3171_s0, %s3167_s19  ;;  %p3175_p12 = scmp.lt.u32.totalorder %s3167_s19, %s3860_s29 }
 0xb9f   : > { %p3169_p7 = pnand %p3168_p4, %p3327_p5 }
 0xba0   : > { %p3174_p11 = por %p3173_p10, %p3172_p9 }
 0xba1   : > { %p3170_p8 = pneg %p3169_p7 }
 0xba2   : > { %p3176_p13 = por %p3175_p12, %p3174_p11 }
 0xba4   : > { %p3177_p0 = pnand %p3176_p13, %p3170_p8 }
 0xba6   : > { %3180 = shalt.err (!%p3177_p0)
}
 0xba7   : > { %s3222_s15 = smov 128   ;;  %s3223_s17 = smov 8  }
 0xba8   : > { %3040 = dma.vmem_to_hbm [thread:$0]  (%p3327_p5), %s3862_s28, 512, %s3860_s29, %s3868_s25, %s3222_s15, %s3222_s15, %s3223_s17  }
 0xba9 PF: > { %p3046_p1 = scmp.ge.s32.totalorder %s3215_s24, 2  ;;  %s2637_s16 = sand.u32 1, %s3203_s21  }
 0xbaa   : > { %s2638_s18 = scalar_lea.sflag [#allocation3], %s2637_s16 }
 0xbab   : > { %p3043_p2 = pnand %p3046_p1, %p3331_p6 }
 0xbad   : > { %3198 = dma.done.wait (!%p3043_p2), %s2638_s18, 512  }
 0xbae   : > { %3200 = vsyncadd (!%p3043_p2), %s2638_s18, 4294966784  ;;  %s3931_s26 = sld [smem:[#allocation5_spill]]  ;;  %s3932_s23 = sld [smem:[#allocation6_spill]] }
 0xbaf   : > { %p22_p3 = scmp.ge.s32.totalorder %s3314_s27, 4   ;;  %s3933_s21 = smov %s3207_s22 }
 0xbb0   : > { %s3935_s24 = smov %s3314_s27 }
 0xbb1   :  { %24 = sbr.rel (!%p22_p3) target bundleno = 6 (0x6), region = 106 }
 0xbb4   : > { %s3934_s22 = smov %s3931_s26 }
 0xbb8   :  { %2643 = vsyncpa [#allocation3], 1 }
 0xbb9   :  { %2645 = vsyncpa [#allocation3 + $0x1], 1 }

</bundles_post_ra>
